<compile_context>
chip_gen: v5e
topology: v5e:2x2
jax: 0.10.0
libtpu: 0.0.40
codegen_flags: <defaults>
</compile_context>

<pallas_src>
import functools

import jax
import jax.numpy as jnp
from jax.experimental import pallas as pl
from jax.experimental.pallas import tpu as pltpu

K = 256
L = 1.0 / K
WD = L / 2.5
_C = 0.5 / WD          # 1 / (2 * Wd) = 320.0
_DELTA = L * _C        # a_lo - a_hi = L * c = 1.25 (exact in f32 and bf16)
_KC = 64               # bins per chunk (4 chunks of 64 keeps vregs comfortable)
_GROUP_ROWS = 8        # pixel rows (of 128 lanes) per aligned inner load


def _round_up(a: int, m: int) -> int:
    return (a + m - 1) // m * m


def _default_compute_dtype():
    # bf16 tanh only pays off on v6e/v7x EUPs; keep f32 on v5e and older.
    try:
        kind = jax.devices()[0].device_kind.lower()
    except Exception:
        return jnp.float32
    if any(old in kind for old in ("v2", "v3", "v4", "v5")):
        return jnp.float32
    return jnp.bfloat16


def _default_row_splits(batch: int) -> int:
    # v7x has 2 TensorCores; split the pixel range when the batch alone
    # cannot be sharded evenly across them.
    try:
        kind = jax.devices()[0].device_kind.lower()
    except Exception:
        return 1
    if "v7" in kind and batch % 2 == 1:
        return 2
    return 1


def _hist_kernel(x_ref, o_ref, acc_ref, *, rows, inv_n, compute_dtype):
    # x_ref: (1, rows, 128) f32 pixels (lane-dense).
    # o_ref: (1, 1, K, 1) f32 output block for this (batch, split).
    # acc_ref: (K, 1) f32 persistent accumulator across the pixel-chunk axis.
    j = pl.program_id(2)

    @pl.when(j == 0)
    def _():
        acc_ref[...] = jnp.zeros_like(acc_ref)

    delta_c = jnp.asarray(_DELTA, dtype=compute_dtype)

    for kc in range(K // _KC):
        # Bin constants for this chunk, lane-replicated (KC, 128) f32, hoisted
        # out of the pixel loop:  a_lo = x*c - 1.25*k_global.
        kidx = jax.lax.broadcasted_iota(jnp.int32, (_KC, 128), 0).astype(jnp.float32)
        mu_lo = _DELTA * (kidx + float(kc * _KC))

        def gbody(g, acc, mu_lo=mu_lo):
            base = pl.multiple_of(g * _GROUP_ROWS, _GROUP_ROWS)
            x8 = x_ref[0, pl.ds(base, _GROUP_ROWS), :] * _C        # (8, 128) f32
            for rr in range(_GROUP_ROWS):
                # Subtract the two large terms in f32, cast only the small
                # difference to the compute dtype (review correctness fix).
                a_lo32 = x8[rr:rr + 1, :] - mu_lo                   # (KC, 128) f32
                a_lo = a_lo32.astype(compute_dtype)
                a_hi = a_lo - delta_c
                d = jnp.tanh(a_lo) - jnp.tanh(a_hi)                 # (KC, 128)
                acc = acc + d.astype(jnp.float32)
            return acc

        acc_kc = jax.lax.fori_loop(0, rows // _GROUP_ROWS, gbody,
                                   jnp.zeros((_KC, 128), jnp.float32))
        # One cross-lane (pixel) reduce per chunk per grid step.
        acc_ref[pl.ds(kc * _KC, _KC), :] += jnp.sum(acc_kc, axis=1, keepdims=True)

    @pl.when(j == pl.num_programs(2) - 1)
    def _():
        # Fold the 0.5 from the sigmoid->tanh identity and the 1/N normalization.
        o_ref[...] = (acc_ref[...] * (0.5 * inv_n)).reshape(1, 1, K, 1).astype(o_ref.dtype)


def single_dim_hist_layer(x, *, pixel_tile: int = 8192, compute_dtype=None,
                          row_splits=None):
    """x: (B, H, W) float in [0, 1].  Returns (B, K) float32 soft histogram."""
    B, H, W = x.shape
    N = H * W

    if compute_dtype is None:
        compute_dtype = _default_compute_dtype()
    if row_splits is None:
        row_splits = _default_row_splits(B)
    S = int(row_splits)

    group_pix = _GROUP_ROWS * 128                      # 1024 pixels per inner group
    tile = max(group_pix, min(int(pixel_tile), _round_up(N, group_pix)))
    tile = _round_up(tile, group_pix)                  # pixels per grid step
    rows_tile = tile // 128
    n_pad = _round_up(N, S * tile)
    R = n_pad // 128
    NJ = n_pad // (S * tile)                           # pixel chunks per split

    x_flat = x.reshape(B, N).astype(jnp.float32)
    if n_pad != N:
        # Huge pad value: both tanh's saturate to exactly 1 -> contributes 0.
        pad = jnp.full((B, n_pad - N), 1e6, dtype=jnp.float32)
        x_flat = jnp.concatenate([x_flat, pad], axis=1)
    x3 = x_flat.reshape(B, R, 128)                     # lane-dense pixel layout

    kernel = functools.partial(
        _hist_kernel,
        rows=rows_tile,
        inv_n=1.0 / N,
        compute_dtype=compute_dtype,
    )

    out = pl.pallas_call(
        kernel,
        out_shape=jax.ShapeDtypeStruct((B, S, K, 1), jnp.float32),
        grid_spec=pltpu.PrefetchScalarGridSpec(
            num_scalar_prefetch=0,
            grid=(B, S, NJ),
            in_specs=[pl.BlockSpec((1, rows_tile, 128),
                                   lambda b, s, j: (b, s * NJ + j, 0))],
            out_specs=pl.BlockSpec((1, 1, K, 1),
                                   lambda b, s, j: (b, s, 0, 0)),
            scratch_shapes=[pltpu.VMEM((K, 1), jnp.float32)],
        ),
        compiler_params=pltpu.CompilerParams(
            dimension_semantics=("parallel", "parallel", "arbitrary")
        ),
    )(x3)

    # Sum the per-split partials (no-op for S == 1).
    return jnp.sum(out[..., 0], axis=1)


def _reference(x):
    B, H, W = x.shape
    N = H * W
    mu_k = (L * (jnp.arange(K, dtype=jnp.float32) + 0.5)).reshape(1, K, 1)
    xr = x.reshape(B, 1, N).astype(jnp.float32)
    d = xr - mu_k
    pj = jax.nn.sigmoid((d + L / 2.0) / WD) - jax.nn.sigmoid((d - L / 2.0) / WD)
    return pj.sum(axis=2) / N


if __name__ == "__main__":
    key = jax.random.PRNGKey(0)
    x = jax.random.uniform(key, (2, 16, 16), dtype=jnp.float32)  # values in [0, 1)

    ref = _reference(x)

    # Exact f32 path: tight tolerance.
    out_f32 = jax.block_until_ready(
        single_dim_hist_layer(x, compute_dtype=jnp.float32))
    assert out_f32.shape == (2, K)
    assert jnp.allclose(out_f32, ref, atol=2e-5, rtol=2e-5)

    # f32 path with a 2-way pixel split (dual-TensorCore mode): same result.
    out_split = jax.block_until_ready(
        single_dim_hist_layer(x, compute_dtype=jnp.float32, row_splits=2))
    assert jnp.allclose(out_split, ref, atol=2e-5, rtol=2e-5)

    # Default path (bf16 tanh on v6e/v7x, f32 on v5e and older): soft-histogram
    # level agreement with the f32 reference.
    out = jax.block_until_ready(single_dim_hist_layer(x))
    assert out.shape == (2, K)
    assert jnp.allclose(out, ref, atol=2e-3, rtol=1e-1)

    print("KERNEL_OK")
</pallas_src>

<mosaic_0001>
module attributes {stable_mosaic.version = 11 : i64} {
  func.func @_hist_kernel(%arg0: i32, %arg1: i32, %arg2: i32, %arg3: memref<1x8x128xf32, #tpu.memory_space<vmem>>, %arg4: memref<1x1x256x1xf32, #tpu.memory_space<vmem>>, %arg5: memref<256x1xf32, #tpu.memory_space<vmem>>) attributes {dimension_semantics = [#tpu.dimension_semantics<parallel>, #tpu.dimension_semantics<parallel>, #tpu.dimension_semantics<arbitrary>], iteration_bounds = array<i64: 2, 1, 1>, scalar_prefetch = 0 : i64, scratch_operands = 1 : i64, tpu.core_type = #tpu.core_type<tc>, window_params = [{transform_indices = @transform_0, window_bounds = array<i64: 1, 8, 128>}, {transform_indices = @transform_1, window_bounds = array<i64: 1, 1, 256, 1>}]} {
    %c0_i32 = arith.constant 0 : i32
    %0 = arith.cmpi eq, %arg2, %c0_i32 : i32
    %1 = arith.extui %0 : i1 to i32
    %c0_i32_0 = arith.constant 0 : i32
    %2 = arith.cmpi ne, %1, %c0_i32_0 : i32
    scf.if %2 {
      %cst_56 = arith.constant 0.000000e+00 : f32
      %370 = vector.broadcast %cst_56 : f32 to vector<256x1xf32>
      %c0_57 = arith.constant 0 : index
      %c0_58 = arith.constant 0 : index
      %371 = vector.load %arg5[%c0_57, %c0_58] : memref<256x1xf32, #tpu.memory_space<vmem>>, vector<256x1xf32>
      tpu.vector_store %arg5[%c0_57, %c0_58], %370 {strides = array<i32>} : memref<256x1xf32, #tpu.memory_space<vmem>>, vector<256x1xf32>,
    } else {
    }
    %3 = tpu.iota {dimensions = array<i32: 0>} : vector<64x128xi32>
    %4 = arith.sitofp %3 : vector<64x128xi32> to vector<64x128xf32>
    %cst = arith.constant 0.000000e+00 : f32
    %5 = vector.broadcast %cst : f32 to vector<64x128xf32>
    %6 = arith.addf %4, %5 : vector<64x128xf32>
    %cst_1 = arith.constant 1.250000e+00 : f32
    %7 = vector.broadcast %cst_1 : f32 to vector<64x128xf32>
    %8 = arith.mulf %7, %6 : vector<64x128xf32>
    %cst_2 = arith.constant 0.000000e+00 : f32
    %9 = vector.broadcast %cst_2 : f32 to vector<64x128xf32>
    %cst_3 = arith.constant 1.250000e+00 : f32
    %c0_i32_4 = arith.constant 0 : i32
    %c8_i32 = arith.constant 8 : i32
    %10 = arith.muli %c0_i32_4, %c8_i32 : i32
    %11 = tpu.assume_multiple %10, 8 : i32
    %c0 = arith.constant 0 : index
    %12 = arith.index_cast %11 : i32 to index
    %c0_5 = arith.constant 0 : index
    %13 = vector.load %arg3[%c0, %12, %c0_5] : memref<1x8x128xf32, #tpu.memory_space<vmem>>, vector<1x8x128xf32>
    %14 = vector.shape_cast %13 : vector<1x8x128xf32> to vector<8x128xf32>
    %cst_6 = arith.constant 3.200000e+02 : f32
    %15 = vector.broadcast %cst_6 : f32 to vector<8x128xf32>
    %16 = arith.mulf %14, %15 : vector<8x128xf32>
    %17 = vector.extract_strided_slice %16 {offsets = [0, 0], sizes = [1, 128], strides = [1, 1]} : vector<8x128xf32> to vector<1x128xf32>
    %18 = vector.broadcast %17 : vector<1x128xf32> to vector<64x128xf32>
    %19 = arith.subf %18, %8 : vector<64x128xf32>
    %20 = vector.broadcast %cst_3 : f32 to vector<64x128xf32>
    %21 = arith.subf %19, %20 : vector<64x128xf32>
    %22 = math.tanh %19 : vector<64x128xf32>
    %23 = math.tanh %21 : vector<64x128xf32>
    %24 = arith.subf %22, %23 : vector<64x128xf32>
    %25 = arith.addf %9, %24 : vector<64x128xf32>
    %26 = vector.extract_strided_slice %16 {offsets = [1, 0], sizes = [1, 128], strides = [1, 1]} : vector<8x128xf32> to vector<1x128xf32>
    %27 = vector.broadcast %26 : vector<1x128xf32> to vector<64x128xf32>
    %28 = arith.subf %27, %8 : vector<64x128xf32>
    %29 = vector.broadcast %cst_3 : f32 to vector<64x128xf32>
    %30 = arith.subf %28, %29 : vector<64x128xf32>
    %31 = math.tanh %28 : vector<64x128xf32>
    %32 = math.tanh %30 : vector<64x128xf32>
    %33 = arith.subf %31, %32 : vector<64x128xf32>
    %34 = arith.addf %25, %33 : vector<64x128xf32>
    %35 = vector.extract_strided_slice %16 {offsets = [2, 0], sizes = [1, 128], strides = [1, 1]} : vector<8x128xf32> to vector<1x128xf32>
    %36 = vector.broadcast %35 : vector<1x128xf32> to vector<64x128xf32>
    %37 = arith.subf %36, %8 : vector<64x128xf32>
    %38 = vector.broadcast %cst_3 : f32 to vector<64x128xf32>
    %39 = arith.subf %37, %38 : vector<64x128xf32>
    %40 = math.tanh %37 : vector<64x128xf32>
    %41 = math.tanh %39 : vector<64x128xf32>
    %42 = arith.subf %40, %41 : vector<64x128xf32>
    %43 = arith.addf %34, %42 : vector<64x128xf32>
    %44 = vector.extract_strided_slice %16 {offsets = [3, 0], sizes = [1, 128], strides = [1, 1]} : vector<8x128xf32> to vector<1x128xf32>
    %45 = vector.broadcast %44 : vector<1x128xf32> to vector<64x128xf32>
    %46 = arith.subf %45, %8 : vector<64x128xf32>
    %47 = vector.broadcast %cst_3 : f32 to vector<64x128xf32>
    %48 = arith.subf %46, %47 : vector<64x128xf32>
    %49 = math.tanh %46 : vector<64x128xf32>
    %50 = math.tanh %48 : vector<64x128xf32>
    %51 = arith.subf %49, %50 : vector<64x128xf32>
    %52 = arith.addf %43, %51 : vector<64x128xf32>
    %53 = vector.extract_strided_slice %16 {offsets = [4, 0], sizes = [1, 128], strides = [1, 1]} : vector<8x128xf32> to vector<1x128xf32>
    %54 = vector.broadcast %53 : vector<1x128xf32> to vector<64x128xf32>
    %55 = arith.subf %54, %8 : vector<64x128xf32>
    %56 = vector.broadcast %cst_3 : f32 to vector<64x128xf32>
    %57 = arith.subf %55, %56 : vector<64x128xf32>
    %58 = math.tanh %55 : vector<64x128xf32>
    %59 = math.tanh %57 : vector<64x128xf32>
    %60 = arith.subf %58, %59 : vector<64x128xf32>
    %61 = arith.addf %52, %60 : vector<64x128xf32>
    %62 = vector.extract_strided_slice %16 {offsets = [5, 0], sizes = [1, 128], strides = [1, 1]} : vector<8x128xf32> to vector<1x128xf32>
    %63 = vector.broadcast %62 : vector<1x128xf32> to vector<64x128xf32>
    %64 = arith.subf %63, %8 : vector<64x128xf32>
    %65 = vector.broadcast %cst_3 : f32 to vector<64x128xf32>
    %66 = arith.subf %64, %65 : vector<64x128xf32>
    %67 = math.tanh %64 : vector<64x128xf32>
    %68 = math.tanh %66 : vector<64x128xf32>
    %69 = arith.subf %67, %68 : vector<64x128xf32>
    %70 = arith.addf %61, %69 : vector<64x128xf32>
    %71 = vector.extract_strided_slice %16 {offsets = [6, 0], sizes = [1, 128], strides = [1, 1]} : vector<8x128xf32> to vector<1x128xf32>
    %72 = vector.broadcast %71 : vector<1x128xf32> to vector<64x128xf32>
    %73 = arith.subf %72, %8 : vector<64x128xf32>
    %74 = vector.broadcast %cst_3 : f32 to vector<64x128xf32>
    %75 = arith.subf %73, %74 : vector<64x128xf32>
    %76 = math.tanh %73 : vector<64x128xf32>
    %77 = math.tanh %75 : vector<64x128xf32>
    %78 = arith.subf %76, %77 : vector<64x128xf32>
    %79 = arith.addf %70, %78 : vector<64x128xf32>
    %80 = vector.extract_strided_slice %16 {offsets = [7, 0], sizes = [1, 128], strides = [1, 1]} : vector<8x128xf32> to vector<1x128xf32>
    %81 = vector.broadcast %80 : vector<1x128xf32> to vector<64x128xf32>
    %82 = arith.subf %81, %8 : vector<64x128xf32>
    %83 = vector.broadcast %cst_3 : f32 to vector<64x128xf32>
    %84 = arith.subf %82, %83 : vector<64x128xf32>
    %85 = math.tanh %82 : vector<64x128xf32>
    %86 = math.tanh %84 : vector<64x128xf32>
    %87 = arith.subf %85, %86 : vector<64x128xf32>
    %88 = arith.addf %79, %87 : vector<64x128xf32>
    %c1_i32 = arith.constant 1 : i32
    %c0_7 = arith.constant 0 : index
    %c0_8 = arith.constant 0 : index
    %89 = vector.load %arg5[%c0_7, %c0_8] : memref<256x1xf32, #tpu.memory_space<vmem>>, vector<64x1xf32>
    %cst_9 = arith.constant dense<0.000000e+00> : vector<64xf32>
    %90 = vector.multi_reduction <add>, %88, %cst_9 [1] : vector<64x128xf32> to vector<64xf32>
    %91 = vector.shape_cast %90 : vector<64xf32> to vector<64x1xf32>
    %92 = arith.addf %89, %91 : vector<64x1xf32>
    %c0_10 = arith.constant 0 : index
    %c0_11 = arith.constant 0 : index
    %93 = vector.load %arg5[%c0_10, %c0_11] : memref<256x1xf32, #tpu.memory_space<vmem>>, vector<64x1xf32>
    tpu.vector_store %arg5[%c0_10, %c0_11], %92 {strides = array<i32>} : memref<256x1xf32, #tpu.memory_space<vmem>>, vector<64x1xf32>,
    %94 = tpu.iota {dimensions = array<i32: 0>} : vector<64x128xi32>
    %95 = arith.sitofp %94 : vector<64x128xi32> to vector<64x128xf32>
    %cst_12 = arith.constant 6.400000e+01 : f32
    %96 = vector.broadcast %cst_12 : f32 to vector<64x128xf32>
    %97 = arith.addf %95, %96 : vector<64x128xf32>
    %cst_13 = arith.constant 1.250000e+00 : f32
    %98 = vector.broadcast %cst_13 : f32 to vector<64x128xf32>
    %99 = arith.mulf %98, %97 : vector<64x128xf32>
    %cst_14 = arith.constant 0.000000e+00 : f32
    %100 = vector.broadcast %cst_14 : f32 to vector<64x128xf32>
    %cst_15 = arith.constant 1.250000e+00 : f32
    %c0_i32_16 = arith.constant 0 : i32
    %c8_i32_17 = arith.constant 8 : i32
    %101 = arith.muli %c0_i32_16, %c8_i32_17 : i32
    %102 = tpu.assume_multiple %101, 8 : i32
    %c0_18 = arith.constant 0 : index
    %103 = arith.index_cast %102 : i32 to index
    %c0_19 = arith.constant 0 : index
    %104 = vector.load %arg3[%c0_18, %103, %c0_19] : memref<1x8x128xf32, #tpu.memory_space<vmem>>, vector<1x8x128xf32>
    %105 = vector.shape_cast %104 : vector<1x8x128xf32> to vector<8x128xf32>
    %cst_20 = arith.constant 3.200000e+02 : f32
    %106 = vector.broadcast %cst_20 : f32 to vector<8x128xf32>
    %107 = arith.mulf %105, %106 : vector<8x128xf32>
    %108 = vector.extract_strided_slice %107 {offsets = [0, 0], sizes = [1, 128], strides = [1, 1]} : vector<8x128xf32> to vector<1x128xf32>
    %109 = vector.broadcast %108 : vector<1x128xf32> to vector<64x128xf32>
    %110 = arith.subf %109, %99 : vector<64x128xf32>
    %111 = vector.broadcast %cst_15 : f32 to vector<64x128xf32>
    %112 = arith.subf %110, %111 : vector<64x128xf32>
    %113 = math.tanh %110 : vector<64x128xf32>
    %114 = math.tanh %112 : vector<64x128xf32>
    %115 = arith.subf %113, %114 : vector<64x128xf32>
    %116 = arith.addf %100, %115 : vector<64x128xf32>
    %117 = vector.extract_strided_slice %107 {offsets = [1, 0], sizes = [1, 128], strides = [1, 1]} : vector<8x128xf32> to vector<1x128xf32>
    %118 = vector.broadcast %117 : vector<1x128xf32> to vector<64x128xf32>
    %119 = arith.subf %118, %99 : vector<64x128xf32>
    %120 = vector.broadcast %cst_15 : f32 to vector<64x128xf32>
    %121 = arith.subf %119, %120 : vector<64x128xf32>
    %122 = math.tanh %119 : vector<64x128xf32>
    %123 = math.tanh %121 : vector<64x128xf32>
    %124 = arith.subf %122, %123 : vector<64x128xf32>
    %125 = arith.addf %116, %124 : vector<64x128xf32>
    %126 = vector.extract_strided_slice %107 {offsets = [2, 0], sizes = [1, 128], strides = [1, 1]} : vector<8x128xf32> to vector<1x128xf32>
    %127 = vector.broadcast %126 : vector<1x128xf32> to vector<64x128xf32>
    %128 = arith.subf %127, %99 : vector<64x128xf32>
    %129 = vector.broadcast %cst_15 : f32 to vector<64x128xf32>
    %130 = arith.subf %128, %129 : vector<64x128xf32>
    %131 = math.tanh %128 : vector<64x128xf32>
    %132 = math.tanh %130 : vector<64x128xf32>
    %133 = arith.subf %131, %132 : vector<64x128xf32>
    %134 = arith.addf %125, %133 : vector<64x128xf32>
    %135 = vector.extract_strided_slice %107 {offsets = [3, 0], sizes = [1, 128], strides = [1, 1]} : vector<8x128xf32> to vector<1x128xf32>
    %136 = vector.broadcast %135 : vector<1x128xf32> to vector<64x128xf32>
    %137 = arith.subf %136, %99 : vector<64x128xf32>
    %138 = vector.broadcast %cst_15 : f32 to vector<64x128xf32>
    %139 = arith.subf %137, %138 : vector<64x128xf32>
    %140 = math.tanh %137 : vector<64x128xf32>
    %141 = math.tanh %139 : vector<64x128xf32>
    %142 = arith.subf %140, %141 : vector<64x128xf32>
    %143 = arith.addf %134, %142 : vector<64x128xf32>
    %144 = vector.extract_strided_slice %107 {offsets = [4, 0], sizes = [1, 128], strides = [1, 1]} : vector<8x128xf32> to vector<1x128xf32>
    %145 = vector.broadcast %144 : vector<1x128xf32> to vector<64x128xf32>
    %146 = arith.subf %145, %99 : vector<64x128xf32>
    %147 = vector.broadcast %cst_15 : f32 to vector<64x128xf32>
    %148 = arith.subf %146, %147 : vector<64x128xf32>
    %149 = math.tanh %146 : vector<64x128xf32>
    %150 = math.tanh %148 : vector<64x128xf32>
    %151 = arith.subf %149, %150 : vector<64x128xf32>
    %152 = arith.addf %143, %151 : vector<64x128xf32>
    %153 = vector.extract_strided_slice %107 {offsets = [5, 0], sizes = [1, 128], strides = [1, 1]} : vector<8x128xf32> to vector<1x128xf32>
    %154 = vector.broadcast %153 : vector<1x128xf32> to vector<64x128xf32>
    %155 = arith.subf %154, %99 : vector<64x128xf32>
    %156 = vector.broadcast %cst_15 : f32 to vector<64x128xf32>
    %157 = arith.subf %155, %156 : vector<64x128xf32>
    %158 = math.tanh %155 : vector<64x128xf32>
    %159 = math.tanh %157 : vector<64x128xf32>
    %160 = arith.subf %158, %159 : vector<64x128xf32>
    %161 = arith.addf %152, %160 : vector<64x128xf32>
    %162 = vector.extract_strided_slice %107 {offsets = [6, 0], sizes = [1, 128], strides = [1, 1]} : vector<8x128xf32> to vector<1x128xf32>
    %163 = vector.broadcast %162 : vector<1x128xf32> to vector<64x128xf32>
    %164 = arith.subf %163, %99 : vector<64x128xf32>
    %165 = vector.broadcast %cst_15 : f32 to vector<64x128xf32>
    %166 = arith.subf %164, %165 : vector<64x128xf32>
    %167 = math.tanh %164 : vector<64x128xf32>
    %168 = math.tanh %166 : vector<64x128xf32>
    %169 = arith.subf %167, %168 : vector<64x128xf32>
    %170 = arith.addf %161, %169 : vector<64x128xf32>
    %171 = vector.extract_strided_slice %107 {offsets = [7, 0], sizes = [1, 128], strides = [1, 1]} : vector<8x128xf32> to vector<1x128xf32>
    %172 = vector.broadcast %171 : vector<1x128xf32> to vector<64x128xf32>
    %173 = arith.subf %172, %99 : vector<64x128xf32>
    %174 = vector.broadcast %cst_15 : f32 to vector<64x128xf32>
    %175 = arith.subf %173, %174 : vector<64x128xf32>
    %176 = math.tanh %173 : vector<64x128xf32>
    %177 = math.tanh %175 : vector<64x128xf32>
    %178 = arith.subf %176, %177 : vector<64x128xf32>
    %179 = arith.addf %170, %178 : vector<64x128xf32>
    %c1_i32_21 = arith.constant 1 : i32
    %c64 = arith.constant 64 : index
    %c0_22 = arith.constant 0 : index
    %180 = vector.load %arg5[%c64, %c0_22] : memref<256x1xf32, #tpu.memory_space<vmem>>, vector<64x1xf32>
    %cst_23 = arith.constant dense<0.000000e+00> : vector<64xf32>
    %181 = vector.multi_reduction <add>, %179, %cst_23 [1] : vector<64x128xf32> to vector<64xf32>
    %182 = vector.shape_cast %181 : vector<64xf32> to vector<64x1xf32>
    %183 = arith.addf %180, %182 : vector<64x1xf32>
    %c64_24 = arith.constant 64 : index
    %c0_25 = arith.constant 0 : index
    %184 = vector.load %arg5[%c64_24, %c0_25] : memref<256x1xf32, #tpu.memory_space<vmem>>, vector<64x1xf32>
    tpu.vector_store %arg5[%c64_24, %c0_25], %183 {strides = array<i32>} : memref<256x1xf32, #tpu.memory_space<vmem>>, vector<64x1xf32>,
    %185 = tpu.iota {dimensions = array<i32: 0>} : vector<64x128xi32>
    %186 = arith.sitofp %185 : vector<64x128xi32> to vector<64x128xf32>
    %cst_26 = arith.constant 1.280000e+02 : f32
    %187 = vector.broadcast %cst_26 : f32 to vector<64x128xf32>
    %188 = arith.addf %186, %187 : vector<64x128xf32>
    %cst_27 = arith.constant 1.250000e+00 : f32
    %189 = vector.broadcast %cst_27 : f32 to vector<64x128xf32>
    %190 = arith.mulf %189, %188 : vector<64x128xf32>
    %cst_28 = arith.constant 0.000000e+00 : f32
    %191 = vector.broadcast %cst_28 : f32 to vector<64x128xf32>
    %cst_29 = arith.constant 1.250000e+00 : f32
    %c0_i32_30 = arith.constant 0 : i32
    %c8_i32_31 = arith.constant 8 : i32
    %192 = arith.muli %c0_i32_30, %c8_i32_31 : i32
    %193 = tpu.assume_multiple %192, 8 : i32
    %c0_32 = arith.constant 0 : index
    %194 = arith.index_cast %193 : i32 to index
    %c0_33 = arith.constant 0 : index
    %195 = vector.load %arg3[%c0_32, %194, %c0_33] : memref<1x8x128xf32, #tpu.memory_space<vmem>>, vector<1x8x128xf32>
    %196 = vector.shape_cast %195 : vector<1x8x128xf32> to vector<8x128xf32>
    %cst_34 = arith.constant 3.200000e+02 : f32
    %197 = vector.broadcast %cst_34 : f32 to vector<8x128xf32>
    %198 = arith.mulf %196, %197 : vector<8x128xf32>
    %199 = vector.extract_strided_slice %198 {offsets = [0, 0], sizes = [1, 128], strides = [1, 1]} : vector<8x128xf32> to vector<1x128xf32>
    %200 = vector.broadcast %199 : vector<1x128xf32> to vector<64x128xf32>
    %201 = arith.subf %200, %190 : vector<64x128xf32>
    %202 = vector.broadcast %cst_29 : f32 to vector<64x128xf32>
    %203 = arith.subf %201, %202 : vector<64x128xf32>
    %204 = math.tanh %201 : vector<64x128xf32>
    %205 = math.tanh %203 : vector<64x128xf32>
    %206 = arith.subf %204, %205 : vector<64x128xf32>
    %207 = arith.addf %191, %206 : vector<64x128xf32>
    %208 = vector.extract_strided_slice %198 {offsets = [1, 0], sizes = [1, 128], strides = [1, 1]} : vector<8x128xf32> to vector<1x128xf32>
    %209 = vector.broadcast %208 : vector<1x128xf32> to vector<64x128xf32>
    %210 = arith.subf %209, %190 : vector<64x128xf32>
    %211 = vector.broadcast %cst_29 : f32 to vector<64x128xf32>
    %212 = arith.subf %210, %211 : vector<64x128xf32>
    %213 = math.tanh %210 : vector<64x128xf32>
    %214 = math.tanh %212 : vector<64x128xf32>
    %215 = arith.subf %213, %214 : vector<64x128xf32>
    %216 = arith.addf %207, %215 : vector<64x128xf32>
    %217 = vector.extract_strided_slice %198 {offsets = [2, 0], sizes = [1, 128], strides = [1, 1]} : vector<8x128xf32> to vector<1x128xf32>
    %218 = vector.broadcast %217 : vector<1x128xf32> to vector<64x128xf32>
    %219 = arith.subf %218, %190 : vector<64x128xf32>
    %220 = vector.broadcast %cst_29 : f32 to vector<64x128xf32>
    %221 = arith.subf %219, %220 : vector<64x128xf32>
    %222 = math.tanh %219 : vector<64x128xf32>
    %223 = math.tanh %221 : vector<64x128xf32>
    %224 = arith.subf %222, %223 : vector<64x128xf32>
    %225 = arith.addf %216, %224 : vector<64x128xf32>
    %226 = vector.extract_strided_slice %198 {offsets = [3, 0], sizes = [1, 128], strides = [1, 1]} : vector<8x128xf32> to vector<1x128xf32>
    %227 = vector.broadcast %226 : vector<1x128xf32> to vector<64x128xf32>
    %228 = arith.subf %227, %190 : vector<64x128xf32>
    %229 = vector.broadcast %cst_29 : f32 to vector<64x128xf32>
    %230 = arith.subf %228, %229 : vector<64x128xf32>
    %231 = math.tanh %228 : vector<64x128xf32>
    %232 = math.tanh %230 : vector<64x128xf32>
    %233 = arith.subf %231, %232 : vector<64x128xf32>
    %234 = arith.addf %225, %233 : vector<64x128xf32>
    %235 = vector.extract_strided_slice %198 {offsets = [4, 0], sizes = [1, 128], strides = [1, 1]} : vector<8x128xf32> to vector<1x128xf32>
    %236 = vector.broadcast %235 : vector<1x128xf32> to vector<64x128xf32>
    %237 = arith.subf %236, %190 : vector<64x128xf32>
    %238 = vector.broadcast %cst_29 : f32 to vector<64x128xf32>
    %239 = arith.subf %237, %238 : vector<64x128xf32>
    %240 = math.tanh %237 : vector<64x128xf32>
    %241 = math.tanh %239 : vector<64x128xf32>
    %242 = arith.subf %240, %241 : vector<64x128xf32>
    %243 = arith.addf %234, %242 : vector<64x128xf32>
    %244 = vector.extract_strided_slice %198 {offsets = [5, 0], sizes = [1, 128], strides = [1, 1]} : vector<8x128xf32> to vector<1x128xf32>
    %245 = vector.broadcast %244 : vector<1x128xf32> to vector<64x128xf32>
    %246 = arith.subf %245, %190 : vector<64x128xf32>
    %247 = vector.broadcast %cst_29 : f32 to vector<64x128xf32>
    %248 = arith.subf %246, %247 : vector<64x128xf32>
    %249 = math.tanh %246 : vector<64x128xf32>
    %250 = math.tanh %248 : vector<64x128xf32>
    %251 = arith.subf %249, %250 : vector<64x128xf32>
    %252 = arith.addf %243, %251 : vector<64x128xf32>
    %253 = vector.extract_strided_slice %198 {offsets = [6, 0], sizes = [1, 128], strides = [1, 1]} : vector<8x128xf32> to vector<1x128xf32>
    %254 = vector.broadcast %253 : vector<1x128xf32> to vector<64x128xf32>
    %255 = arith.subf %254, %190 : vector<64x128xf32>
    %256 = vector.broadcast %cst_29 : f32 to vector<64x128xf32>
    %257 = arith.subf %255, %256 : vector<64x128xf32>
    %258 = math.tanh %255 : vector<64x128xf32>
    %259 = math.tanh %257 : vector<64x128xf32>
    %260 = arith.subf %258, %259 : vector<64x128xf32>
    %261 = arith.addf %252, %260 : vector<64x128xf32>
    %262 = vector.extract_strided_slice %198 {offsets = [7, 0], sizes = [1, 128], strides = [1, 1]} : vector<8x128xf32> to vector<1x128xf32>
    %263 = vector.broadcast %262 : vector<1x128xf32> to vector<64x128xf32>
    %264 = arith.subf %263, %190 : vector<64x128xf32>
    %265 = vector.broadcast %cst_29 : f32 to vector<64x128xf32>
    %266 = arith.subf %264, %265 : vector<64x128xf32>
    %267 = math.tanh %264 : vector<64x128xf32>
    %268 = math.tanh %266 : vector<64x128xf32>
    %269 = arith.subf %267, %268 : vector<64x128xf32>
    %270 = arith.addf %261, %269 : vector<64x128xf32>
    %c1_i32_35 = arith.constant 1 : i32
    %c128 = arith.constant 128 : index
    %c0_36 = arith.constant 0 : index
    %271 = vector.load %arg5[%c128, %c0_36] : memref<256x1xf32, #tpu.memory_space<vmem>>, vector<64x1xf32>
    %cst_37 = arith.constant dense<0.000000e+00> : vector<64xf32>
    %272 = vector.multi_reduction <add>, %270, %cst_37 [1] : vector<64x128xf32> to vector<64xf32>
    %273 = vector.shape_cast %272 : vector<64xf32> to vector<64x1xf32>
    %274 = arith.addf %271, %273 : vector<64x1xf32>
    %c128_38 = arith.constant 128 : index
    %c0_39 = arith.constant 0 : index
    %275 = vector.load %arg5[%c128_38, %c0_39] : memref<256x1xf32, #tpu.memory_space<vmem>>, vector<64x1xf32>
    tpu.vector_store %arg5[%c128_38, %c0_39], %274 {strides = array<i32>} : memref<256x1xf32, #tpu.memory_space<vmem>>, vector<64x1xf32>,
    %276 = tpu.iota {dimensions = array<i32: 0>} : vector<64x128xi32>
    %277 = arith.sitofp %276 : vector<64x128xi32> to vector<64x128xf32>
    %cst_40 = arith.constant 1.920000e+02 : f32
    %278 = vector.broadcast %cst_40 : f32 to vector<64x128xf32>
    %279 = arith.addf %277, %278 : vector<64x128xf32>
    %cst_41 = arith.constant 1.250000e+00 : f32
    %280 = vector.broadcast %cst_41 : f32 to vector<64x128xf32>
    %281 = arith.mulf %280, %279 : vector<64x128xf32>
    %cst_42 = arith.constant 0.000000e+00 : f32
    %282 = vector.broadcast %cst_42 : f32 to vector<64x128xf32>
    %cst_43 = arith.constant 1.250000e+00 : f32
    %c0_i32_44 = arith.constant 0 : i32
    %c8_i32_45 = arith.constant 8 : i32
    %283 = arith.muli %c0_i32_44, %c8_i32_45 : i32
    %284 = tpu.assume_multiple %283, 8 : i32
    %c0_46 = arith.constant 0 : index
    %285 = arith.index_cast %284 : i32 to index
    %c0_47 = arith.constant 0 : index
    %286 = vector.load %arg3[%c0_46, %285, %c0_47] : memref<1x8x128xf32, #tpu.memory_space<vmem>>, vector<1x8x128xf32>
    %287 = vector.shape_cast %286 : vector<1x8x128xf32> to vector<8x128xf32>
    %cst_48 = arith.constant 3.200000e+02 : f32
    %288 = vector.broadcast %cst_48 : f32 to vector<8x128xf32>
    %289 = arith.mulf %287, %288 : vector<8x128xf32>
    %290 = vector.extract_strided_slice %289 {offsets = [0, 0], sizes = [1, 128], strides = [1, 1]} : vector<8x128xf32> to vector<1x128xf32>
    %291 = vector.broadcast %290 : vector<1x128xf32> to vector<64x128xf32>
    %292 = arith.subf %291, %281 : vector<64x128xf32>
    %293 = vector.broadcast %cst_43 : f32 to vector<64x128xf32>
    %294 = arith.subf %292, %293 : vector<64x128xf32>
    %295 = math.tanh %292 : vector<64x128xf32>
    %296 = math.tanh %294 : vector<64x128xf32>
    %297 = arith.subf %295, %296 : vector<64x128xf32>
    %298 = arith.addf %282, %297 : vector<64x128xf32>
    %299 = vector.extract_strided_slice %289 {offsets = [1, 0], sizes = [1, 128], strides = [1, 1]} : vector<8x128xf32> to vector<1x128xf32>
    %300 = vector.broadcast %299 : vector<1x128xf32> to vector<64x128xf32>
    %301 = arith.subf %300, %281 : vector<64x128xf32>
    %302 = vector.broadcast %cst_43 : f32 to vector<64x128xf32>
    %303 = arith.subf %301, %302 : vector<64x128xf32>
    %304 = math.tanh %301 : vector<64x128xf32>
    %305 = math.tanh %303 : vector<64x128xf32>
    %306 = arith.subf %304, %305 : vector<64x128xf32>
    %307 = arith.addf %298, %306 : vector<64x128xf32>
    %308 = vector.extract_strided_slice %289 {offsets = [2, 0], sizes = [1, 128], strides = [1, 1]} : vector<8x128xf32> to vector<1x128xf32>
    %309 = vector.broadcast %308 : vector<1x128xf32> to vector<64x128xf32>
    %310 = arith.subf %309, %281 : vector<64x128xf32>
    %311 = vector.broadcast %cst_43 : f32 to vector<64x128xf32>
    %312 = arith.subf %310, %311 : vector<64x128xf32>
    %313 = math.tanh %310 : vector<64x128xf32>
    %314 = math.tanh %312 : vector<64x128xf32>
    %315 = arith.subf %313, %314 : vector<64x128xf32>
    %316 = arith.addf %307, %315 : vector<64x128xf32>
    %317 = vector.extract_strided_slice %289 {offsets = [3, 0], sizes = [1, 128], strides = [1, 1]} : vector<8x128xf32> to vector<1x128xf32>
    %318 = vector.broadcast %317 : vector<1x128xf32> to vector<64x128xf32>
    %319 = arith.subf %318, %281 : vector<64x128xf32>
    %320 = vector.broadcast %cst_43 : f32 to vector<64x128xf32>
    %321 = arith.subf %319, %320 : vector<64x128xf32>
    %322 = math.tanh %319 : vector<64x128xf32>
    %323 = math.tanh %321 : vector<64x128xf32>
    %324 = arith.subf %322, %323 : vector<64x128xf32>
    %325 = arith.addf %316, %324 : vector<64x128xf32>
    %326 = vector.extract_strided_slice %289 {offsets = [4, 0], sizes = [1, 128], strides = [1, 1]} : vector<8x128xf32> to vector<1x128xf32>
    %327 = vector.broadcast %326 : vector<1x128xf32> to vector<64x128xf32>
    %328 = arith.subf %327, %281 : vector<64x128xf32>
    %329 = vector.broadcast %cst_43 : f32 to vector<64x128xf32>
    %330 = arith.subf %328, %329 : vector<64x128xf32>
    %331 = math.tanh %328 : vector<64x128xf32>
    %332 = math.tanh %330 : vector<64x128xf32>
    %333 = arith.subf %331, %332 : vector<64x128xf32>
    %334 = arith.addf %325, %333 : vector<64x128xf32>
    %335 = vector.extract_strided_slice %289 {offsets = [5, 0], sizes = [1, 128], strides = [1, 1]} : vector<8x128xf32> to vector<1x128xf32>
    %336 = vector.broadcast %335 : vector<1x128xf32> to vector<64x128xf32>
    %337 = arith.subf %336, %281 : vector<64x128xf32>
    %338 = vector.broadcast %cst_43 : f32 to vector<64x128xf32>
    %339 = arith.subf %337, %338 : vector<64x128xf32>
    %340 = math.tanh %337 : vector<64x128xf32>
    %341 = math.tanh %339 : vector<64x128xf32>
    %342 = arith.subf %340, %341 : vector<64x128xf32>
    %343 = arith.addf %334, %342 : vector<64x128xf32>
    %344 = vector.extract_strided_slice %289 {offsets = [6, 0], sizes = [1, 128], strides = [1, 1]} : vector<8x128xf32> to vector<1x128xf32>
    %345 = vector.broadcast %344 : vector<1x128xf32> to vector<64x128xf32>
    %346 = arith.subf %345, %281 : vector<64x128xf32>
    %347 = vector.broadcast %cst_43 : f32 to vector<64x128xf32>
    %348 = arith.subf %346, %347 : vector<64x128xf32>
    %349 = math.tanh %346 : vector<64x128xf32>
    %350 = math.tanh %348 : vector<64x128xf32>
    %351 = arith.subf %349, %350 : vector<64x128xf32>
    %352 = arith.addf %343, %351 : vector<64x128xf32>
    %353 = vector.extract_strided_slice %289 {offsets = [7, 0], sizes = [1, 128], strides = [1, 1]} : vector<8x128xf32> to vector<1x128xf32>
    %354 = vector.broadcast %353 : vector<1x128xf32> to vector<64x128xf32>
    %355 = arith.subf %354, %281 : vector<64x128xf32>
    %356 = vector.broadcast %cst_43 : f32 to vector<64x128xf32>
    %357 = arith.subf %355, %356 : vector<64x128xf32>
    %358 = math.tanh %355 : vector<64x128xf32>
    %359 = math.tanh %357 : vector<64x128xf32>
    %360 = arith.subf %358, %359 : vector<64x128xf32>
    %361 = arith.addf %352, %360 : vector<64x128xf32>
    %c1_i32_49 = arith.constant 1 : i32
    %c192 = arith.constant 192 : index
    %c0_50 = arith.constant 0 : index
    %362 = vector.load %arg5[%c192, %c0_50] : memref<256x1xf32, #tpu.memory_space<vmem>>, vector<64x1xf32>
    %cst_51 = arith.constant dense<0.000000e+00> : vector<64xf32>
    %363 = vector.multi_reduction <add>, %361, %cst_51 [1] : vector<64x128xf32> to vector<64xf32>
    %364 = vector.shape_cast %363 : vector<64xf32> to vector<64x1xf32>
    %365 = arith.addf %362, %364 : vector<64x1xf32>
    %c192_52 = arith.constant 192 : index
    %c0_53 = arith.constant 0 : index
    %366 = vector.load %arg5[%c192_52, %c0_53] : memref<256x1xf32, #tpu.memory_space<vmem>>, vector<64x1xf32>
    tpu.vector_store %arg5[%c192_52, %c0_53], %365 {strides = array<i32>} : memref<256x1xf32, #tpu.memory_space<vmem>>, vector<64x1xf32>,
    %c0_i32_54 = arith.constant 0 : i32
    %367 = arith.cmpi eq, %arg2, %c0_i32_54 : i32
    %368 = arith.extui %367 : i1 to i32
    %c0_i32_55 = arith.constant 0 : i32
    %369 = arith.cmpi ne, %368, %c0_i32_55 : i32
    scf.if %369 {
      %c0_56 = arith.constant 0 : index
      %c0_57 = arith.constant 0 : index
      %370 = vector.load %arg5[%c0_56, %c0_57] : memref<256x1xf32, #tpu.memory_space<vmem>>, vector<256x1xf32>
      %cst_58 = arith.constant 0.001953125 : f32
      %371 = vector.broadcast %cst_58 : f32 to vector<256x1xf32>
      %372 = arith.mulf %370, %371 : vector<256x1xf32>
      %373 = vector.shape_cast %372 : vector<256x1xf32> to vector<1x1x256x1xf32>
      %c0_59 = arith.constant 0 : index
      %c0_60 = arith.constant 0 : index
      %c0_61 = arith.constant 0 : index
      %c0_62 = arith.constant 0 : index
      %374 = vector.load %arg4[%c0_59, %c0_60, %c0_61, %c0_62] : memref<1x1x256x1xf32, #tpu.memory_space<vmem>>, vector<1x1x256x1xf32>
      tpu.vector_store %arg4[%c0_59, %c0_60, %c0_61, %c0_62], %373 {strides = array<i32>} : memref<1x1x256x1xf32, #tpu.memory_space<vmem>>, vector<1x1x256x1xf32>,
    } else {
    }
    return
  }
  func.func @transform_0(%arg0: i32, %arg1: i32, %arg2: i32) -> (i32, i32, i32) {
    %c1_i32 = arith.constant 1 : i32
    %0 = arith.muli %arg1, %c1_i32 : i32
    %1 = arith.addi %0, %arg2 : i32
    %c0_i32 = arith.constant 0 : i32
    %c0_i32_0 = arith.constant 0 : i32
    return %arg0, %1, %c0_i32 : i32, i32, i32
  }
  func.func @transform_1(%arg0: i32, %arg1: i32, %arg2: i32) -> (i32, i32, i32, i32) {
    %c0_i32 = arith.constant 0 : i32
    %c0_i32_0 = arith.constant 0 : i32
    %c0_i32_1 = arith.constant 0 : i32
    return %arg0, %arg1, %c0_i32, %c0_i32_0 : i32, i32, i32, i32
  }
}

</mosaic_0001>

<bundles_post_ra>
// kernel: tpu_custom_call.1
= control target key start
LH: loop header
LB: loop body
LE: loop exit
PB: predicated region body
PF: predicated region fallthrough
CT: control target
= control target key end

     0   :  { %6 = vsyncpa [#allocation4], 0  ;;  %s4608_s0 = inlined_call_operand.hbm [shape: f32[2,8,128], index: 0, kind: input, shape index: {}]   ;;  %s4609_s1 = inlined_call_operand.vmem [shape: f32[2,1,256,1], index: 1, kind: output, shape index: {}]  }
   0x1   :  { %8 = vsyncpa [#allocation4 + $0x1], 0  ;;  %s3668_s6 = smov 0   ;;  %s3670_s7 = smov 0  }
   0x2   :  { %s3672_s8 = smov 0   ;;  %s3674_s9 = smov 0  }
   0x3   :  { %s3676_s10 = smov 0   ;;  %s3678_s11 = smov 0  }
   0x4 LB: > { %s2226_s12 = sadd.s32 4294967295, %s3655_s11   ;;  %s33_s13 = sadd.s32 1, %s3651_s10  ;;  %s3655_s11 = sphi %s3678_s11, %s14_s11   ;;  %s3651_s10 = sphi %s3676_s10, %s4616_s10   ;;  %s3647_s9 = sphi %s3674_s9, %s4615_s9   ;;  %s3643_s8 = sphi %s3672_s8, %s4614_s8   ;;  %s3639_s7 = sphi %s3670_s7, %s4613_s7   ;;  %s3635_s6 = sphi %s3668_s6, %s4612_s6  }
   0x5   : > { %p35_p0 = scmp.ge.s32.totalorder %s33_s13, 2  ;;  %s44_s14 = sadd.s32 1, %s3643_s8 }
   0x6   : > { %p51_p1 = scmp.ne.s32.totalorder %s3643_s8, %s3639_s7  ;;  %p52_p2 = scmp.eq.s32.totalorder %s3655_s11, 0 }
   0x7   : > { %s4618_s13 = smov (%p35_p0, %s33_s13), 0  ;;  %p57_p4 = scmp.ne.s32.totalorder %s3639_s7, %s3635_s6 }
   0x8   : > { %p3704_p3 = por %p52_p2, %p51_p1  ;;  %s39_s16 = ssub.s32 %s3651_s10, %s4618_s13 }
   0x9   : > { %p58_p5 = scmp.eq.s32.totalorder %s2226_s12, 0  ;;  %p42_p6 = scmp.eq.s32.totalorder %s39_s16, 0 }
   0xa   : > { %p2501_p8 = scmp.lt.s32.totalorder %s3655_s11, 2  ;;  %s109_s19 = sand.u32 1, %s3643_s8  }
   0xb   : > { %p3711_p7 = por %p58_p5, %p57_p4  ;;  %s2231_s20 = sshll.u32 %s3651_s10, 3 }
   0xc   : > { %s3717_s18 = scalar_select %p42_p6, %s3643_s8, %s44_s14  }
   0xd   : > { %s2230_s21 = sshll.u32 %s109_s19, 3  ;;  %s119_s24 = scalar_lea.hbm %s4608_s0, %s2231_s20 }
   0xe   : > { %s121_s25 = sshll.u32 %s119_s24, 4  ;;  %s113_s26 = scalar_lea.vmem [#allocation3], %s2230_s21  ;;  %s122_s25 = int_to_ptr.hbm [resolvable:$true] %s121_s25 }
   0xf   : > { %s123_s27 = sshll.u32 %s113_s26, 4  ;;  %p2498_p9 = pnand %p2501_p8, %p3704_p3  ;;  %s124_s27 = int_to_ptr.vmem [resolvable:$true] %s123_s27 }
  0x10   : > { %p2232_p10 = scmp.ge.s32.totalorder %s3655_s11, 1  ;;  %p128_p11 = scmp.lt.s32.totalorder %s3655_s11, 3 }
  0x11   : > { %s110_s28 = scalar_lea.sflag [#allocation4], %s109_s19 }
  0x12   : > { %2500 = dma.hbm_to_vmem [thread:$0]  (!%p2498_p9), %s122_s25, 128, %s124_s27, %s110_s28  }
  0x13   : > { %p129_p12 = pnand %p2232_p10, %p128_p11 }
  0x14   : > { %s134_s29 = sand.u32 (!%p129_p12), 1, %s3639_s7  }
  0x15   : > { %132 = sbr.rel (%p129_p12) target bundleno = 690 (0x2b2), region = 24  ;;  %s3729_s30 = sshll.u32 (!%p129_p12), %s134_s29, 3 }
  0x16   : > { %s135_s2 = scalar_lea.sflag (!%p129_p12), [#allocation4], %s134_s29  ;;  %s138_s3 = scalar_lea.vmem (!%p129_p12), [#allocation3], %s3729_s30 }
  0x1a   : > { %3630 = dma.done.wait (%p3711_p7), %s135_s2, 128  }
  0x1b   : > { %3632 = vsyncadd (%p3711_p7), %s135_s2, 4294967168  ;;  %v209_v0 = vlaneseq  ;;  %v242_v4 = vld [vmem:[%s138_s3] sm:$0xff]  ;;  %vm176_vm0 = vcmask 7168   ;;  %p163_p13 = scmp.lt.s32.totalorder %s3647_s9, 1 }
  0x1c   : > { %v243_v6 = vmul.f32 320.0, %v242_v4 }
  0x1d   : > { %v3736_v1 = vshrl.u32 %v209_v0, 7  ;;  %s4620_s9 = smov (!%p163_p13, %s3647_s9), 1 }
  0x1e   : > { %v3744_v7 = vperm.slane %v243_v6, 0  ;;  %v3746_v8 = vperm.slane %v243_v6, 1  ;;  %v3748_v9 = vperm.slane %v243_v6, 2  ;;  %v3750_v10 = vperm.slane %v243_v6, 3  ;;  %s2494_s4 = sshll.u32 %s4620_s9, 8 }
  0x1f   : > { %v212_v2 = vadd.s32 16, %v3736_v1  ;;  %v3752_v11 = vperm.slane %v243_v6, 4  ;;  %v3758_v16 = vperm.slane %v243_v6, 5  ;;  %v3761_v19 = vcvt.s32.f32 %v3736_v1  ;;  %s4457_s9 = scalar_lea.vmem %s4609_s1, %s2494_s4 }
  0x20   : > { %v3764_v22 = vperm.slane %v243_v6, 6  ;;  %v3767_v25 = vperm.slane %v243_v6, 7  ;;  %v214_v49 = vadd.s32 32, %v3736_v1 }
  0x21   : > { %v3739_v3 = vcvt.s32.f32 %v212_v2  ;;  %v3771_v28 = vmul.f32 1.25, %v3761_v19 }
  0x22   : > { %v3785_v62 = vcvt.s32.f32 %v214_v49 }
  0x23   : > { %v236_v5 = vmul.f32 1.25, %v3739_v3  ;;  %v245_v37 = vsub.f32 %v3744_v7, %v3771_v28  ;;  %v294_v42 = vsub.f32 %v3746_v8, %v3771_v28  ;;  %v343_v48 = vsub.f32 %v3748_v9, %v3771_v28 }
  0x24   : > { %v392_v55 = vsub.f32 %v3750_v10, %v3771_v28  ;;  %v441_v61 = vsub.f32 %v3752_v11, %v3771_v28  ;;  %v490_v6 = vsub.f32 %v3758_v16, %v3771_v28 }
  0x25   : > { %v247_v12 = vsub.f32 %v3744_v7, %v236_v5  ;;  %v296_v13 = vsub.f32 %v3746_v8, %v236_v5  ;;  %v345_v14 = vsub.f32 %v3748_v9, %v236_v5  ;;  %v394_v15 = vsub.f32 %v3750_v10, %v236_v5 }
  0x26   : > { %v443_v21 = vsub.f32 %v3752_v11, %v236_v5  ;;  %v492_v24 = vsub.f32 %v3758_v16, %v236_v5  ;;  %v541_v27 = vsub.f32 %v3764_v22, %v236_v5  ;;  %v590_v32 = vsub.f32 %v3767_v25, %v236_v5 }
  0x27   : > { %v2238_v17 = vadd.f32 -1.25, %v247_v12  ;;  %2551 = vtanh.f32 %v247_v12  ;;  %v2246_v18 = vadd.f32 -1.25, %v296_v13  ;;  %v2254_v20 = vadd.f32 -1.25, %v345_v14 }
  0x28   : > { %2553 = vtanh.f32 %v296_v13  ;;  %v2262_v23 = vadd.f32 -1.25, %v394_v15  ;;  %v2270_v26 = vadd.f32 -1.25, %v443_v21  ;;  %v2278_v31 = vadd.f32 -1.25, %v492_v24 }
  0x29   : > { %2555 = vtanh.f32 %v2238_v17  ;;  %v2286_v36 = vadd.f32 -1.25, %v541_v27  ;;  %v2294_v41 = vadd.f32 -1.25, %v590_v32  ;;  %v2236_v47 = vadd.f32 -1.25, %v245_v37 }
  0x2a   : > { %2557 = vtanh.f32 %v2246_v18  ;;  %v2244_v54 = vadd.f32 -1.25, %v294_v42  ;;  %v2252_v60 = vadd.f32 -1.25, %v343_v48  ;;  %v2260_v5 = vadd.f32 -1.25, %v392_v55 }
  0x2b   : > { %2559 = vtanh.f32 %v345_v14  ;;  %v2268_v17 = vadd.f32 -1.25, %v441_v61  ;;  %v539_v18 = vsub.f32 %v3764_v22, %v3771_v28 }
  0x2c   : > { %2561 = vtanh.f32 %v2254_v20  ;;  %v3792_v20 = vmul.f32 1.25, %v3785_v62 }
  0x2d   : > { %v2552_v29 = vpop.eup %2551  ;;  %2563 = vtanh.f32 %v394_v15 }
  0x2e   : > { %v2554_v30 = vpop.eup %2553  ;;  %2565 = vtanh.f32 %v2262_v23 }
  0x2f   : > { %v2556_v33 = vpop.eup %2555  ;;  %2567 = vtanh.f32 %v443_v21 }
  0x30   : > { %v2558_v34 = vpop.eup %2557  ;;  %v279_v35 = vsub.f32 %v2552_v29, %v2556_v33  ;;  %2569 = vtanh.f32 %v2270_v26  ;;  %v588_v29 = vsub.f32 %v3767_v25, %v3771_v28  ;;  %v298_v28 = vsub.f32 %v3746_v8, %v3792_v20 }
  0x31   : > { %v2560_v38 = vpop.eup %2559  ;;  %v328_v39 = vsub.f32 %v2554_v30, %v2558_v34  ;;  %2571 = vtanh.f32 %v492_v24  ;;  %v2284_v34 = vadd.f32 -1.25, %v539_v18 }
  0x32   : > { %v2562_v40 = vpop.eup %2561  ;;  %2573 = vtanh.f32 %v2278_v31 }
  0x33   : > { %v2564_v43 = vpop.eup %2563  ;;  %v336_v44 = vadd.f32 %v328_v39, %v279_v35  ;;  %v377_v45 = vsub.f32 %v2560_v38, %v2562_v40  ;;  %2575 = vtanh.f32 %v541_v27  ;;  %v2276_v27 = vadd.f32 -1.25, %v490_v6 }
  0x34   : > { %v2566_v46 = vpop.eup %2565  ;;  %2577 = vtanh.f32 %v2286_v36  ;;  %v249_v35 = vsub.f32 %v3744_v7, %v3792_v20  ;;  %v2292_v39 = vadd.f32 -1.25, %v588_v29 }
  0x35   : > { %v2568_v50 = vpop.eup %2567  ;;  %v385_v51 = vadd.f32 %v377_v45, %v336_v44  ;;  %v426_v52 = vsub.f32 %v2564_v43, %v2566_v46  ;;  %2579 = vtanh.f32 %v590_v32  ;;  %v347_v45 = vsub.f32 %v3748_v9, %v3792_v20 }
  0x36   : > { %v2570_v53 = vpop.eup %2569  ;;  %2581 = vtanh.f32 %v2294_v41  ;;  %v2240_v44 = vadd.f32 -1.25, %v249_v35  ;;  %v213_v46 = vadd.s32 24, %v3736_v1 }
  0x37   : > { %v2572_v56 = vpop.eup %2571  ;;  %v434_v57 = vadd.f32 %v426_v52, %v385_v51  ;;  %v475_v58 = vsub.f32 %v2568_v50, %v2570_v53  ;;  %2583 = vtanh.f32 %v245_v37  ;;  %v2248_v51 = vadd.f32 -1.25, %v298_v28 }
  0x38   : > { %v2574_v59 = vpop.eup %2573  ;;  %2585 = vtanh.f32 %v2236_v47  ;;  %v396_v52 = vsub.f32 %v3750_v10, %v3792_v20 }
  0x39   : > { %v2576_v63 = vpop.eup %2575  ;;  %v483_v0 = vadd.f32 %v475_v58, %v434_v57  ;;  %v524_v2 = vsub.f32 %v2572_v56, %v2574_v59  ;;  %2587 = vtanh.f32 %v294_v42  ;;  %v2256_v57 = vadd.f32 -1.25, %v347_v45 }
  0x3a   : > { %v2578_v4 = vpop.eup %2577  ;;  %2589 = vtanh.f32 %v2244_v54  ;;  %v445_v58 = vsub.f32 %v3752_v11, %v3792_v20  ;;  %v3807_v59 = vcvt.s32.f32 %v213_v46 }
  0x3b   : > { %v2580_v12 = vpop.eup %2579  ;;  %v532_v13 = vadd.f32 %v524_v2, %v483_v0  ;;  %v573_v14 = vsub.f32 %v2576_v63, %v2578_v4  ;;  %2591 = vtanh.f32 %v343_v48  ;;  %v2264_v2 = vadd.f32 -1.25, %v396_v52 }
  0x3c   : > { %v2582_v15 = vpop.eup %2581  ;;  %2593 = vtanh.f32 %v2252_v60  ;;  %v494_v4 = vsub.f32 %v3758_v16, %v3792_v20 }
  0x3d   : > { %v2584_v21 = vpop.eup %2583  ;;  %v581_v23 = vadd.f32 %v573_v14, %v532_v13  ;;  %v622_v24 = vsub.f32 %v2580_v12, %v2582_v15  ;;  %2595 = vtanh.f32 %v392_v55  ;;  %v2272_v14 = vadd.f32 -1.25, %v445_v58 }
  0x3e   : > { %v2586_v26 = vpop.eup %2585  ;;  %2597 = vtanh.f32 %v2260_v5  ;;  %v543_v15 = vsub.f32 %v3764_v22, %v3792_v20 }
  0x3f   : > { %v2588_v30 = vpop.eup %2587  ;;  %v630_v31 = vadd.f32 %v622_v24, %v581_v23  ;;  %v277_v32 = vsub.f32 %v2584_v21, %v2586_v26  ;;  %2599 = vtanh.f32 %v441_v61  ;;  %v2280_v26 = vadd.f32 -1.25, %v494_v4 }
  0x40   : > { %v2590_v33 = vpop.eup %2589  ;;  %2601 = vtanh.f32 %v2268_v17  ;;  %v3814_v17 = vmul.f32 1.25, %v3807_v59 }
  0x41   : > { %v2592_v36 = vpop.eup %2591  ;;  %648 = vadd.xlane.f32.xlu1 %v630_v31  ;;  %v326_v37 = vsub.f32 %v2588_v30, %v2590_v33  ;;  %2603 = vtanh.f32 %v490_v6  ;;  %v2288_v33 = vadd.f32 -1.25, %v543_v15 }
  0x42   : > { %v2594_v38 = vpop.eup %2593  ;;  %2605 = vtanh.f32 %v2276_v27  ;;  %v592_v27 = vsub.f32 %v3767_v25, %v3792_v20  ;;  %v297_v20 = vsub.f32 %v3746_v8, %v3814_v17 }
  0x43   : > { %v2596_v40 = vpop.eup %2595  ;;  %v334_v41 = vadd.f32 %v326_v37, %v277_v32  ;;  %v375_v42 = vsub.f32 %v2592_v36, %v2594_v38  ;;  %2607 = vtanh.f32 %v539_v18 }
  0x44   : > { %v2598_v43 = vpop.eup %2597  ;;  %2609 = vtanh.f32 %v2284_v34  ;;  %v248_v34 = vsub.f32 %v3744_v7, %v3814_v17  ;;  %v2296_v38 = vadd.f32 -1.25, %v592_v27 }
  0x45   : > { %v2600_v47 = vpop.eup %2599  ;;  %v383_v48 = vadd.f32 %v375_v42, %v334_v41  ;;  %v424_v49 = vsub.f32 %v2596_v40, %v2598_v43  ;;  %2611 = vtanh.f32 %v588_v29  ;;  %v346_v43 = vsub.f32 %v3748_v9, %v3814_v17 }
  0x46   : > { %v2602_v50 = vpop.eup %2601  ;;  %2613 = vtanh.f32 %v2292_v39  ;;  %v2239_v42 = vadd.f32 -1.25, %v248_v34 }
  0x47   : > { %v2604_v53 = vpop.eup %2603  ;;  %v432_v54 = vadd.f32 %v424_v49, %v383_v48  ;;  %v473_v55 = vsub.f32 %v2600_v47, %v2602_v50  ;;  %2615 = vtanh.f32 %v249_v35  ;;  %v2247_v49 = vadd.f32 -1.25, %v297_v20 }
  0x48   : > { %v2606_v56 = vpop.eup %2605  ;;  %2617 = vtanh.f32 %v2240_v44  ;;  %v211_v44 = vadd.s32 8, %v3736_v1  ;;  %v395_v50 = vsub.f32 %v3750_v10, %v3814_v17 }
  0x49   : > { %v2608_v60 = vpop.eup %2607  ;;  %v481_v61 = vadd.f32 %v473_v55, %v432_v54  ;;  %v522_v63 = vsub.f32 %v2604_v53, %v2606_v56  ;;  %2619 = vtanh.f32 %v298_v28  ;;  %v2255_v55 = vadd.f32 -1.25, %v346_v43 }
  0x4a   : > { %v2610_v0 = vpop.eup %2609  ;;  %2621 = vtanh.f32 %v2248_v51  ;;  %v444_v56 = vsub.f32 %v3752_v11, %v3814_v17 }
  0x4b   : > { %v2612_v5 = vpop.eup %2611  ;;  %v530_v6 = vadd.f32 %v522_v63, %v481_v61  ;;  %v571_v12 = vsub.f32 %v2608_v60, %v2610_v0  ;;  %2623 = vtanh.f32 %v347_v45  ;;  %v2263_v0 = vadd.f32 -1.25, %v395_v50 }
  0x4c   : > { %v2614_v13 = vpop.eup %2613  ;;  %2625 = vtanh.f32 %v2256_v57  ;;  %v3829_v57 = vcvt.s32.f32 %v211_v44 }
  0x4d   : > { %v2616_v18 = vpop.eup %2615  ;;  %v579_v21 = vadd.f32 %v571_v12, %v530_v6  ;;  %v620_v23 = vsub.f32 %v2612_v5, %v2614_v13  ;;  %2627 = vtanh.f32 %v396_v52  ;;  %v2271_v13 = vadd.f32 -1.25, %v444_v56 }
  0x4e   : > { %v2618_v24 = vpop.eup %2617  ;;  %2629 = vtanh.f32 %v2264_v2  ;;  %v493_v2 = vsub.f32 %v3758_v16, %v3814_v17 }
  0x4f   : > { %v2620_v29 = vpop.eup %2619  ;;  %v628_v30 = vadd.f32 %v620_v23, %v579_v21  ;;  %v281_v31 = vsub.f32 %v2616_v18, %v2618_v24  ;;  %2631 = vtanh.f32 %v445_v58 }
  0x50   : > { %v2622_v32 = vpop.eup %2621  ;;  %2633 = vtanh.f32 %v2272_v14  ;;  %v542_v14 = vsub.f32 %v3764_v22, %v3814_v17 }
  0x51   : > { %v2624_v35 = vpop.eup %2623  ;;  %644 = vadd.xlane.f32.xlu0 %v628_v30  ;;  %v330_v36 = vsub.f32 %v2620_v29, %v2622_v32  ;;  %2635 = vtanh.f32 %v494_v4 }
  0x52   : > { %v2626_v37 = vpop.eup %2625  ;;  %2637 = vtanh.f32 %v2280_v26  ;;  %v2279_v26 = vadd.f32 -1.25, %v493_v2 }
  0x53   : > { %v2628_v39 = vpop.eup %2627  ;;  %v338_v28 = vadd.f32 %v330_v36, %v281_v31  ;;  %v379_v40 = vsub.f32 %v2624_v35, %v2626_v37  ;;  %2639 = vtanh.f32 %v543_v15  ;;  %v3836_v15 = vmul.f32 1.25, %v3829_v57 }
  0x54   : > { %v2630_v41 = vpop.eup %2629  ;;  %2641 = vtanh.f32 %v2288_v33  ;;  %v2287_v33 = vadd.f32 -1.25, %v542_v14 }
  0x55   : > { %v2632_v45 = vpop.eup %2631  ;;  %v387_v46 = vadd.f32 %v379_v40, %v338_v28  ;;  %v428_v47 = vsub.f32 %v2628_v39, %v2630_v41  ;;  %2643 = vtanh.f32 %v592_v27  ;;  %v591_v27 = vsub.f32 %v3767_v25, %v3814_v17 }
  0x56   : > { %v2634_v48 = vpop.eup %2633  ;;  %2645 = vtanh.f32 %v2296_v38  ;;  %v295_v17 = vsub.f32 %v3746_v8, %v3836_v15 }
  0x57   : > { %v2636_v51 = vpop.eup %2635  ;;  %v436_v52 = vadd.f32 %v428_v47, %v387_v46  ;;  %v477_v53 = vsub.f32 %v2632_v45, %v2634_v48  ;;  %2647 = vtanh.f32 %v248_v34  ;;  %v246_v34 = vsub.f32 %v3744_v7, %v3836_v15 }
  0x58   : > { %v2638_v54 = vpop.eup %2637  ;;  %2649 = vtanh.f32 %v2239_v42  ;;  %v2295_v38 = vadd.f32 -1.25, %v591_v27  ;;  %v344_v42 = vsub.f32 %v3748_v9, %v3836_v15  ;;  %v2245_v48 = vadd.f32 -1.25, %v295_v17 }
  0x59   : > { %v2640_v58 = vpop.eup %2639  ;;  %v485_v60 = vadd.f32 %v477_v53, %v436_v52  ;;  %v526_v61 = vsub.f32 %v2636_v51, %v2638_v54  ;;  %2651 = vtanh.f32 %v297_v20  ;;  %v2237_v41 = vadd.f32 -1.25, %v246_v34 }
  0x5a   : > { %v2642_v63 = vpop.eup %2641  ;;  %2653 = vtanh.f32 %v2247_v49  ;;  %v393_v49 = vsub.f32 %v3750_v10, %v3836_v15  ;;  %v2253_v54 = vadd.f32 -1.25, %v344_v42 }
  0x5b   : > { %v2644_v4 = vpop.eup %2643  ;;  %v534_v5 = vadd.f32 %v526_v61, %v485_v60  ;;  %v575_v6 = vsub.f32 %v2640_v58, %v2642_v63  ;;  %2655 = vtanh.f32 %v346_v43  ;;  %v215_v43 = vadd.s32 40, %v3736_v1 }
  0x5c   : > { %v2646_v12 = vpop.eup %2645  ;;  %2657 = vtanh.f32 %v2255_v55  ;;  %v442_v55 = vsub.f32 %v3752_v11, %v3836_v15 }
  0x5d   : > { %v2648_v18 = vpop.eup %2647  ;;  %v583_v21 = vadd.f32 %v575_v6, %v534_v5  ;;  %v624_v23 = vsub.f32 %v2644_v4, %v2646_v12  ;;  %2659 = vtanh.f32 %v395_v50 }
  0x5e   : > { %v2650_v24 = vpop.eup %2649  ;;  %2661 = vtanh.f32 %v2263_v0  ;;  %v2261_v0 = vadd.f32 -1.25, %v393_v49 }
  0x5f   : > { %v2652_v29 = vpop.eup %2651  ;;  %v632_v30 = vadd.f32 %v624_v23, %v583_v21  ;;  %v280_v31 = vsub.f32 %v2648_v18, %v2650_v24  ;;  %2663 = vtanh.f32 %v444_v56  ;;  %v3851_v56 = vcvt.s32.f32 %v215_v43 }
  0x60   : > { %v2654_v32 = vpop.eup %2653  ;;  %2665 = vtanh.f32 %v2271_v13  ;;  %v2269_v13 = vadd.f32 -1.25, %v442_v55  ;;  %v217_v43 = vadd.s32 56, %v3736_v1 }
  0x61   : > { %v2656_v35 = vpop.eup %2655  ;;  %652 = vadd.xlane.f32.xlu2 %v632_v30  ;;  %v329_v36 = vsub.f32 %v2652_v29, %v2654_v32  ;;  %2667 = vtanh.f32 %v493_v2  ;;  %v491_v2 = vsub.f32 %v3758_v16, %v3836_v15  ;;  %v3858_v18 = vmul.f32 1.25, %v3851_v56 }
  0x62   : > { %v2658_v37 = vpop.eup %2657  ;;  %2669 = vtanh.f32 %v2279_v26  ;;  %v589_v29 = vsub.f32 %v3767_v25, %v3836_v15 }
  0x63   : > { %v2660_v20 = vpop.eup %2659  ;;  %v337_v39 = vadd.f32 %v329_v36, %v280_v31  ;;  %v378_v28 = vsub.f32 %v2656_v35, %v2658_v37  ;;  %2671 = vtanh.f32 %v542_v14  ;;  %v540_v14 = vsub.f32 %v3764_v22, %v3836_v15 }
  0x64   : > { %v2662_v40 = vpop.eup %2661  ;;  %2673 = vtanh.f32 %v2287_v33  ;;  %v250_v35 = vsub.f32 %v3744_v7, %v3858_v18  ;;  %v299_v15 = vsub.f32 %v3746_v8, %v3858_v18 }
  0x65   : > { %v2664_v44 = vpop.eup %2663  ;;  %v386_v45 = vadd.f32 %v378_v28, %v337_v39  ;;  %v427_v46 = vsub.f32 %v2660_v20, %v2662_v40  ;;  %2675 = vtanh.f32 %v591_v27  ;;  %v2277_v27 = vadd.f32 -1.25, %v491_v2 }
  0x66   : > { %v2666_v47 = vpop.eup %2665  ;;  %2677 = vtanh.f32 %v2295_v38 }
  0x67   : > { %v2668_v50 = vpop.eup %2667  ;;  %v435_v51 = vadd.f32 %v427_v46, %v386_v45  ;;  %v476_v52 = vsub.f32 %v2664_v44, %v2666_v47  ;;  %2679 = vtanh.f32 %v246_v34  ;;  %v2285_v34 = vadd.f32 -1.25, %v540_v14 }
  0x68   : > { %v2670_v53 = vpop.eup %2669  ;;  %2681 = vtanh.f32 %v2237_v41  ;;  %v2241_v41 = vadd.f32 -1.25, %v250_v35 }
  0x69   : > { %v2672_v58 = vpop.eup %2671  ;;  %v484_v60 = vadd.f32 %v476_v52, %v435_v51  ;;  %v525_v61 = vsub.f32 %v2668_v50, %v2670_v53  ;;  %2683 = vtanh.f32 %v295_v17  ;;  %v2293_v17 = vadd.f32 -1.25, %v589_v29 }
  0x6a   : > { %v2674_v63 = vpop.eup %2673  ;;  %2685 = vtanh.f32 %v2245_v48  ;;  %v2249_v48 = vadd.f32 -1.25, %v299_v15 }
  0x6b   : > { %v2676_v4 = vpop.eup %2675  ;;  %v533_v5 = vadd.f32 %v525_v61, %v484_v60  ;;  %v574_v6 = vsub.f32 %v2672_v58, %v2674_v63  ;;  %2687 = vtanh.f32 %v344_v42  ;;  %v348_v42 = vsub.f32 %v3748_v9, %v3858_v18 }
  0x6c   : > { %v2678_v12 = vpop.eup %2677  ;;  %2689 = vtanh.f32 %v2253_v54  ;;  %v3873_v58 = vcvt.s32.f32 %v217_v43 }
  0x6d   : > { %v2680_v21 = vpop.eup %2679  ;;  %v582_v23 = vadd.f32 %v574_v6, %v533_v5  ;;  %v623_v24 = vsub.f32 %v2676_v4, %v2678_v12  ;;  %2691 = vtanh.f32 %v393_v49  ;;  %v397_v49 = vsub.f32 %v3750_v10, %v3858_v18 }
  0x6e   : > { %v2682_v26 = vpop.eup %2681  ;;  %2693 = vtanh.f32 %v2261_v0  ;;  %v2257_v54 = vadd.f32 -1.25, %v348_v42  ;;  %v495_v4 = vsub.f32 %v3758_v16, %v3858_v18 }
  0x6f   : > { %v2684_v30 = vpop.eup %2683  ;;  %v631_v31 = vadd.f32 %v623_v24, %v582_v23  ;;  %v278_v32 = vsub.f32 %v2680_v21, %v2682_v26  ;;  %2695 = vtanh.f32 %v442_v55  ;;  %v446_v55 = vsub.f32 %v3752_v11, %v3858_v18 }
  0x70   : > { %v2686_v33 = vpop.eup %2685  ;;  %2697 = vtanh.f32 %v2269_v13  ;;  %v544_v21 = vsub.f32 %v3764_v22, %v3858_v18  ;;  %v3880_v23 = vmul.f32 1.25, %v3873_v58 }
  0x71   : > { %v2688_v36 = vpop.eup %2687  ;;  %650 = vadd.xlane.f32.xlu1 %v631_v31  ;;  %v327_v37 = vsub.f32 %v2684_v30, %v2686_v33  ;;  %2699 = vtanh.f32 %v491_v2  ;;  %v2265_v2 = vadd.f32 -1.25, %v397_v49  ;;  %v2281_v30 = vadd.f32 -1.25, %v495_v4 }
  0x72   : > { %v2690_v38 = vpop.eup %2689  ;;  %2701 = vtanh.f32 %v2277_v27  ;;  %v593_v31 = vsub.f32 %v3767_v25, %v3858_v18  ;;  %v301_v18 = vsub.f32 %v3746_v8, %v3880_v23  ;;  %v350_v43 = vsub.f32 %v3748_v9, %v3880_v23 }
  0x73   : > { %v2692_v20 = vpop.eup %2691  ;;  %v335_v39 = vadd.f32 %v327_v37, %v278_v32  ;;  %v376_v28 = vsub.f32 %v2688_v36, %v2690_v38  ;;  %2703 = vtanh.f32 %v540_v14  ;;  %v2273_v14 = vadd.f32 -1.25, %v446_v55 }
  0x74   : > { %v2694_v40 = vpop.eup %2693  ;;  %2705 = vtanh.f32 %v2285_v34  ;;  %v2289_v36 = vadd.f32 -1.25, %v544_v21  ;;  %v252_v37 = vsub.f32 %v3744_v7, %v3880_v23 }
  0x75   : > { %v2696_v44 = vpop.eup %2695  ;;  %v384_v45 = vadd.f32 %v376_v28, %v335_v39  ;;  %v425_v46 = vsub.f32 %v2692_v20, %v2694_v40  ;;  %2707 = vtanh.f32 %v589_v29  ;;  %v2297_v20 = vadd.f32 -1.25, %v593_v31 }
  0x76   : > { %v2698_v47 = vpop.eup %2697  ;;  %2709 = vtanh.f32 %v2293_v17 }
  0x77   : > { %v2700_v50 = vpop.eup %2699  ;;  %v433_v51 = vadd.f32 %v425_v46, %v384_v45  ;;  %v474_v52 = vsub.f32 %v2696_v44, %v2698_v47  ;;  %2711 = vtanh.f32 %v250_v35  ;;  %v216_v44 = vadd.s32 48, %v3736_v1 }
  0x78   : > { %v2702_v53 = vpop.eup %2701  ;;  %2713 = vtanh.f32 %v2241_v41  ;;  %v448_v1 = vsub.f32 %v3752_v11, %v3880_v23 }
  0x79   : > { %v2704_v60 = vpop.eup %2703  ;;  %v482_v61 = vadd.f32 %v474_v52, %v433_v51  ;;  %v523_v63 = vsub.f32 %v2700_v50, %v2702_v53  ;;  %2715 = vtanh.f32 %v299_v15  ;;  %v399_v50 = vsub.f32 %v3750_v10, %v3880_v23 }
  0x7a   : > { %v2706_v0 = vpop.eup %2705  ;;  %2717 = vtanh.f32 %v2249_v48 }
  0x7b   : > { %v2708_v5 = vpop.eup %2707  ;;  %v531_v6 = vadd.f32 %v523_v63, %v482_v61  ;;  %v572_v12 = vsub.f32 %v2704_v60, %v2706_v0  ;;  %2719 = vtanh.f32 %v348_v42  ;;  %v2243_v42 = vadd.f32 -1.25, %v252_v37 }
  0x7c   : > { %v2710_v13 = vpop.eup %2709  ;;  %2721 = vtanh.f32 %v2257_v54  ;;  %v3895_v60 = vcvt.s32.f32 %v216_v44 }
  0x7d   : > { %v2712_v24 = vpop.eup %2711  ;;  %v580_v26 = vadd.f32 %v572_v12, %v531_v6  ;;  %v621_v27 = vsub.f32 %v2708_v5, %v2710_v13  ;;  %2723 = vtanh.f32 %v397_v49  ;;  %v2251_v49 = vadd.f32 -1.25, %v301_v18 }
  0x7e   : > { %v2714_v29 = vpop.eup %2713  ;;  %2725 = vtanh.f32 %v2265_v2  ;;  %v497_v5 = vsub.f32 %v3758_v16, %v3880_v23 }
  0x7f   : > { %v2716_v32 = vpop.eup %2715  ;;  %v629_v33 = vadd.f32 %v621_v27, %v580_v26  ;;  %v282_v34 = vsub.f32 %v2712_v24, %v2714_v29  ;;  %2727 = vtanh.f32 %v446_v55  ;;  %v2259_v55 = vadd.f32 -1.25, %v350_v43 }
  0x80   : > { %v2718_v35 = vpop.eup %2717  ;;  %2729 = vtanh.f32 %v2273_v14  ;;  %v546_v24 = vsub.f32 %v3764_v22, %v3880_v23  ;;  %v3902_v26 = vmul.f32 1.25, %v3895_v60 }
  0x81   : > { %v2720_v38 = vpop.eup %2719  ;;  %646 = vadd.xlane.f32.xlu0 %v629_v33  ;;  %v331_v17 = vsub.f32 %v2716_v32, %v2718_v35  ;;  %2731 = vtanh.f32 %v495_v4  ;;  %v2267_v4 = vadd.f32 -1.25, %v399_v50  ;;  %v2283_v32 = vadd.f32 -1.25, %v497_v5 }
  0x82   : > { %v2722_v15 = vpop.eup %2721  ;;  %2733 = vtanh.f32 %v2281_v30  ;;  %v595_v33 = vsub.f32 %v3767_v25, %v3880_v23  ;;  %v300_v23 = vsub.f32 %v3746_v8, %v3902_v26  ;;  %v349_v44 = vsub.f32 %v3748_v9, %v3902_v26 }
  0x83   : > { %v2724_v39 = vpop.eup %2723  ;;  %v339_v28 = vadd.f32 %v331_v17, %v282_v34  ;;  %v380_v40 = vsub.f32 %v2720_v38, %v2722_v15  ;;  %2735 = vtanh.f32 %v544_v21  ;;  %v2275_v21 = vadd.f32 -1.25, %v448_v1 }
  0x84   : > { %v2726_v41 = vpop.eup %2725  ;;  %2737 = vtanh.f32 %v2289_v36  ;;  %v2291_v38 = vadd.f32 -1.25, %v546_v24  ;;  %v251_v17 = vsub.f32 %v3744_v7, %v3902_v26 }
  0x85   : > { %v2728_v45 = vpop.eup %2727  ;;  %v388_v46 = vadd.f32 %v380_v40, %v339_v28  ;;  %v429_v47 = vsub.f32 %v2724_v39, %v2726_v41  ;;  %2739 = vtanh.f32 %v593_v31  ;;  %v2299_v39 = vadd.f32 -1.25, %v595_v33 }
  0x86   : > { %v2730_v48 = vpop.eup %2729  ;;  %2741 = vtanh.f32 %v2297_v20 }
  0x87   : > { %v2732_v51 = vpop.eup %2731  ;;  %v437_v52 = vadd.f32 %v429_v47, %v388_v46  ;;  %v478_v53 = vsub.f32 %v2728_v45, %v2730_v48  ;;  %2743 = vtanh.f32 %v252_v37 }
  0x88   : > { %v2734_v54 = vpop.eup %2733  ;;  %2745 = vtanh.f32 %v2243_v42 }
  0x89   : > { %v2736_v61 = vpop.eup %2735  ;;  %v486_v63 = vadd.f32 %v478_v53, %v437_v52  ;;  %v527_v0 = vsub.f32 %v2732_v51, %v2734_v54  ;;  %2747 = vtanh.f32 %v301_v18 }
  0x8a   : > { %v2738_v2 = vpop.eup %2737  ;;  %2749 = vtanh.f32 %v2251_v49  ;;  %v2250_v49 = vadd.f32 -1.25, %v300_v23 }
  0x8b   : > { %v2740_v6 = vpop.eup %2739  ;;  %v535_v12 = vadd.f32 %v527_v0, %v486_v63  ;;  %v576_v13 = vsub.f32 %v2736_v61, %v2738_v2  ;;  %2751 = vtanh.f32 %v350_v43  ;;  %v2242_v43 = vadd.f32 -1.25, %v251_v17 }
  0x8c   : > { %v2742_v14 = vpop.eup %2741  ;;  %2753 = vtanh.f32 %v2259_v55  ;;  %v2258_v55 = vadd.f32 -1.25, %v349_v44  ;;  %v677_v61 = vadd.f32 64.0, %v3761_v19 }
  0x8d   : > { %v2744_v27 = vpop.eup %2743  ;;  %v584_v29 = vadd.f32 %v576_v13, %v535_v12  ;;  %v625_v30 = vsub.f32 %v2740_v6, %v2742_v14  ;;  %2755 = vtanh.f32 %v399_v50  ;;  %v398_v50 = vsub.f32 %v3750_v10, %v3902_v26 }
  0x8e   : > { %v2746_v31 = vpop.eup %2745  ;;  %2757 = vtanh.f32 %v2267_v4  ;;  %v496_v6 = vsub.f32 %v3758_v16, %v3902_v26 }
  0x8f   : > { %v2748_v34 = vpop.eup %2747  ;;  %v633_v35 = vadd.f32 %v625_v30, %v584_v29  ;;  %v284_v36 = vsub.f32 %v2744_v27, %v2746_v31  ;;  %2759 = vtanh.f32 %v448_v1  ;;  %v447_v1 = vsub.f32 %v3752_v11, %v3902_v26 }
  0x90   : > { %v2750_v37 = vpop.eup %2749  ;;  %2761 = vtanh.f32 %v2275_v21  ;;  %v545_v27 = vsub.f32 %v3764_v22, %v3902_v26  ;;  %v3921_v29 = vmul.f32 1.25, %v677_v61 }
  0x91   : > { %v2752_v15 = vpop.eup %2751  ;;  %654 = vadd.xlane.f32.xlu2 %v633_v35  ;;  %v333_v20 = vsub.f32 %v2748_v34, %v2750_v37  ;;  %2763 = vtanh.f32 %v497_v5  ;;  %v2266_v5 = vadd.f32 -1.25, %v398_v50  ;;  %v2282_v34 = vadd.f32 -1.25, %v496_v6 }
  0x92   : > { %v2754_v18 = vpop.eup %2753  ;;  %2765 = vtanh.f32 %v2283_v32  ;;  %v594_v35 = vsub.f32 %v3767_v25, %v3902_v26  ;;  %v745_v26 = vsub.f32 %v3746_v8, %v3921_v29  ;;  %v892_v61 = vsub.f32 %v3752_v11, %v3921_v29 }
  0x93   : > { %v2756_v28 = vpop.eup %2755  ;;  %v341_v40 = vadd.f32 %v333_v20, %v284_v36  ;;  %v382_v41 = vsub.f32 %v2752_v15, %v2754_v18  ;;  %2767 = vtanh.f32 %v546_v24  ;;  %v2274_v24 = vadd.f32 -1.25, %v447_v1 }
  0x94   : > { %v2758_v42 = vpop.eup %2757  ;;  %2769 = vtanh.f32 %v2291_v38  ;;  %v2290_v15 = vadd.f32 -1.25, %v545_v27  ;;  %v696_v20 = vsub.f32 %v3744_v7, %v3921_v29 }
  0x95   : > { %v2760_v45 = vpop.eup %2759  ;;  %v390_v46 = vadd.f32 %v382_v41, %v341_v40  ;;  %v431_v47 = vsub.f32 %v2756_v28, %v2758_v42  ;;  %2771 = vtanh.f32 %v595_v33  ;;  %v2298_v28 = vadd.f32 -1.25, %v594_v35 }
  0x96   : > { %v2762_v48 = vpop.eup %2761  ;;  %2773 = vtanh.f32 %v2299_v39 }
  0x97   : > { %v2764_v51 = vpop.eup %2763  ;;  %v439_v52 = vadd.f32 %v431_v47, %v390_v46  ;;  %v480_v53 = vsub.f32 %v2760_v45, %v2762_v48  ;;  %2775 = vtanh.f32 %v251_v17  ;;  %v794_v45 = vsub.f32 %v3748_v9, %v3921_v29 }
  0x98   : > { %v2766_v54 = vpop.eup %2765  ;;  %2777 = vtanh.f32 %v2242_v43 }
  0x99   : > { %v2768_v63 = vpop.eup %2767  ;;  %v488_v0 = vadd.f32 %v480_v53, %v439_v52  ;;  %v529_v2 = vsub.f32 %v2764_v51, %v2766_v54  ;;  %2779 = vtanh.f32 %v300_v23  ;;  %v843_v51 = vsub.f32 %v3750_v10, %v3921_v29 }
  0x9a   : > { %v2770_v4 = vpop.eup %2769  ;;  %2781 = vtanh.f32 %v2250_v49 }
  0x9b   : > { %v2772_v12 = vpop.eup %2771  ;;  %v537_v13 = vadd.f32 %v529_v2, %v488_v0  ;;  %v578_v14 = vsub.f32 %v2768_v63, %v2770_v4  ;;  %2783 = vtanh.f32 %v349_v44  ;;  %v2300_v44 = vadd.f32 -1.25, %v696_v20 }
  0x9c   : > { %v2774_v21 = vpop.eup %2773  ;;  %2785 = vtanh.f32 %v2258_v55  ;;  %v679_v63 = vadd.f32 64.0, %v3739_v3 }
  0x9d   : > { %v2776_v30 = vpop.eup %2775  ;;  %v586_v31 = vadd.f32 %v578_v14, %v537_v13  ;;  %v627_v32 = vsub.f32 %v2772_v12, %v2774_v21  ;;  %2787 = vtanh.f32 %v398_v50  ;;  %v2308_v50 = vadd.f32 -1.25, %v745_v26 }
  0x9e   : > { %v2778_v33 = vpop.eup %2777  ;;  %2789 = vtanh.f32 %v2266_v5  ;;  %v941_v12 = vsub.f32 %v3758_v16, %v3921_v29 }
  0x9f   : > { %v2780_v36 = vpop.eup %2779  ;;  %v635_v37 = vadd.f32 %v627_v32, %v586_v31  ;;  %v283_v38 = vsub.f32 %v2776_v30, %v2778_v33  ;;  %2791 = vtanh.f32 %v447_v1  ;;  %v2316_v1 = vadd.f32 -1.25, %v794_v45 }
  0xa0   : > { %v2782_v17 = vpop.eup %2781  ;;  %2793 = vtanh.f32 %v2274_v24  ;;  %v990_v30 = vsub.f32 %v3764_v22, %v3921_v29  ;;  %v3940_v31 = vmul.f32 1.25, %v679_v63 }
  0xa1   : > { %v2784_v18 = vpop.eup %2783  ;;  %658 = vadd.xlane.f32.xlu1 %v635_v37  ;;  %v332_v39 = vsub.f32 %v2780_v36, %v2782_v17  ;;  %2795 = vtanh.f32 %v496_v6  ;;  %v2324_v6 = vadd.f32 -1.25, %v843_v51  ;;  %v2340_v36 = vadd.f32 -1.25, %v941_v12 }
  0xa2   : > { %v2786_v23 = vpop.eup %2785  ;;  %2797 = vtanh.f32 %v2282_v34  ;;  %v1039_v37 = vsub.f32 %v3767_v25, %v3921_v29  ;;  %v747_v29 = vsub.f32 %v3746_v8, %v3940_v31  ;;  %v894_v63 = vsub.f32 %v3752_v11, %v3940_v31 }
  0xa3   : > { %v2788_v40 = vpop.eup %2787  ;;  %v340_v41 = vadd.f32 %v332_v39, %v283_v38  ;;  %v381_v42 = vsub.f32 %v2784_v18, %v2786_v23  ;;  %2799 = vtanh.f32 %v545_v27  ;;  %v2332_v27 = vadd.f32 -1.25, %v892_v61 }
  0xa4   : > { %v2790_v43 = vpop.eup %2789  ;;  %2801 = vtanh.f32 %v2290_v15  ;;  %v2348_v18 = vadd.f32 -1.25, %v990_v30  ;;  %v698_v39 = vsub.f32 %v3744_v7, %v3940_v31 }
  0xa5   : > { %v2792_v46 = vpop.eup %2791  ;;  %v389_v47 = vadd.f32 %v381_v42, %v340_v41  ;;  %v430_v48 = vsub.f32 %v2788_v40, %v2790_v43  ;;  %2803 = vtanh.f32 %v594_v35  ;;  %v2356_v40 = vadd.f32 -1.25, %v1039_v37 }
  0xa6   : > { %v2794_v49 = vpop.eup %2793  ;;  %2805 = vtanh.f32 %v2298_v28 }
  0xa7   : > { %v2796_v52 = vpop.eup %2795  ;;  %v438_v53 = vadd.f32 %v430_v48, %v389_v47  ;;  %v479_v54 = vsub.f32 %v2792_v46, %v2794_v49  ;;  %2807 = vtanh.f32 %v696_v20  ;;  %v796_v46 = vsub.f32 %v3748_v9, %v3940_v31 }
  0xa8   : > { %v2798_v55 = vpop.eup %2797  ;;  %2809 = vtanh.f32 %v2300_v44 }
  0xa9   : > { %v2800_v0 = vpop.eup %2799  ;;  %v487_v2 = vadd.f32 %v479_v54, %v438_v53  ;;  %v528_v4 = vsub.f32 %v2796_v52, %v2798_v55  ;;  %2811 = vtanh.f32 %v745_v26  ;;  %v845_v52 = vsub.f32 %v3750_v10, %v3940_v31 }
  0xaa   : > { %v2802_v5 = vpop.eup %2801  ;;  %2813 = vtanh.f32 %v2308_v50 }
  0xab   : > { %v2804_v13 = vpop.eup %2803  ;;  %v536_v14 = vadd.f32 %v528_v4, %v487_v2  ;;  %v577_v21 = vsub.f32 %v2800_v0, %v2802_v5  ;;  %2815 = vtanh.f32 %v794_v45  ;;  %v2302_v45 = vadd.f32 -1.25, %v698_v39 }
  0xac   : > { %v2806_v24 = vpop.eup %2805  ;;  %2817 = vtanh.f32 %v2316_v1  ;;  %v678_v0 = vadd.f32 64.0, %v3829_v57 }
  0xad   : > { %v2808_v32 = vpop.eup %2807  ;;  %v585_v33 = vadd.f32 %v577_v21, %v536_v14  ;;  %v626_v34 = vsub.f32 %v2804_v13, %v2806_v24  ;;  %2819 = vtanh.f32 %v843_v51  ;;  %v2310_v51 = vadd.f32 -1.25, %v747_v29 }
  0xae   : > { %v2810_v35 = vpop.eup %2809  ;;  %2821 = vtanh.f32 %v2324_v6  ;;  %v943_v13 = vsub.f32 %v3758_v16, %v3940_v31 }
  0xaf   : > { %v2812_v38 = vpop.eup %2811  ;;  %v634_v17 = vadd.f32 %v626_v34, %v585_v33  ;;  %v728_v15 = vsub.f32 %v2808_v32, %v2810_v35  ;;  %2823 = vtanh.f32 %v892_v61  ;;  %v2318_v61 = vadd.f32 -1.25, %v796_v46 }
  0xb0   : > { %v2814_v20 = vpop.eup %2813  ;;  %2825 = vtanh.f32 %v2332_v27  ;;  %v992_v32 = vsub.f32 %v3764_v22, %v3940_v31  ;;  %v3959_v33 = vmul.f32 1.25, %v678_v0 }
  0xb1   : > { %v2816_v23 = vpop.eup %2815  ;;  %656 = vadd.xlane.f32.xlu0 %v634_v17  ;;  %v777_v28 = vsub.f32 %v2812_v38, %v2814_v20  ;;  %2827 = vtanh.f32 %v941_v12  ;;  %v2326_v12 = vadd.f32 -1.25, %v845_v52  ;;  %v2342_v38 = vadd.f32 -1.25, %v943_v13 }
  0xb2   : > { %v2818_v26 = vpop.eup %2817  ;;  %2829 = vtanh.f32 %v2340_v36  ;;  %v1041_v17 = vsub.f32 %v3767_v25, %v3940_v31  ;;  %v746_v31 = vsub.f32 %v3746_v8, %v3959_v33  ;;  %v893_v0 = vsub.f32 %v3752_v11, %v3959_v33 }
  0xb3   : > { %v2820_v41 = vpop.eup %2819  ;;  %v785_v42 = vadd.f32 %v777_v28, %v728_v15  ;;  %v826_v43 = vsub.f32 %v2816_v23, %v2818_v26  ;;  %2831 = vtanh.f32 %v990_v30  ;;  %v2334_v30 = vadd.f32 -1.25, %v894_v63 }
  0xb4   : > { %v2822_v44 = vpop.eup %2821  ;;  %2833 = vtanh.f32 %v2348_v18  ;;  %v2350_v23 = vadd.f32 -1.25, %v992_v32  ;;  %v697_v28 = vsub.f32 %v3744_v7, %v3959_v33 }
  0xb5   : > { %v2824_v47 = vpop.eup %2823  ;;  %v834_v48 = vadd.f32 %v826_v43, %v785_v42  ;;  %v875_v49 = vsub.f32 %v2820_v41, %v2822_v44  ;;  %2835 = vtanh.f32 %v1039_v37  ;;  %v2358_v41 = vadd.f32 -1.25, %v1041_v17 }
  0xb6   : > { %v2826_v50 = vpop.eup %2825  ;;  %2837 = vtanh.f32 %v2356_v40 }
  0xb7   : > { %v2828_v53 = vpop.eup %2827  ;;  %v883_v54 = vadd.f32 %v875_v49, %v834_v48  ;;  %v924_v55 = vsub.f32 %v2824_v47, %v2826_v50  ;;  %2839 = vtanh.f32 %v698_v39  ;;  %v795_v47 = vsub.f32 %v3748_v9, %v3959_v33 }
  0xb8   : > { %v2830_v1 = vpop.eup %2829  ;;  %2841 = vtanh.f32 %v2302_v45 }
  0xb9   : > { %v2832_v2 = vpop.eup %2831  ;;  %v932_v4 = vadd.f32 %v924_v55, %v883_v54  ;;  %v973_v5 = vsub.f32 %v2828_v53, %v2830_v1  ;;  %2843 = vtanh.f32 %v747_v29  ;;  %v844_v53 = vsub.f32 %v3750_v10, %v3959_v33 }
  0xba   : > { %v2834_v6 = vpop.eup %2833  ;;  %2845 = vtanh.f32 %v2310_v51 }
  0xbb   : > { %v2836_v14 = vpop.eup %2835  ;;  %v981_v21 = vadd.f32 %v973_v5, %v932_v4  ;;  %v1022_v24 = vsub.f32 %v2832_v2, %v2834_v6  ;;  %2847 = vtanh.f32 %v796_v46  ;;  %v2301_v46 = vadd.f32 -1.25, %v697_v28 }
  0xbc   : > { %v2838_v27 = vpop.eup %2837  ;;  %2849 = vtanh.f32 %v2318_v61  ;;  %v680_v2 = vadd.f32 64.0, %v3807_v59 }
  0xbd   : > { %v2840_v34 = vpop.eup %2839  ;;  %v1030_v35 = vadd.f32 %v1022_v24, %v981_v21  ;;  %v1071_v36 = vsub.f32 %v2836_v14, %v2838_v27  ;;  %2851 = vtanh.f32 %v845_v52  ;;  %v2309_v52 = vadd.f32 -1.25, %v746_v31 }
  0xbe   : > { %v2842_v37 = vpop.eup %2841  ;;  %2853 = vtanh.f32 %v2326_v12  ;;  %v942_v14 = vsub.f32 %v3758_v16, %v3959_v33 }
  0xbf   : > { %v2844_v15 = vpop.eup %2843  ;;  %v1079_v20 = vadd.f32 %v1071_v36, %v1030_v35  ;;  %v730_v18 = vsub.f32 %v2840_v34, %v2842_v37  ;;  %2855 = vtanh.f32 %v894_v63  ;;  %v2317_v63 = vadd.f32 -1.25, %v795_v47 }
  0xc0   : > { %v2846_v39 = vpop.eup %2845  ;;  %2857 = vtanh.f32 %v2334_v30  ;;  %v991_v34 = vsub.f32 %v3764_v22, %v3959_v33  ;;  %v3978_v35 = vmul.f32 1.25, %v680_v2 }
  0xc1   : > { %v2848_v26 = vpop.eup %2847  ;;  %1095 = vadd.xlane.f32.xlu2 %v1079_v20  ;;  %v779_v40 = vsub.f32 %v2844_v15, %v2846_v39  ;;  %2859 = vtanh.f32 %v943_v13  ;;  %v2325_v13 = vadd.f32 -1.25, %v844_v53  ;;  %v2341_v15 = vadd.f32 -1.25, %v942_v14 }
  0xc2   : > { %v2850_v29 = vpop.eup %2849  ;;  %2861 = vtanh.f32 %v2342_v38  ;;  %v1040_v20 = vsub.f32 %v3767_v25, %v3959_v33  ;;  %v748_v33 = vsub.f32 %v3746_v8, %v3978_v35  ;;  %v895_v2 = vsub.f32 %v3752_v11, %v3978_v35 }
  0xc3   : > { %v2852_v42 = vpop.eup %2851  ;;  %v787_v43 = vadd.f32 %v779_v40, %v730_v18  ;;  %v828_v44 = vsub.f32 %v2848_v26, %v2850_v29  ;;  %2863 = vtanh.f32 %v992_v32  ;;  %v2333_v32 = vadd.f32 -1.25, %v893_v0 }
  0xc4   : > { %v2854_v45 = vpop.eup %2853  ;;  %2865 = vtanh.f32 %v2350_v23  ;;  %v2349_v26 = vadd.f32 -1.25, %v991_v34  ;;  %v699_v40 = vsub.f32 %v3744_v7, %v3978_v35 }
  0xc5   : > { %v2856_v48 = vpop.eup %2855  ;;  %v836_v49 = vadd.f32 %v828_v44, %v787_v43  ;;  %v877_v50 = vsub.f32 %v2852_v42, %v2854_v45  ;;  %2867 = vtanh.f32 %v1041_v17  ;;  %v2357_v42 = vadd.f32 -1.25, %v1040_v20 }
  0xc6   : > { %v2858_v51 = vpop.eup %2857  ;;  %2869 = vtanh.f32 %v2358_v41 }
  0xc7   : > { %v2860_v54 = vpop.eup %2859  ;;  %v885_v55 = vadd.f32 %v877_v50, %v836_v49  ;;  %v926_v1 = vsub.f32 %v2856_v48, %v2858_v51  ;;  %2871 = vtanh.f32 %v697_v28  ;;  %v797_v48 = vsub.f32 %v3748_v9, %v3978_v35 }
  0xc8   : > { %v2862_v61 = vpop.eup %2861  ;;  %2873 = vtanh.f32 %v2301_v46 }
  0xc9   : > { %v2864_v4 = vpop.eup %2863  ;;  %v934_v5 = vadd.f32 %v926_v1, %v885_v55  ;;  %v975_v6 = vsub.f32 %v2860_v54, %v2862_v61  ;;  %2875 = vtanh.f32 %v746_v31  ;;  %v846_v54 = vsub.f32 %v3750_v10, %v3978_v35 }
  0xca   : > { %v2866_v12 = vpop.eup %2865  ;;  %2877 = vtanh.f32 %v2309_v52 }
  0xcb   : > { %v2868_v21 = vpop.eup %2867  ;;  %v983_v24 = vadd.f32 %v975_v6, %v934_v5  ;;  %v1024_v27 = vsub.f32 %v2864_v4, %v2866_v12  ;;  %2879 = vtanh.f32 %v795_v47  ;;  %v2303_v47 = vadd.f32 -1.25, %v699_v40 }
  0xcc   : > { %v2870_v30 = vpop.eup %2869  ;;  %2881 = vtanh.f32 %v2317_v63  ;;  %v682_v4 = vadd.f32 64.0, %v3851_v56 }
  0xcd   : > { %v2872_v36 = vpop.eup %2871  ;;  %v1032_v37 = vadd.f32 %v1024_v27, %v983_v24  ;;  %v1073_v38 = vsub.f32 %v2868_v21, %v2870_v30  ;;  %2883 = vtanh.f32 %v844_v53  ;;  %v2311_v53 = vadd.f32 -1.25, %v748_v33 }
  0xce   : > { %v2874_v17 = vpop.eup %2873  ;;  %2885 = vtanh.f32 %v2325_v13  ;;  %v944_v21 = vsub.f32 %v3758_v16, %v3978_v35 }
  0xcf   : > { %v2876_v18 = vpop.eup %2875  ;;  %v1081_v39 = vadd.f32 %v1073_v38, %v1032_v37  ;;  %v729_v23 = vsub.f32 %v2872_v36, %v2874_v17  ;;  %2887 = vtanh.f32 %v893_v0  ;;  %v2319_v0 = vadd.f32 -1.25, %v797_v48 }
  0xd0   : > { %v2878_v28 = vpop.eup %2877  ;;  %2889 = vtanh.f32 %v2333_v32  ;;  %v993_v36 = vsub.f32 %v3764_v22, %v3978_v35  ;;  %v3997_v37 = vmul.f32 1.25, %v682_v4 }
  0xd1   : > { %v2880_v29 = vpop.eup %2879  ;;  %1099 = vadd.xlane.f32.xlu1 %v1081_v39  ;;  %v778_v41 = vsub.f32 %v2876_v18, %v2878_v28  ;;  %2891 = vtanh.f32 %v942_v14  ;;  %v2327_v14 = vadd.f32 -1.25, %v846_v54  ;;  %v2343_v18 = vadd.f32 -1.25, %v944_v21 }
  0xd2   : > { %v2882_v31 = vpop.eup %2881  ;;  %2893 = vtanh.f32 %v2341_v15  ;;  %v1042_v39 = vsub.f32 %v3767_v25, %v3978_v35  ;;  %v750_v35 = vsub.f32 %v3746_v8, %v3997_v37  ;;  %v897_v4 = vsub.f32 %v3752_v11, %v3997_v37 }
  0xd3   : > { %v2884_v43 = vpop.eup %2883  ;;  %v786_v44 = vadd.f32 %v778_v41, %v729_v23  ;;  %v827_v45 = vsub.f32 %v2880_v29, %v2882_v31  ;;  %2895 = vtanh.f32 %v991_v34  ;;  %v2335_v34 = vadd.f32 -1.25, %v895_v2 }
  0xd4   : > { %v2886_v46 = vpop.eup %2885  ;;  %2897 = vtanh.f32 %v2349_v26  ;;  %v2351_v29 = vadd.f32 -1.25, %v993_v36  ;;  %v701_v41 = vsub.f32 %v3744_v7, %v3997_v37 }
  0xd5   : > { %v2888_v49 = vpop.eup %2887  ;;  %v835_v50 = vadd.f32 %v827_v45, %v786_v44  ;;  %v876_v51 = vsub.f32 %v2884_v43, %v2886_v46  ;;  %2899 = vtanh.f32 %v1040_v20  ;;  %v2359_v43 = vadd.f32 -1.25, %v1042_v39 }
  0xd6   : > { %v2890_v52 = vpop.eup %2889  ;;  %2901 = vtanh.f32 %v2357_v42 }
  0xd7   : > { %v2892_v55 = vpop.eup %2891  ;;  %v884_v1 = vadd.f32 %v876_v51, %v835_v50  ;;  %v925_v61 = vsub.f32 %v2888_v49, %v2890_v52  ;;  %2903 = vtanh.f32 %v699_v40  ;;  %v799_v49 = vsub.f32 %v3748_v9, %v3997_v37 }
  0xd8   : > { %v2894_v63 = vpop.eup %2893  ;;  %2905 = vtanh.f32 %v2303_v47 }
  0xd9   : > { %v2896_v5 = vpop.eup %2895  ;;  %v933_v6 = vadd.f32 %v925_v61, %v884_v1  ;;  %v974_v12 = vsub.f32 %v2892_v55, %v2894_v63  ;;  %2907 = vtanh.f32 %v748_v33  ;;  %v848_v55 = vsub.f32 %v3750_v10, %v3997_v37 }
  0xda   : > { %v2898_v13 = vpop.eup %2897  ;;  %2909 = vtanh.f32 %v2311_v53 }
  0xdb   : > { %v2900_v24 = vpop.eup %2899  ;;  %v982_v27 = vadd.f32 %v974_v12, %v933_v6  ;;  %v1023_v30 = vsub.f32 %v2896_v5, %v2898_v13  ;;  %2911 = vtanh.f32 %v797_v48  ;;  %v2305_v48 = vadd.f32 -1.25, %v701_v41 }
  0xdc   : > { %v2902_v32 = vpop.eup %2901  ;;  %2913 = vtanh.f32 %v2319_v0  ;;  %v681_v5 = vadd.f32 64.0, %v3785_v62 }
  0xdd   : > { %v2904_v38 = vpop.eup %2903  ;;  %v1031_v17 = vadd.f32 %v1023_v30, %v982_v27  ;;  %v1072_v15 = vsub.f32 %v2900_v24, %v2902_v32  ;;  %2915 = vtanh.f32 %v846_v54  ;;  %v2313_v54 = vadd.f32 -1.25, %v750_v35 }
  0xde   : > { %v2906_v20 = vpop.eup %2905  ;;  %2917 = vtanh.f32 %v2327_v14  ;;  %v946_v24 = vsub.f32 %v3758_v16, %v3997_v37 }
  0xdf   : > { %v2908_v23 = vpop.eup %2907  ;;  %v1080_v28 = vadd.f32 %v1072_v15, %v1031_v17  ;;  %v731_v26 = vsub.f32 %v2904_v38, %v2906_v20  ;;  %2919 = vtanh.f32 %v895_v2  ;;  %v2321_v2 = vadd.f32 -1.25, %v799_v49 }
  0xe0   : > { %v2910_v40 = vpop.eup %2909  ;;  %2921 = vtanh.f32 %v2335_v34  ;;  %v995_v38 = vsub.f32 %v3764_v22, %v3997_v37  ;;  %v4016_v17 = vmul.f32 1.25, %v681_v5 }
  0xe1   : > { %v2912_v31 = vpop.eup %2911  ;;  %1097 = vadd.xlane.f32.xlu0 %v1080_v28  ;;  %v780_v42 = vsub.f32 %v2908_v23, %v2910_v40  ;;  %2923 = vtanh.f32 %v944_v21  ;;  %v2329_v21 = vadd.f32 -1.25, %v848_v55  ;;  %v2345_v23 = vadd.f32 -1.25, %v946_v24 }
  0xe2   : > { %v2914_v33 = vpop.eup %2913  ;;  %2925 = vtanh.f32 %v2343_v18  ;;  %v1044_v28 = vsub.f32 %v3767_v25, %v3997_v37  ;;  %v749_v37 = vsub.f32 %v3746_v8, %v4016_v17  ;;  %v896_v5 = vsub.f32 %v3752_v11, %v4016_v17 }
  0xe3   : > { %v2916_v44 = vpop.eup %2915  ;;  %v788_v45 = vadd.f32 %v780_v42, %v731_v26  ;;  %v829_v46 = vsub.f32 %v2912_v31, %v2914_v33  ;;  %2927 = vtanh.f32 %v993_v36  ;;  %v2337_v36 = vadd.f32 -1.25, %v897_v4 }
  0xe4   : > { %v2918_v47 = vpop.eup %2917  ;;  %2929 = vtanh.f32 %v2351_v29  ;;  %v2353_v31 = vadd.f32 -1.25, %v995_v38  ;;  %v700_v42 = vsub.f32 %v3744_v7, %v4016_v17 }
  0xe5   : > { %v2920_v50 = vpop.eup %2919  ;;  %v837_v51 = vadd.f32 %v829_v46, %v788_v45  ;;  %v878_v52 = vsub.f32 %v2916_v44, %v2918_v47  ;;  %2931 = vtanh.f32 %v1042_v39  ;;  %v2361_v44 = vadd.f32 -1.25, %v1044_v28 }
  0xe6   : > { %v2922_v53 = vpop.eup %2921  ;;  %2933 = vtanh.f32 %v2359_v43 }
  0xe7   : > { %v2924_v1 = vpop.eup %2923  ;;  %v886_v61 = vadd.f32 %v878_v52, %v837_v51  ;;  %v927_v63 = vsub.f32 %v2920_v50, %v2922_v53  ;;  %2935 = vtanh.f32 %v701_v41  ;;  %v798_v50 = vsub.f32 %v3748_v9, %v4016_v17 }
  0xe8   : > { %v2926_v0 = vpop.eup %2925  ;;  %2937 = vtanh.f32 %v2305_v48 }
  0xe9   : > { %v2928_v6 = vpop.eup %2927  ;;  %v935_v12 = vadd.f32 %v927_v63, %v886_v61  ;;  %v976_v13 = vsub.f32 %v2924_v1, %v2926_v0  ;;  %2939 = vtanh.f32 %v750_v35  ;;  %v847_v1 = vsub.f32 %v3750_v10, %v4016_v17 }
  0xea   : > { %v2930_v14 = vpop.eup %2929  ;;  %2941 = vtanh.f32 %v2313_v54 }
  0xeb   : > { %v2932_v27 = vpop.eup %2931  ;;  %v984_v30 = vadd.f32 %v976_v13, %v935_v12  ;;  %v1025_v32 = vsub.f32 %v2928_v6, %v2930_v14  ;;  %2943 = vtanh.f32 %v799_v49  ;;  %v2304_v49 = vadd.f32 -1.25, %v700_v42 }
  0xec   : > { %v2934_v34 = vpop.eup %2933  ;;  %2945 = vtanh.f32 %v2321_v2  ;;  %v683_v6 = vadd.f32 64.0, %v3895_v60 }
  0xed   : > { %v2936_v15 = vpop.eup %2935  ;;  %v1033_v20 = vadd.f32 %v1025_v32, %v984_v30  ;;  %v1074_v18 = vsub.f32 %v2932_v27, %v2934_v34  ;;  %2947 = vtanh.f32 %v848_v55  ;;  %v2312_v55 = vadd.f32 -1.25, %v749_v37 }
  0xee   : > { %v2938_v39 = vpop.eup %2937  ;;  %2949 = vtanh.f32 %v2329_v21  ;;  %v945_v27 = vsub.f32 %v3758_v16, %v4016_v17 }
  0xef   : > { %v2940_v26 = vpop.eup %2939  ;;  %v1082_v40 = vadd.f32 %v1074_v18, %v1033_v20  ;;  %v733_v29 = vsub.f32 %v2936_v15, %v2938_v39  ;;  %2951 = vtanh.f32 %v897_v4  ;;  %v2320_v4 = vadd.f32 -1.25, %v798_v50 }
  0xf0   : > { %v2942_v41 = vpop.eup %2941  ;;  %2953 = vtanh.f32 %v2337_v36  ;;  %v994_v15 = vsub.f32 %v3764_v22, %v4016_v17  ;;  %v4035_v20 = vmul.f32 1.25, %v683_v6 }
  0xf1   : > { %v2944_v33 = vpop.eup %2943  ;;  %1101 = vadd.xlane.f32.xlu2 %v1082_v40  ;;  %v782_v43 = vsub.f32 %v2940_v26, %v2942_v41  ;;  %2955 = vtanh.f32 %v946_v24  ;;  %v2328_v24 = vadd.f32 -1.25, %v847_v1  ;;  %v2344_v26 = vadd.f32 -1.25, %v945_v27 }
  0xf2   : > { %v2946_v35 = vpop.eup %2945  ;;  %2957 = vtanh.f32 %v2345_v23  ;;  %v1043_v40 = vsub.f32 %v3767_v25, %v4016_v17  ;;  %v751_v17 = vsub.f32 %v3746_v8, %v4035_v20 }
  0xf3   : > { %v2948_v45 = vpop.eup %2947  ;;  %v790_v46 = vadd.f32 %v782_v43, %v733_v29  ;;  %v831_v47 = vsub.f32 %v2944_v33, %v2946_v35  ;;  %2959 = vtanh.f32 %v995_v38  ;;  %v2336_v38 = vadd.f32 -1.25, %v896_v5 }
  0xf4   : > { %v2950_v48 = vpop.eup %2949  ;;  %2961 = vtanh.f32 %v2353_v31  ;;  %v2352_v33 = vadd.f32 -1.25, %v994_v15  ;;  %v702_v43 = vsub.f32 %v3744_v7, %v4035_v20 }
  0xf5   : > { %v2952_v51 = vpop.eup %2951  ;;  %v839_v52 = vadd.f32 %v831_v47, %v790_v46  ;;  %v880_v53 = vsub.f32 %v2948_v45, %v2950_v48  ;;  %2963 = vtanh.f32 %v1044_v28  ;;  %v2360_v45 = vadd.f32 -1.25, %v1043_v40 }
  0xf6   : > { %v2954_v54 = vpop.eup %2953  ;;  %2965 = vtanh.f32 %v2361_v44 }
  0xf7   : > { %v2956_v61 = vpop.eup %2955  ;;  %v888_v63 = vadd.f32 %v880_v53, %v839_v52  ;;  %v929_v0 = vsub.f32 %v2952_v51, %v2954_v54  ;;  %2967 = vtanh.f32 %v700_v42  ;;  %v800_v51 = vsub.f32 %v3748_v9, %v4035_v20 }
  0xf8   : > { %v2958_v2 = vpop.eup %2957  ;;  %2969 = vtanh.f32 %v2304_v49 }
  0xf9   : > { %v2960_v12 = vpop.eup %2959  ;;  %v937_v13 = vadd.f32 %v929_v0, %v888_v63  ;;  %v978_v14 = vsub.f32 %v2956_v61, %v2958_v2  ;;  %2971 = vtanh.f32 %v749_v37  ;;  %v2314_v61 = vadd.f32 -1.25, %v751_v17 }
  0xfa   : > { %v2962_v21 = vpop.eup %2961  ;;  %2973 = vtanh.f32 %v2312_v55  ;;  %v1143_v55 = vld [vmem:[%s138_s3] sm:$0xff]  ;;  %v849_v63 = vsub.f32 %v3750_v10, %v4035_v20 }
  0xfb   : > { %v2964_v30 = vpop.eup %2963  ;;  %v986_v32 = vadd.f32 %v978_v14, %v937_v13  ;;  %v1027_v34 = vsub.f32 %v2960_v12, %v2962_v21  ;;  %2975 = vtanh.f32 %v798_v50  ;;  %v2306_v50 = vadd.f32 -1.25, %v702_v43 }
  0xfc   : > { %v2966_v36 = vpop.eup %2965  ;;  %2977 = vtanh.f32 %v2320_v4  ;;  %v2322_v12 = vadd.f32 -1.25, %v800_v51  ;;  %v898_v13 = vsub.f32 %v3752_v11, %v4035_v20  ;;  %v4052_v14 = vmul.f32 320.0, %v1143_v55 }
  0xfd   : > { %v2968_v18 = vpop.eup %2967  ;;  %v1035_v39 = vadd.f32 %v1027_v34, %v986_v32  ;;  %v1076_v23 = vsub.f32 %v2964_v30, %v2966_v36  ;;  %2979 = vtanh.f32 %v847_v1  ;;  %v2330_v32 = vadd.f32 -1.25, %v849_v63 }
  0xfe   : > { %v2970_v28 = vpop.eup %2969  ;;  %2981 = vtanh.f32 %v2328_v24  ;;  %v947_v34 = vsub.f32 %v3758_v16, %v4035_v20 }
  0xff   : > { %v2972_v29 = vpop.eup %2971  ;;  %v1084_v41 = vadd.f32 %v1076_v23, %v1035_v39  ;;  %v732_v31 = vsub.f32 %v2968_v18, %v2970_v28  ;;  %2983 = vtanh.f32 %v896_v5  ;;  %v1127_v5 = vadd.f32 128.0, %v3761_v19 }
 0x100   : > { %v2974_v42 = vpop.eup %2973  ;;  %2985 = vtanh.f32 %v2336_v38  ;;  %v2338_v23 = vadd.f32 -1.25, %v898_v13  ;;  %v996_v28 = vsub.f32 %v3764_v22, %v4035_v20 }
 0x101   : > { %v2976_v35 = vpop.eup %2975  ;;  %1105 = vadd.xlane.f32.xlu1 %v1084_v41  ;;  %v781_v44 = vsub.f32 %v2972_v29, %v2974_v42  ;;  %2987 = vtanh.f32 %v945_v27  ;;  %v4056_v18 = vmul.f32 1.25, %v1127_v5  ;;  %v2346_v42 = vadd.f32 -1.25, %v947_v34 }
 0x102   : > { %v2978_v37 = vpop.eup %2977  ;;  %2989 = vtanh.f32 %v2344_v26  ;;  %v4061_v26 = vperm.slane %v4052_v14, 0 }
 0x103   : > { %v2980_v46 = vpop.eup %2979  ;;  %v789_v47 = vadd.f32 %v781_v44, %v732_v31  ;;  %v830_v48 = vsub.f32 %v2976_v35, %v2978_v37  ;;  %2991 = vtanh.f32 %v994_v15 }
 0x104   : > { %v2982_v49 = vpop.eup %2981  ;;  %2993 = vtanh.f32 %v2352_v33  ;;  %v1045_v33 = vsub.f32 %v3767_v25, %v4035_v20 }
 0x105   : > { %v2984_v52 = vpop.eup %2983  ;;  %v838_v53 = vadd.f32 %v830_v48, %v789_v47  ;;  %v879_v54 = vsub.f32 %v2980_v46, %v2982_v49  ;;  %2995 = vtanh.f32 %v1043_v40  ;;  %v1146_v46 = vsub.f32 %v4061_v26, %v4056_v18 }
 0x106   : > { %v2986_v1 = vpop.eup %2985  ;;  %2997 = vtanh.f32 %v2360_v45  ;;  %v4071_v47 = vperm.slane %v4052_v14, 2 }
 0x107   : > { %v2988_v0 = vpop.eup %2987  ;;  %v887_v2 = vadd.f32 %v879_v54, %v838_v53  ;;  %v928_v4 = vsub.f32 %v2984_v52, %v2986_v1  ;;  %2999 = vtanh.f32 %v702_v43  ;;  %v4066_v43 = vperm.slane %v4052_v14, 1 }
 0x108   : > { %v2990_v6 = vpop.eup %2989  ;;  %3001 = vtanh.f32 %v2306_v50  ;;  %v2362_v50 = vadd.f32 -1.25, %v1045_v33  ;;  %v4076_v52 = vperm.slane %v4052_v14, 3 }
 0x109   : > { %v2992_v21 = vpop.eup %2991  ;;  %v936_v24 = vadd.f32 %v928_v4, %v887_v2  ;;  %v977_v27 = vsub.f32 %v2988_v0, %v2990_v6  ;;  %3003 = vtanh.f32 %v751_v17  ;;  %v2354_v17 = vadd.f32 -1.25, %v996_v28 }
 0x10a   : > { %v2994_v30 = vpop.eup %2993  ;;  %3005 = vtanh.f32 %v2314_v61  ;;  %v2364_v61 = vadd.f32 -1.25, %v1146_v46  ;;  %v4081_v0 = vperm.slane %v4052_v14, 4 }
 0x10b   : > { %v2996_v36 = vpop.eup %2995  ;;  %v985_v38 = vadd.f32 %v977_v27, %v936_v24  ;;  %v1026_v15 = vsub.f32 %v2992_v21, %v2994_v30  ;;  %3007 = vtanh.f32 %v800_v51  ;;  %v1195_v51 = vsub.f32 %v4066_v43, %v4056_v18 }
 0x10c   : > { %v2998_v39 = vpop.eup %2997  ;;  %3009 = vtanh.f32 %v2322_v12  ;;  %v4086_v21 = vperm.slane %v4052_v14, 5 }
 0x10d   : > { %v3000_v40 = vpop.eup %2999  ;;  %v1034_v29 = vadd.f32 %v1026_v15, %v985_v38  ;;  %v1075_v41 = vsub.f32 %v2996_v36, %v2998_v39  ;;  %3011 = vtanh.f32 %v849_v63  ;;  %v1244_v63 = vsub.f32 %v4071_v47, %v4056_v18 }
 0x10e   : > { %v3002_v31 = vpop.eup %3001  ;;  %3013 = vtanh.f32 %v2330_v32  ;;  %v2372_v12 = vadd.f32 -1.25, %v1195_v51  ;;  %v684_v32 = vadd.f32 64.0, %v3873_v58  ;;  %v1342_v38 = vsub.f32 %v4081_v0, %v4056_v18 }
 0x10f   : > { %v3004_v35 = vpop.eup %3003  ;;  %v1083_v44 = vadd.f32 %v1075_v41, %v1034_v29  ;;  %v734_v37 = vsub.f32 %v3000_v40, %v3002_v31  ;;  %3015 = vtanh.f32 %v898_v13  ;;  %v1293_v13 = vsub.f32 %v4076_v52, %v4056_v18 }
 0x110   : > { %v3006_v45 = vpop.eup %3005  ;;  %3017 = vtanh.f32 %v2338_v23  ;;  %v2380_v36 = vadd.f32 -1.25, %v1244_v63  ;;  %v4092_v15 = vperm.slane %v4052_v14, 6  ;;  %v1391_v41 = vsub.f32 %v4086_v21, %v4056_v18 }
 0x111   : > { %v3008_v48 = vpop.eup %3007  ;;  %1103 = vadd.xlane.f32.xlu0 %v1083_v44  ;;  %v783_v49 = vsub.f32 %v3004_v35, %v3006_v45  ;;  %3019 = vtanh.f32 %v947_v34  ;;  %v2388_v29 = vadd.f32 -1.25, %v1293_v13  ;;  %v4097_v31 = vperm.slane %v4052_v14, 7 }
 0x112   : > { %v3010_v20 = vpop.eup %3009  ;;  %3021 = vtanh.f32 %v2346_v42  ;;  %v1440_v45 = vsub.f32 %v4092_v15, %v4056_v18  ;;  %v2404_v14 = vadd.f32 -1.25, %v1391_v41 }
 0x113   : > { %v3012_v53 = vpop.eup %3011  ;;  %v791_v54 = vadd.f32 %v783_v49, %v734_v37  ;;  %v832_v55 = vsub.f32 %v3008_v48, %v3010_v20  ;;  %3023 = vtanh.f32 %v996_v28  ;;  %v2396_v37 = vadd.f32 -1.25, %v1342_v38 }
 0x114   : > { %v3014_v1 = vpop.eup %3013  ;;  %3025 = vtanh.f32 %v2354_v17  ;;  %v4101_v17 = vmul.f32 1.25, %v684_v32 }
 0x115   : > { %v3016_v2 = vpop.eup %3015  ;;  %v840_v4 = vadd.f32 %v832_v55, %v791_v54  ;;  %v881_v5 = vsub.f32 %v3012_v53, %v3014_v1  ;;  %3027 = vtanh.f32 %v1045_v33  ;;  %v2412_v1 = vadd.f32 -1.25, %v1440_v45 }
 0x116   : > { %v3018_v6 = vpop.eup %3017  ;;  %3029 = vtanh.f32 %v2362_v50  ;;  %v1489_v50 = vsub.f32 %v4097_v31, %v4056_v18  ;;  %v752_v18 = vsub.f32 %v3746_v8, %v4101_v17  ;;  %v850_v8 = vsub.f32 %v3750_v10, %v4101_v17 }
 0x117   : > { %v3020_v24 = vpop.eup %3019  ;;  %v889_v27 = vadd.f32 %v881_v5, %v840_v4  ;;  %v930_v30 = vsub.f32 %v3016_v2, %v3018_v6  ;;  %3031 = vtanh.f32 %v1146_v46  ;;  %v948_v10 = vsub.f32 %v3758_v16, %v4101_v17 }
 0x118   : > { %v3022_v34 = vpop.eup %3021  ;;  %3033 = vtanh.f32 %v2364_v61  ;;  %v703_v61 = vsub.f32 %v3744_v7, %v4101_v17  ;;  %v2420_v5 = vadd.f32 -1.25, %v1489_v50  ;;  %v801_v7 = vsub.f32 %v3748_v9, %v4101_v17 }
 0x119   : > { %v3024_v39 = vpop.eup %3023  ;;  %v938_v23 = vadd.f32 %v930_v30, %v889_v27  ;;  %v979_v28 = vsub.f32 %v3020_v24, %v3022_v34  ;;  %3035 = vtanh.f32 %v1195_v51  ;;  %v899_v9 = vsub.f32 %v3752_v11, %v4101_v17 }
 0x11a   : > { %v3026_v40 = vpop.eup %3025  ;;  %3037 = vtanh.f32 %v2372_v12  ;;  %v2307_v27 = vadd.f32 -1.25, %v703_v61  ;;  %v997_v11 = vsub.f32 %v3764_v22, %v4101_v17  ;;  %v1046_v16 = vsub.f32 %v3767_v25, %v4101_v17 }
 0x11b   : > { %v3028_v42 = vpop.eup %3027  ;;  %v987_v33 = vadd.f32 %v979_v28, %v938_v23  ;;  %v1028_v35 = vsub.f32 %v3024_v39, %v3026_v40  ;;  %3039 = vtanh.f32 %v1244_v63 }
 0x11c   : > { %v3030_v44 = vpop.eup %3029  ;;  %3041 = vtanh.f32 %v2380_v36 }
 0x11d   : > { %v3032_v46 = vpop.eup %3031  ;;  %v1036_v48 = vadd.f32 %v1028_v35, %v987_v33  ;;  %v1077_v49 = vsub.f32 %v3028_v42, %v3030_v44  ;;  %3043 = vtanh.f32 %v1293_v13 }
 0x11e   : > { %v3034_v20 = vpop.eup %3033  ;;  %3045 = vtanh.f32 %v2388_v29  ;;  %v2323_v29 = vadd.f32 -1.25, %v801_v7 }
 0x11f   : > { %v3036_v51 = vpop.eup %3035  ;;  %v1085_v53 = vadd.f32 %v1077_v49, %v1036_v48  ;;  %v1178_v54 = vsub.f32 %v3032_v46, %v3034_v20  ;;  %3047 = vtanh.f32 %v1342_v38  ;;  %v2315_v38 = vadd.f32 -1.25, %v752_v18 }
 0x120   : > { %v3038_v55 = vpop.eup %3037  ;;  %3049 = vtanh.f32 %v2396_v37  ;;  %v2331_v37 = vadd.f32 -1.25, %v850_v8  ;;  %v2339_v20 = vadd.f32 -1.25, %v899_v9 }
 0x121   : > { %v3040_v63 = vpop.eup %3039  ;;  %1107 = vadd.xlane.f32.xlu2 %v1085_v53  ;;  %v1227_v2 = vsub.f32 %v3036_v51, %v3038_v55  ;;  %3051 = vtanh.f32 %v1391_v41  ;;  %v1128_v41 = vadd.f32 128.0, %v3829_v57  ;;  %v2347_v55 = vadd.f32 -1.25, %v948_v10 }
 0x122   : > { %v3042_v4 = vpop.eup %3041  ;;  %3053 = vtanh.f32 %v2404_v14 }
 0x123   : > { %v3044_v6 = vpop.eup %3043  ;;  %v1235_v12 = vadd.f32 %v1227_v2, %v1178_v54  ;;  %v1276_v13 = vsub.f32 %v3040_v63, %v3042_v4  ;;  %3055 = vtanh.f32 %v1440_v45  ;;  %v4120_v14 = vmul.f32 1.25, %v1128_v41 }
 0x124   : > { %v3046_v24 = vpop.eup %3045  ;;  %3057 = vtanh.f32 %v2412_v1  ;;  %v2355_v4 = vadd.f32 -1.25, %v997_v11 }
 0x125   : > { %v3048_v30 = vpop.eup %3047  ;;  %v1284_v32 = vadd.f32 %v1276_v13, %v1235_v12  ;;  %v1325_v34 = vsub.f32 %v3044_v6, %v3046_v24  ;;  %3059 = vtanh.f32 %v1489_v50  ;;  %v1147_v22 = vsub.f32 %v4061_v26, %v4120_v14 }
 0x126   : > { %v3050_v36 = vpop.eup %3049  ;;  %3061 = vtanh.f32 %v2420_v5  ;;  %v2363_v12 = vadd.f32 -1.25, %v1046_v16  ;;  %v1196_v25 = vsub.f32 %v4066_v43, %v4120_v14  ;;  %v1343_v41 = vsub.f32 %v4081_v0, %v4120_v14 }
 0x127   : > { %v3052_v39 = vpop.eup %3051  ;;  %v1333_v23 = vadd.f32 %v1325_v34, %v1284_v32  ;;  %v1374_v28 = vsub.f32 %v3048_v30, %v3050_v36  ;;  %3063 = vtanh.f32 %v703_v61  ;;  %v1245_v30 = vsub.f32 %v4071_v47, %v4120_v14 }
 0x128   : > { %v3054_v40 = vpop.eup %3053  ;;  %3065 = vtanh.f32 %v2307_v27 }
 0x129   : > { %v3056_v42 = vpop.eup %3055  ;;  %v1382_v33 = vadd.f32 %v1374_v28, %v1333_v23  ;;  %v1423_v35 = vsub.f32 %v3052_v39, %v3054_v40  ;;  %3067 = vtanh.f32 %v752_v18  ;;  %v1294_v39 = vsub.f32 %v4076_v52, %v4120_v14 }
 0x12a   : > { %v3058_v44 = vpop.eup %3057  ;;  %3069 = vtanh.f32 %v2315_v38 }
 0x12b   : > { %v3060_v45 = vpop.eup %3059  ;;  %v1431_v46 = vadd.f32 %v1423_v35, %v1382_v33  ;;  %v1472_v48 = vsub.f32 %v3056_v42, %v3058_v44  ;;  %3071 = vtanh.f32 %v801_v7  ;;  %v2365_v7 = vadd.f32 -1.25, %v1147_v22 }
 0x12c   : > { %v3062_v49 = vpop.eup %3061  ;;  %3073 = vtanh.f32 %v2323_v29  ;;  %v1130_v42 = vadd.f32 128.0, %v3807_v59 }
 0x12d   : > { %v3064_v50 = vpop.eup %3063  ;;  %v1480_v51 = vadd.f32 %v1472_v48, %v1431_v46  ;;  %v1521_v53 = vsub.f32 %v3060_v45, %v3062_v49  ;;  %3075 = vtanh.f32 %v850_v8  ;;  %v2373_v8 = vadd.f32 -1.25, %v1196_v25 }
 0x12e   : > { %v3066_v54 = vpop.eup %3065  ;;  %3077 = vtanh.f32 %v2331_v37  ;;  %v1392_v45 = vsub.f32 %v4086_v21, %v4120_v14 }
 0x12f   : > { %v3068_v1 = vpop.eup %3067  ;;  %v1529_v61 = vadd.f32 %v1521_v53, %v1480_v51  ;;  %v735_v63 = vsub.f32 %v3064_v50, %v3066_v54  ;;  %3079 = vtanh.f32 %v899_v9  ;;  %v2381_v9 = vadd.f32 -1.25, %v1245_v30 }
 0x130   : > { %v3070_v2 = vpop.eup %3069  ;;  %3081 = vtanh.f32 %v2339_v20  ;;  %v1441_v50 = vsub.f32 %v4092_v15, %v4120_v14  ;;  %v4139_v51 = vmul.f32 1.25, %v1130_v42 }
 0x131   : > { %v3072_v5 = vpop.eup %3071  ;;  %1545 = vadd.xlane.f32.xlu1 %v1529_v61  ;;  %v784_v18 = vsub.f32 %v3068_v1, %v3070_v2  ;;  %3083 = vtanh.f32 %v948_v10  ;;  %v2389_v10 = vadd.f32 -1.25, %v1294_v39  ;;  %v2405_v1 = vadd.f32 -1.25, %v1392_v45 }
 0x132   : > { %v3074_v6 = vpop.eup %3073  ;;  %3085 = vtanh.f32 %v2347_v55  ;;  %v1490_v61 = vsub.f32 %v4097_v31, %v4120_v14  ;;  %v1198_v14 = vsub.f32 %v4066_v43, %v4139_v51  ;;  %v1345_v42 = vsub.f32 %v4081_v0, %v4139_v51 }
 0x133   : > { %v3076_v17 = vpop.eup %3075  ;;  %v792_v13 = vadd.f32 %v784_v18, %v735_v63  ;;  %v833_v24 = vsub.f32 %v3072_v5, %v3074_v6  ;;  %3087 = vtanh.f32 %v997_v11  ;;  %v2397_v11 = vadd.f32 -1.25, %v1343_v41 }
 0x134   : > { %v3078_v27 = vpop.eup %3077  ;;  %3089 = vtanh.f32 %v2355_v4  ;;  %v2413_v5 = vadd.f32 -1.25, %v1441_v50  ;;  %v1149_v18 = vsub.f32 %v4061_v26, %v4139_v51 }
 0x135   : > { %v3080_v32 = vpop.eup %3079  ;;  %v841_v34 = vadd.f32 %v833_v24, %v792_v13  ;;  %v882_v36 = vsub.f32 %v3076_v17, %v3078_v27  ;;  %3091 = vtanh.f32 %v1046_v16  ;;  %v2421_v17 = vadd.f32 -1.25, %v1490_v61 }
 0x136   : > { %v3082_v38 = vpop.eup %3081  ;;  %3093 = vtanh.f32 %v2363_v12 }
 0x137   : > { %v3084_v23 = vpop.eup %3083  ;;  %v890_v28 = vadd.f32 %v882_v36, %v841_v34  ;;  %v931_v40 = vsub.f32 %v3080_v32, %v3082_v38  ;;  %3095 = vtanh.f32 %v1147_v22  ;;  %v1247_v32 = vsub.f32 %v4071_v47, %v4139_v51 }
 0x138   : > { %v3086_v29 = vpop.eup %3085  ;;  %3097 = vtanh.f32 %v2365_v7 }
 0x139   : > { %v3088_v33 = vpop.eup %3087  ;;  %v939_v35 = vadd.f32 %v931_v40, %v890_v28  ;;  %v980_v44 = vsub.f32 %v3084_v23, %v3086_v29  ;;  %3099 = vtanh.f32 %v1196_v25  ;;  %v1296_v23 = vsub.f32 %v4076_v52, %v4139_v51 }
 0x13a   : > { %v3090_v37 = vpop.eup %3089  ;;  %3101 = vtanh.f32 %v2373_v8 }
 0x13b   : > { %v3092_v46 = vpop.eup %3091  ;;  %v988_v48 = vadd.f32 %v980_v44, %v939_v35  ;;  %v1029_v49 = vsub.f32 %v3088_v33, %v3090_v37  ;;  %3103 = vtanh.f32 %v1245_v30  ;;  %v2367_v30 = vadd.f32 -1.25, %v1149_v18 }
 0x13c   : > { %v3094_v20 = vpop.eup %3093  ;;  %3105 = vtanh.f32 %v2381_v9  ;;  %v1129_v33 = vadd.f32 128.0, %v3739_v3 }
 0x13d   : > { %v3096_v53 = vpop.eup %3095  ;;  %v1037_v54 = vadd.f32 %v1029_v49, %v988_v48  ;;  %v1078_v55 = vsub.f32 %v3092_v46, %v3094_v20  ;;  %3107 = vtanh.f32 %v1294_v39  ;;  %v2375_v39 = vadd.f32 -1.25, %v1198_v14 }
 0x13e   : > { %v3098_v16 = vpop.eup %3097  ;;  %3109 = vtanh.f32 %v2389_v10  ;;  %v1394_v46 = vsub.f32 %v4086_v21, %v4139_v51 }
 0x13f   : > { %v3100_v63 = vpop.eup %3099  ;;  %v1086_v2 = vadd.f32 %v1078_v55, %v1037_v54  ;;  %v1179_v4 = vsub.f32 %v3096_v53, %v3098_v16  ;;  %3111 = vtanh.f32 %v1343_v41  ;;  %v2383_v41 = vadd.f32 -1.25, %v1247_v32 }
 0x140   : > { %v3102_v22 = vpop.eup %3101  ;;  %3113 = vtanh.f32 %v2397_v11  ;;  %v1443_v53 = vsub.f32 %v4092_v15, %v4139_v51  ;;  %v4158_v54 = vmul.f32 1.25, %v1129_v33 }
 0x141   : > { %v3104_v6 = vpop.eup %3103  ;;  %1109 = vadd.xlane.f32.xlu0 %v1086_v2  ;;  %v1228_v12 = vsub.f32 %v3100_v63, %v3102_v22  ;;  %3115 = vtanh.f32 %v1392_v45  ;;  %v2391_v45 = vadd.f32 -1.25, %v1296_v23  ;;  %v2407_v63 = vadd.f32 -1.25, %v1394_v46 }
 0x142   : > { %v3106_v25 = vpop.eup %3105  ;;  %3117 = vtanh.f32 %v2405_v1  ;;  %v1492_v2 = vsub.f32 %v4097_v31, %v4139_v51  ;;  %v1197_v51 = vsub.f32 %v4066_v43, %v4158_v54  ;;  %v1344_v33 = vsub.f32 %v4081_v0, %v4158_v54 }
 0x143   : > { %v3108_v13 = vpop.eup %3107  ;;  %v1236_v24 = vadd.f32 %v1228_v12, %v1179_v4  ;;  %v1277_v27 = vsub.f32 %v3104_v6, %v3106_v25  ;;  %3119 = vtanh.f32 %v1441_v50  ;;  %v2399_v50 = vadd.f32 -1.25, %v1345_v42 }
 0x144   : > { %v3110_v7 = vpop.eup %3109  ;;  %3121 = vtanh.f32 %v2413_v5  ;;  %v2415_v6 = vadd.f32 -1.25, %v1443_v53  ;;  %v1148_v12 = vsub.f32 %v4061_v26, %v4158_v54 }
 0x145   : > { %v3112_v34 = vpop.eup %3111  ;;  %v1285_v36 = vadd.f32 %v1277_v27, %v1236_v24  ;;  %v1326_v38 = vsub.f32 %v3108_v13, %v3110_v7  ;;  %3123 = vtanh.f32 %v1490_v61  ;;  %v2423_v13 = vadd.f32 -1.25, %v1492_v2 }
 0x146   : > { %v3114_v8 = vpop.eup %3113  ;;  %3125 = vtanh.f32 %v2421_v17 }
 0x147   : > { %v3116_v28 = vpop.eup %3115  ;;  %v1334_v40 = vadd.f32 %v1326_v38, %v1285_v36  ;;  %v1375_v29 = vsub.f32 %v3112_v34, %v3114_v8  ;;  %3127 = vtanh.f32 %v1149_v18  ;;  %v1246_v34 = vsub.f32 %v4071_v47, %v4158_v54 }
 0x148   : > { %v3118_v9 = vpop.eup %3117  ;;  %3129 = vtanh.f32 %v2367_v30 }
 0x149   : > { %v3120_v35 = vpop.eup %3119  ;;  %v1383_v44 = vadd.f32 %v1375_v29, %v1334_v40  ;;  %v1424_v37 = vsub.f32 %v3116_v28, %v3118_v9  ;;  %3131 = vtanh.f32 %v1198_v14  ;;  %v1295_v28 = vsub.f32 %v4076_v52, %v4158_v54 }
 0x14a   : > { %v3122_v10 = vpop.eup %3121  ;;  %3133 = vtanh.f32 %v2375_v39 }
 0x14b   : > { %v3124_v48 = vpop.eup %3123  ;;  %v1432_v49 = vadd.f32 %v1424_v37, %v1383_v44  ;;  %v1473_v20 = vsub.f32 %v3120_v35, %v3122_v10  ;;  %3135 = vtanh.f32 %v1247_v32  ;;  %v2366_v32 = vadd.f32 -1.25, %v1148_v12 }
 0x14c   : > { %v3126_v11 = vpop.eup %3125  ;;  %3137 = vtanh.f32 %v2383_v41  ;;  %v1131_v35 = vadd.f32 128.0, %v3785_v62 }
 0x14d   : > { %v3128_v55 = vpop.eup %3127  ;;  %v1481_v16 = vadd.f32 %v1473_v20, %v1432_v49  ;;  %v1522_v1 = vsub.f32 %v3124_v48, %v3126_v11  ;;  %3139 = vtanh.f32 %v1296_v23  ;;  %v2374_v23 = vadd.f32 -1.25, %v1197_v51 }
 0x14e   : > { %v3130_v61 = vpop.eup %3129  ;;  %3141 = vtanh.f32 %v2391_v45  ;;  %v1393_v48 = vsub.f32 %v4086_v21, %v4158_v54 }
 0x14f   : > { %v3132_v4 = vpop.eup %3131  ;;  %v1530_v22 = vadd.f32 %v1522_v1, %v1481_v16  ;;  %v1181_v5 = vsub.f32 %v3128_v55, %v3130_v61  ;;  %3143 = vtanh.f32 %v1345_v42  ;;  %v2382_v42 = vadd.f32 -1.25, %v1246_v34 }
 0x150   : > { %v3134_v18 = vpop.eup %3133  ;;  %3145 = vtanh.f32 %v2399_v50  ;;  %v1442_v55 = vsub.f32 %v4092_v15, %v4158_v54  ;;  %v4177_v16 = vmul.f32 1.25, %v1131_v35 }
 0x151   : > { %v3136_v25 = vpop.eup %3135  ;;  %1547 = vadd.xlane.f32.xlu2 %v1530_v22  ;;  %v1230_v17 = vsub.f32 %v3132_v4, %v3134_v18  ;;  %3147 = vtanh.f32 %v1394_v46  ;;  %v2390_v46 = vadd.f32 -1.25, %v1295_v28  ;;  %v2406_v4 = vadd.f32 -1.25, %v1393_v48 }
 0x152   : > { %v3138_v14 = vpop.eup %3137  ;;  %3149 = vtanh.f32 %v2407_v63  ;;  %v1491_v22 = vsub.f32 %v4097_v31, %v4158_v54  ;;  %v1199_v54 = vsub.f32 %v4066_v43, %v4177_v16  ;;  %v1346_v35 = vsub.f32 %v4081_v0, %v4177_v16 }
 0x153   : > { %v3140_v24 = vpop.eup %3139  ;;  %v1238_v27 = vadd.f32 %v1230_v17, %v1181_v5  ;;  %v1279_v7 = vsub.f32 %v3136_v25, %v3138_v14  ;;  %3151 = vtanh.f32 %v1443_v53  ;;  %v2398_v53 = vadd.f32 -1.25, %v1344_v33 }
 0x154   : > { %v3142_v30 = vpop.eup %3141  ;;  %3153 = vtanh.f32 %v2415_v6  ;;  %v2414_v25 = vadd.f32 -1.25, %v1442_v55  ;;  %v1150_v17 = vsub.f32 %v4061_v26, %v4177_v16 }
 0x155   : > { %v3144_v36 = vpop.eup %3143  ;;  %v1287_v38 = vadd.f32 %v1279_v7, %v1238_v27  ;;  %v1328_v8 = vsub.f32 %v3140_v24, %v3142_v30  ;;  %3155 = vtanh.f32 %v1492_v2  ;;  %v2422_v24 = vadd.f32 -1.25, %v1491_v22 }
 0x156   : > { %v3146_v39 = vpop.eup %3145  ;;  %3157 = vtanh.f32 %v2423_v13 }
 0x157   : > { %v3148_v40 = vpop.eup %3147  ;;  %v1336_v29 = vadd.f32 %v1328_v8, %v1287_v38  ;;  %v1377_v9 = vsub.f32 %v3144_v36, %v3146_v39  ;;  %3159 = vtanh.f32 %v1148_v12  ;;  %v1248_v36 = vsub.f32 %v4071_v47, %v4177_v16 }
 0x158   : > { %v3150_v41 = vpop.eup %3149  ;;  %3161 = vtanh.f32 %v2366_v32 }
 0x159   : > { %v3152_v44 = vpop.eup %3151  ;;  %v1385_v37 = vadd.f32 %v1377_v9, %v1336_v29  ;;  %v1426_v10 = vsub.f32 %v3148_v40, %v3150_v41  ;;  %3163 = vtanh.f32 %v1197_v51  ;;  %v1297_v40 = vsub.f32 %v4076_v52, %v4177_v16 }
 0x15a   : > { %v3154_v45 = vpop.eup %3153  ;;  %3165 = vtanh.f32 %v2374_v23 }
 0x15b   : > { %v3156_v49 = vpop.eup %3155  ;;  %v1434_v20 = vadd.f32 %v1426_v10, %v1385_v37  ;;  %v1475_v11 = vsub.f32 %v3152_v44, %v3154_v45  ;;  %3167 = vtanh.f32 %v1246_v34  ;;  %v2368_v34 = vadd.f32 -1.25, %v1150_v17 }
 0x15c   : > { %v3158_v50 = vpop.eup %3157  ;;  %3169 = vtanh.f32 %v2382_v42  ;;  %v1133_v44 = vadd.f32 128.0, %v3895_v60 }
 0x15d   : > { %v3160_v1 = vpop.eup %3159  ;;  %v1483_v61 = vadd.f32 %v1475_v11, %v1434_v20  ;;  %v1524_v63 = vsub.f32 %v3156_v49, %v3158_v50  ;;  %3171 = vtanh.f32 %v1295_v28  ;;  %v2376_v28 = vadd.f32 -1.25, %v1199_v54 }
 0x15e   : > { %v3162_v2 = vpop.eup %3161  ;;  %3173 = vtanh.f32 %v2390_v46  ;;  %v1395_v49 = vsub.f32 %v4086_v21, %v4177_v16 }
 0x15f   : > { %v3164_v5 = vpop.eup %3163  ;;  %v1532_v18 = vadd.f32 %v1524_v63, %v1483_v61  ;;  %v1180_v6 = vsub.f32 %v3160_v1, %v3162_v2  ;;  %3175 = vtanh.f32 %v1344_v33  ;;  %v2384_v33 = vadd.f32 -1.25, %v1248_v36 }
 0x160   : > { %v3166_v12 = vpop.eup %3165  ;;  %3177 = vtanh.f32 %v2398_v53  ;;  %v1444_v1 = vsub.f32 %v4092_v15, %v4177_v16  ;;  %v4196_v61 = vmul.f32 1.25, %v1133_v44 }
 0x161   : > { %v3168_v14 = vpop.eup %3167  ;;  %1551 = vadd.xlane.f32.xlu1 %v1532_v18  ;;  %v1229_v13 = vsub.f32 %v3164_v5, %v3166_v12  ;;  %3179 = vtanh.f32 %v1393_v48  ;;  %v2392_v48 = vadd.f32 -1.25, %v1297_v40  ;;  %v2408_v5 = vadd.f32 -1.25, %v1395_v49 }
 0x162   : > { %v3170_v51 = vpop.eup %3169  ;;  %3181 = vtanh.f32 %v2406_v4  ;;  %v1493_v18 = vsub.f32 %v4097_v31, %v4177_v16  ;;  %v1201_v16 = vsub.f32 %v4066_v43, %v4196_v61  ;;  %v1348_v44 = vsub.f32 %v4081_v0, %v4196_v61 }
 0x163   : > { %v3172_v27 = vpop.eup %3171  ;;  %v1237_v7 = vadd.f32 %v1229_v13, %v1180_v6  ;;  %v1278_v30 = vsub.f32 %v3168_v14, %v3170_v51  ;;  %3183 = vtanh.f32 %v1442_v55  ;;  %v2400_v55 = vadd.f32 -1.25, %v1346_v35 }
 0x164   : > { %v3174_v32 = vpop.eup %3173  ;;  %3185 = vtanh.f32 %v2414_v25  ;;  %v2416_v14 = vadd.f32 -1.25, %v1444_v1  ;;  %v1152_v13 = vsub.f32 %v4061_v26, %v4196_v61 }
 0x165   : > { %v3176_v38 = vpop.eup %3175  ;;  %v1286_v8 = vadd.f32 %v1278_v30, %v1237_v7  ;;  %v1327_v39 = vsub.f32 %v3172_v27, %v3174_v32  ;;  %3187 = vtanh.f32 %v1491_v22  ;;  %v2424_v27 = vadd.f32 -1.25, %v1493_v18 }
 0x166   : > { %v3178_v23 = vpop.eup %3177  ;;  %3189 = vtanh.f32 %v2422_v24 }
 0x167   : > { %v3180_v29 = vpop.eup %3179  ;;  %v1335_v9 = vadd.f32 %v1327_v39, %v1286_v8  ;;  %v1376_v41 = vsub.f32 %v3176_v38, %v3178_v23  ;;  %3191 = vtanh.f32 %v1150_v17  ;;  %v1250_v38 = vsub.f32 %v4071_v47, %v4196_v61 }
 0x168   : > { %v3182_v42 = vpop.eup %3181  ;;  %3193 = vtanh.f32 %v2368_v34 }
 0x169   : > { %v3184_v37 = vpop.eup %3183  ;;  %v1384_v10 = vadd.f32 %v1376_v41, %v1335_v9  ;;  %v1425_v45 = vsub.f32 %v3180_v29, %v3182_v42  ;;  %3195 = vtanh.f32 %v1199_v54  ;;  %v1299_v29 = vsub.f32 %v4076_v52, %v4196_v61 }
 0x16a   : > { %v3186_v46 = vpop.eup %3185  ;;  %3197 = vtanh.f32 %v2376_v28 }
 0x16b   : > { %v3188_v20 = vpop.eup %3187  ;;  %v1433_v11 = vadd.f32 %v1425_v45, %v1384_v10  ;;  %v1474_v50 = vsub.f32 %v3184_v37, %v3186_v46  ;;  %3199 = vtanh.f32 %v1248_v36  ;;  %v2370_v36 = vadd.f32 -1.25, %v1152_v13 }
 0x16c   : > { %v3190_v53 = vpop.eup %3189  ;;  %3201 = vtanh.f32 %v2384_v33  ;;  %v1132_v37 = vadd.f32 128.0, %v3851_v56 }
 0x16d   : > { %v3192_v63 = vpop.eup %3191  ;;  %v1482_v2 = vadd.f32 %v1474_v50, %v1433_v11  ;;  %v1523_v4 = vsub.f32 %v3188_v20, %v3190_v53  ;;  %3203 = vtanh.f32 %v1297_v40  ;;  %v2378_v40 = vadd.f32 -1.25, %v1201_v16 }
 0x16e   : > { %v3194_v22 = vpop.eup %3193  ;;  %3205 = vtanh.f32 %v2392_v48  ;;  %v1397_v20 = vsub.f32 %v4086_v21, %v4196_v61 }
 0x16f   : > { %v3196_v6 = vpop.eup %3195  ;;  %v1531_v12 = vadd.f32 %v1523_v4, %v1482_v2  ;;  %v1182_v25 = vsub.f32 %v3192_v63, %v3194_v22  ;;  %3207 = vtanh.f32 %v1346_v35  ;;  %v2386_v35 = vadd.f32 -1.25, %v1250_v38 }
 0x170   : > { %v3198_v17 = vpop.eup %3197  ;;  %3209 = vtanh.f32 %v2400_v55  ;;  %v1446_v63 = vsub.f32 %v4092_v15, %v4196_v61  ;;  %v4215_v2 = vmul.f32 1.25, %v1132_v37 }
 0x171   : > { %v3200_v51 = vpop.eup %3199  ;;  %1549 = vadd.xlane.f32.xlu0 %v1531_v12  ;;  %v1231_v24 = vsub.f32 %v3196_v6, %v3198_v17  ;;  %3211 = vtanh.f32 %v1395_v49  ;;  %v2394_v49 = vadd.f32 -1.25, %v1299_v29  ;;  %v2410_v6 = vadd.f32 -1.25, %v1397_v20 }
 0x172   : > { %v3202_v54 = vpop.eup %3201  ;;  %3213 = vtanh.f32 %v2408_v5  ;;  %v1495_v12 = vsub.f32 %v4097_v31, %v4196_v61  ;;  %v1200_v61 = vsub.f32 %v4066_v43, %v4215_v2  ;;  %v1347_v37 = vsub.f32 %v4081_v0, %v4215_v2 }
 0x173   : > { %v3204_v7 = vpop.eup %3203  ;;  %v1239_v30 = vadd.f32 %v1231_v24, %v1182_v25  ;;  %v1280_v32 = vsub.f32 %v3200_v51, %v3202_v54  ;;  %3215 = vtanh.f32 %v1444_v1  ;;  %v2402_v1 = vadd.f32 -1.25, %v1348_v44 }
 0x174   : > { %v3206_v34 = vpop.eup %3205  ;;  %3217 = vtanh.f32 %v2416_v14  ;;  %v2418_v51 = vadd.f32 -1.25, %v1446_v63  ;;  %v1151_v24 = vsub.f32 %v4061_v26, %v4215_v2 }
 0x175   : > { %v3208_v8 = vpop.eup %3207  ;;  %v1288_v39 = vadd.f32 %v1280_v32, %v1239_v30  ;;  %v1329_v23 = vsub.f32 %v3204_v7, %v3206_v34  ;;  %3219 = vtanh.f32 %v1493_v18  ;;  %v2426_v7 = vadd.f32 -1.25, %v1495_v12 }
 0x176   : > { %v3210_v28 = vpop.eup %3209  ;;  %3221 = vtanh.f32 %v2424_v27 }
 0x177   : > { %v3212_v9 = vpop.eup %3211  ;;  %v1337_v41 = vadd.f32 %v1329_v23, %v1288_v39  ;;  %v1378_v42 = vsub.f32 %v3208_v8, %v3210_v28  ;;  %3223 = vtanh.f32 %v1152_v13  ;;  %v1249_v8 = vsub.f32 %v4071_v47, %v4215_v2 }
 0x178   : > { %v3214_v33 = vpop.eup %3213  ;;  %3225 = vtanh.f32 %v2370_v36 }
 0x179   : > { %v3216_v10 = vpop.eup %3215  ;;  %v1386_v45 = vadd.f32 %v1378_v42, %v1337_v41  ;;  %v1427_v46 = vsub.f32 %v3212_v9, %v3214_v33  ;;  %3227 = vtanh.f32 %v1201_v16  ;;  %v1298_v9 = vsub.f32 %v4076_v52, %v4215_v2 }
 0x17a   : > { %v3218_v48 = vpop.eup %3217  ;;  %3229 = vtanh.f32 %v2378_v40 }
 0x17b   : > { %v3220_v11 = vpop.eup %3219  ;;  %v1435_v50 = vadd.f32 %v1427_v46, %v1386_v45  ;;  %v1476_v53 = vsub.f32 %v3216_v10, %v3218_v48  ;;  %3231 = vtanh.f32 %v1250_v38  ;;  %v2369_v38 = vadd.f32 -1.25, %v1151_v24 }
 0x17c   : > { %v3222_v55 = vpop.eup %3221  ;;  %3233 = vtanh.f32 %v2386_v35  ;;  %v1134_v10 = vadd.f32 128.0, %v3873_v58 }
 0x17d   : > { %v3224_v4 = vpop.eup %3223  ;;  %v1484_v22 = vadd.f32 %v1476_v53, %v1435_v50  ;;  %v1525_v5 = vsub.f32 %v3220_v11, %v3222_v55  ;;  %3235 = vtanh.f32 %v1299_v29  ;;  %v2377_v29 = vadd.f32 -1.25, %v1200_v61 }
 0x17e   : > { %v3226_v18 = vpop.eup %3225  ;;  %3237 = vtanh.f32 %v2394_v49  ;;  %v1396_v11 = vsub.f32 %v4086_v21, %v4215_v2 }
 0x17f   : > { %v3228_v25 = vpop.eup %3227  ;;  %v1533_v17 = vadd.f32 %v1525_v5, %v1484_v22  ;;  %v1184_v14 = vsub.f32 %v3224_v4, %v3226_v18  ;;  %3239 = vtanh.f32 %v1348_v44  ;;  %v2385_v44 = vadd.f32 -1.25, %v1249_v8 }
 0x180   : > { %v3230_v13 = vpop.eup %3229  ;;  %3241 = vtanh.f32 %v2402_v1  ;;  %v1445_v4 = vsub.f32 %v4092_v15, %v4215_v2  ;;  %v4234_v22 = vmul.f32 1.25, %v1134_v10 }
 0x181   : > { %v3232_v54 = vpop.eup %3231  ;;  %1553 = vadd.xlane.f32.xlu2 %v1533_v17  ;;  %v1233_v27 = vsub.f32 %v3228_v25, %v3230_v13  ;;  %3243 = vtanh.f32 %v1397_v20  ;;  %v2393_v20 = vadd.f32 -1.25, %v1298_v9  ;;  %v2409_v25 = vadd.f32 -1.25, %v1396_v11 }
 0x182   : > { %v3234_v16 = vpop.eup %3233  ;;  %3245 = vtanh.f32 %v2410_v6  ;;  %v1494_v17 = vsub.f32 %v4097_v31, %v4215_v2  ;;  %v1202_v2 = vsub.f32 %v4066_v43, %v4234_v22  ;;  %v1349_v10 = vsub.f32 %v4081_v0, %v4234_v22 }
 0x183   : > { %v3236_v30 = vpop.eup %3235  ;;  %v1241_v32 = vadd.f32 %v1233_v27, %v1184_v14  ;;  %v1282_v34 = vsub.f32 %v3232_v54, %v3234_v16  ;;  %3247 = vtanh.f32 %v1446_v63  ;;  %v2401_v63 = vadd.f32 -1.25, %v1347_v37 }
 0x184   : > { %v3238_v36 = vpop.eup %3237  ;;  %3249 = vtanh.f32 %v2418_v51  ;;  %v2417_v54 = vadd.f32 -1.25, %v1445_v4  ;;  %v1153_v27 = vsub.f32 %v4061_v26, %v4234_v22 }
 0x185   : > { %v3240_v39 = vpop.eup %3239  ;;  %v1290_v23 = vadd.f32 %v1282_v34, %v1241_v32  ;;  %v1331_v28 = vsub.f32 %v3236_v30, %v3238_v36  ;;  %3251 = vtanh.f32 %v1495_v12  ;;  %v2425_v30 = vadd.f32 -1.25, %v1494_v17 }
 0x186   : > { %v3242_v40 = vpop.eup %3241  ;;  %3253 = vtanh.f32 %v2426_v7 }
 0x187   : > { %v3244_v41 = vpop.eup %3243  ;;  %v1339_v42 = vadd.f32 %v1331_v28, %v1290_v23  ;;  %v1380_v33 = vsub.f32 %v3240_v39, %v3242_v40  ;;  %3255 = vtanh.f32 %v1151_v24  ;;  %v1251_v39 = vsub.f32 %v4071_v47, %v4234_v22 }
 0x188   : > { %v3246_v35 = vpop.eup %3245  ;;  %3257 = vtanh.f32 %v2369_v38 }
 0x189   : > { %v3248_v45 = vpop.eup %3247  ;;  %v1388_v46 = vadd.f32 %v1380_v33, %v1339_v42  ;;  %v1429_v48 = vsub.f32 %v3244_v41, %v3246_v35  ;;  %3259 = vtanh.f32 %v1200_v61  ;;  %v1300_v41 = vsub.f32 %v4076_v52, %v4234_v22 }
 0x18a   : > { %v3250_v49 = vpop.eup %3249  ;;  %3261 = vtanh.f32 %v2377_v29 }
 0x18b   : > { %v3252_v50 = vpop.eup %3251  ;;  %v1437_v53 = vadd.f32 %v1429_v48, %v1388_v46  ;;  %v1478_v55 = vsub.f32 %v3248_v45, %v3250_v49  ;;  %3263 = vtanh.f32 %v1249_v8  ;;  %v2371_v8 = vadd.f32 -1.25, %v1153_v27 }
 0x18c   : > { %v3254_v1 = vpop.eup %3253  ;;  %3265 = vtanh.f32 %v2385_v44  ;;  %v1578_v45 = vadd.f32 192.0, %v3829_v57  ;;  %v1447_v57 = vsub.f32 %v4092_v15, %v4234_v22 }
 0x18d   : > { %v3256_v5 = vpop.eup %3255  ;;  %v1486_v18 = vadd.f32 %v1478_v55, %v1437_v53  ;;  %v1527_v6 = vsub.f32 %v3252_v50, %v3254_v1  ;;  %3267 = vtanh.f32 %v1298_v9  ;;  %v2379_v9 = vadd.f32 -1.25, %v1202_v2 }
 0x18e   : > { %v3258_v12 = vpop.eup %3257  ;;  %3269 = vtanh.f32 %v2393_v20  ;;  %v1398_v50 = vsub.f32 %v4086_v21, %v4234_v22 }
 0x18f   : > { %v3260_v14 = vpop.eup %3259  ;;  %v1535_v13 = vadd.f32 %v1527_v6, %v1486_v18  ;;  %v1183_v51 = vsub.f32 %v3256_v5, %v3258_v12  ;;  %3271 = vtanh.f32 %v1347_v37  ;;  %v2387_v37 = vadd.f32 -1.25, %v1251_v39 }
 0x190   : > { %v3262_v24 = vpop.eup %3261  ;;  %3273 = vtanh.f32 %v2401_v63  ;;  %v4253_v5 = vmul.f32 1.25, %v1578_v45  ;;  %v1577_v45 = vadd.f32 192.0, %v3761_v19 }
 0x191   : > { %v3264_v16 = vpop.eup %3263  ;;  %1557 = vadd.xlane.f32.xlu1 %v1535_v13  ;;  %v1232_v7 = vsub.f32 %v3260_v14, %v3262_v24  ;;  %3275 = vtanh.f32 %v1396_v11  ;;  %v2395_v11 = vadd.f32 -1.25, %v1300_v41  ;;  %v1496_v14 = vsub.f32 %v4097_v31, %v4234_v22 }
 0x192   : > { %v3266_v61 = vpop.eup %3265  ;;  %3277 = vtanh.f32 %v2409_v25  ;;  %v1646_v22 = vsub.f32 %v4066_v43, %v4253_v5  ;;  %v1891_v19 = vsub.f32 %v4092_v15, %v4253_v5 }
 0x193   : > { %v3268_v32 = vpop.eup %3267  ;;  %v1240_v34 = vadd.f32 %v1232_v7, %v1183_v51  ;;  %v1281_v36 = vsub.f32 %v3264_v16, %v3266_v61  ;;  %3279 = vtanh.f32 %v1445_v4  ;;  %v2403_v4 = vadd.f32 -1.25, %v1349_v10 }
 0x194   : > { %v3270_v38 = vpop.eup %3269  ;;  %3281 = vtanh.f32 %v2417_v54  ;;  %v1597_v16 = vsub.f32 %v4061_v26, %v4253_v5 }
 0x195   : > { %v3272_v23 = vpop.eup %3271  ;;  %v1289_v28 = vadd.f32 %v1281_v36, %v1240_v34  ;;  %v1330_v40 = vsub.f32 %v3268_v32, %v3270_v38  ;;  %3283 = vtanh.f32 %v1494_v17  ;;  %v2411_v17 = vadd.f32 -1.25, %v1398_v50 }
 0x196   : > { %v3274_v29 = vpop.eup %3273  ;;  %3285 = vtanh.f32 %v2425_v30 }
 0x197   : > { %v3276_v42 = vpop.eup %3275  ;;  %v1338_v33 = vadd.f32 %v1330_v40, %v1289_v28  ;;  %v1379_v35 = vsub.f32 %v3272_v23, %v3274_v29  ;;  %3287 = vtanh.f32 %v1153_v27  ;;  %v2419_v27 = vadd.f32 -1.25, %v1447_v57 }
 0x198   : > { %v3278_v44 = vpop.eup %3277  ;;  %3289 = vtanh.f32 %v2371_v8  ;;  %v2429_v8 = vadd.f32 -1.25, %v1597_v16 }
 0x199   : > { %v3280_v46 = vpop.eup %3279  ;;  %v1387_v48 = vadd.f32 %v1379_v35, %v1338_v33  ;;  %v1428_v49 = vsub.f32 %v3276_v42, %v3278_v44  ;;  %3291 = vtanh.f32 %v1202_v2  ;;  %v2427_v2 = vadd.f32 -1.25, %v1496_v14 }
 0x19a   : > { %v3282_v20 = vpop.eup %3281  ;;  %3293 = vtanh.f32 %v2379_v9  ;;  %v2437_v9 = vadd.f32 -1.25, %v1646_v22 }
 0x19b   : > { %v3284_v53 = vpop.eup %3283  ;;  %v1436_v55 = vadd.f32 %v1428_v49, %v1387_v48  ;;  %v1477_v1 = vsub.f32 %v3280_v46, %v3282_v20  ;;  %3295 = vtanh.f32 %v1251_v39  ;;  %v1695_v39 = vsub.f32 %v4071_v47, %v4253_v5 }
 0x19c   : > { %v3286_v63 = vpop.eup %3285  ;;  %3297 = vtanh.f32 %v2387_v37 }
 0x19d   : > { %v3288_v18 = vpop.eup %3287  ;;  %v1485_v6 = vadd.f32 %v1477_v1, %v1436_v55  ;;  %v1526_v12 = vsub.f32 %v3284_v53, %v3286_v63  ;;  %3299 = vtanh.f32 %v1300_v41  ;;  %v1744_v41 = vsub.f32 %v4076_v52, %v4253_v5 }
 0x19e   : > { %v3290_v25 = vpop.eup %3289  ;;  %3301 = vtanh.f32 %v2395_v11  ;;  %v2445_v37 = vadd.f32 -1.25, %v1695_v39 }
 0x19f   : > { %v3292_v13 = vpop.eup %3291  ;;  %v1534_v51 = vadd.f32 %v1526_v12, %v1485_v6  ;;  %v1185_v24 = vsub.f32 %v3288_v18, %v3290_v25  ;;  %3303 = vtanh.f32 %v1349_v10  ;;  %v1793_v10 = vsub.f32 %v4081_v0, %v4253_v5 }
 0x1a0   : > { %v3294_v54 = vpop.eup %3293  ;;  %3305 = vtanh.f32 %v2403_v4  ;;  %v2453_v11 = vadd.f32 -1.25, %v1744_v41 }
 0x1a1   : > { %v3296_v7 = vpop.eup %3295  ;;  %1555 = vadd.xlane.f32.xlu0 %v1534_v51  ;;  %v1234_v61 = vsub.f32 %v3292_v13, %v3294_v54  ;;  %3307 = vtanh.f32 %v1398_v50  ;;  %v1842_v50 = vsub.f32 %v4086_v21, %v4253_v5  ;;  %v2461_v4 = vadd.f32 -1.25, %v1793_v10 }
 0x1a2   : > { %v3298_v30 = vpop.eup %3297  ;;  %3309 = vtanh.f32 %v2411_v17 }
 0x1a3   : > { %v3300_v32 = vpop.eup %3299  ;;  %v1242_v34 = vadd.f32 %v1234_v61, %v1185_v24  ;;  %v1283_v36 = vsub.f32 %v3296_v7, %v3298_v30  ;;  %3311 = vtanh.f32 %v1447_v57  ;;  %v4272_v57 = vmul.f32 1.25, %v1577_v45 }
 0x1a4   : > { %v3302_v38 = vpop.eup %3301  ;;  %3313 = vtanh.f32 %v2419_v27  ;;  %v2469_v17 = vadd.f32 -1.25, %v1842_v50  ;;  %v2477_v27 = vadd.f32 -1.25, %v1891_v19 }
 0x1a5   : > { %v3304_v23 = vpop.eup %3303  ;;  %v1291_v28 = vadd.f32 %v1283_v36, %v1242_v34  ;;  %v1332_v40 = vsub.f32 %v3300_v32, %v3302_v38  ;;  %3315 = vtanh.f32 %v1496_v14  ;;  %v1940_v14 = vsub.f32 %v4097_v31, %v4253_v5 }
 0x1a6   : > { %v3306_v29 = vpop.eup %3305  ;;  %3317 = vtanh.f32 %v2427_v2  ;;  %v1645_v5 = vsub.f32 %v4066_v43, %v4272_v57 }
 0x1a7   : > { %v3308_v42 = vpop.eup %3307  ;;  %v1340_v33 = vadd.f32 %v1332_v40, %v1291_v28  ;;  %v1381_v35 = vsub.f32 %v3304_v23, %v3306_v29  ;;  %3319 = vtanh.f32 %v1597_v16  ;;  %v1596_v16 = vsub.f32 %v4061_v26, %v4272_v57 }
 0x1a8   : > { %v3310_v44 = vpop.eup %3309  ;;  %3321 = vtanh.f32 %v2429_v8  ;;  %v2485_v2 = vadd.f32 -1.25, %v1940_v14  ;;  %v1694_v8 = vsub.f32 %v4071_v47, %v4272_v57  ;;  %v2436_v29 = vadd.f32 -1.25, %v1645_v5 }
 0x1a9   : > { %v3312_v46 = vpop.eup %3311  ;;  %v1389_v48 = vadd.f32 %v1381_v35, %v1340_v33  ;;  %v1430_v49 = vsub.f32 %v3308_v42, %v3310_v44  ;;  %3323 = vtanh.f32 %v1646_v22  ;;  %v2428_v38 = vadd.f32 -1.25, %v1596_v16 }
 0x1aa   : > { %v3314_v20 = vpop.eup %3313  ;;  %3325 = vtanh.f32 %v2437_v9  ;;  %v1743_v9 = vsub.f32 %v4076_v52, %v4272_v57  ;;  %v2444_v44 = vadd.f32 -1.25, %v1694_v8 }
 0x1ab   : > { %v3316_v53 = vpop.eup %3315  ;;  %v1438_v55 = vadd.f32 %v1430_v49, %v1389_v48  ;;  %v1479_v1 = vsub.f32 %v3312_v46, %v3314_v20  ;;  %3327 = vtanh.f32 %v1695_v39 }
 0x1ac   : > { %v3318_v63 = vpop.eup %3317  ;;  %3329 = vtanh.f32 %v2445_v37  ;;  %v1792_v37 = vsub.f32 %v4081_v0, %v4272_v57  ;;  %v2452_v20 = vadd.f32 -1.25, %v1743_v9 }
 0x1ad   : > { %v3320_v18 = vpop.eup %3319  ;;  %v1487_v6 = vadd.f32 %v1479_v1, %v1438_v55  ;;  %v1528_v12 = vsub.f32 %v3316_v53, %v3318_v63  ;;  %3331 = vtanh.f32 %v1744_v41 }
 0x1ae   : > { %v3322_v25 = vpop.eup %3321  ;;  %3333 = vtanh.f32 %v2453_v11  ;;  %v1841_v11 = vsub.f32 %v4086_v21, %v4272_v57  ;;  %v2460_v63 = vadd.f32 -1.25, %v1792_v37 }
 0x1af   : > { %v3324_v13 = vpop.eup %3323  ;;  %v1536_v51 = vadd.f32 %v1528_v12, %v1487_v6  ;;  %v1629_v24 = vsub.f32 %v3320_v18, %v3322_v25  ;;  %3335 = vtanh.f32 %v1793_v10  ;;  %v1579_v10 = vadd.f32 192.0, %v3739_v3 }
 0x1b0   : > { %v3326_v54 = vpop.eup %3325  ;;  %3337 = vtanh.f32 %v2461_v4  ;;  %v1890_v3 = vsub.f32 %v4092_v15, %v4272_v57  ;;  %v2468_v25 = vadd.f32 -1.25, %v1841_v11 }
 0x1b1   : > { %v3328_v7 = vpop.eup %3327  ;;  %1559 = vadd.xlane.f32.xlu2 %v1536_v51  ;;  %v1678_v61 = vsub.f32 %v3324_v13, %v3326_v54  ;;  %3339 = vtanh.f32 %v1842_v50  ;;  %v4291_v4 = vmul.f32 1.25, %v1579_v10 }
 0x1b2   : > { %v3330_v30 = vpop.eup %3329  ;;  %3341 = vtanh.f32 %v2469_v17  ;;  %v1939_v17 = vsub.f32 %v4097_v31, %v4272_v57  ;;  %v2476_v54 = vadd.f32 -1.25, %v1890_v3 }
 0x1b3   : > { %v3332_v22 = vpop.eup %3331  ;;  %v1686_v32 = vadd.f32 %v1678_v61, %v1629_v24  ;;  %v1727_v34 = vsub.f32 %v3328_v7, %v3330_v30  ;;  %3343 = vtanh.f32 %v1891_v19  ;;  %v1647_v57 = vsub.f32 %v4066_v43, %v4291_v4 }
 0x1b4   : > { %v3334_v36 = vpop.eup %3333  ;;  %3345 = vtanh.f32 %v2477_v27  ;;  %v1598_v27 = vsub.f32 %v4061_v26, %v4291_v4  ;;  %v2484_v30 = vadd.f32 -1.25, %v1939_v17 }
 0x1b5   : > { %v3336_v39 = vpop.eup %3335  ;;  %v1735_v23 = vadd.f32 %v1727_v34, %v1686_v32  ;;  %v1776_v28 = vsub.f32 %v3332_v22, %v3334_v36  ;;  %3347 = vtanh.f32 %v1940_v14  ;;  %v1696_v36 = vsub.f32 %v4071_v47, %v4291_v4 }
 0x1b6   : > { %v3338_v40 = vpop.eup %3337  ;;  %3349 = vtanh.f32 %v2485_v2  ;;  %v2430_v34 = vadd.f32 -1.25, %v1598_v27 }
 0x1b7   : > { %v3340_v41 = vpop.eup %3339  ;;  %v1784_v42 = vadd.f32 %v1776_v28, %v1735_v23  ;;  %v1825_v33 = vsub.f32 %v3336_v39, %v3338_v40  ;;  %3351 = vtanh.f32 %v1596_v16  ;;  %v2438_v28 = vadd.f32 -1.25, %v1647_v57 }
 0x1b8   : > { %v3342_v35 = vpop.eup %3341  ;;  %3353 = vtanh.f32 %v2428_v38  ;;  %v1745_v40 = vsub.f32 %v4076_v52, %v4291_v4 }
 0x1b9   : > { %v3344_v45 = vpop.eup %3343  ;;  %v1833_v46 = vadd.f32 %v1825_v33, %v1784_v42  ;;  %v1874_v48 = vsub.f32 %v3340_v41, %v3342_v35  ;;  %3355 = vtanh.f32 %v1645_v5  ;;  %v2446_v33 = vadd.f32 -1.25, %v1696_v36 }
 0x1ba   : > { %v3346_v49 = vpop.eup %3345  ;;  %3357 = vtanh.f32 %v2436_v29  ;;  %v1794_v35 = vsub.f32 %v4081_v0, %v4291_v4 }
 0x1bb   : > { %v3348_v50 = vpop.eup %3347  ;;  %v1882_v53 = vadd.f32 %v1874_v48, %v1833_v46  ;;  %v1923_v55 = vsub.f32 %v3344_v45, %v3346_v49  ;;  %3359 = vtanh.f32 %v1694_v8  ;;  %v2454_v48 = vadd.f32 -1.25, %v1745_v40 }
 0x1bc   : > { %v3350_v1 = vpop.eup %3349  ;;  %3361 = vtanh.f32 %v2444_v44  ;;  %v1581_v44 = vadd.f32 192.0, %v3785_v62  ;;  %v1843_v49 = vsub.f32 %v4086_v21, %v4291_v4  ;;  %v1892_v62 = vsub.f32 %v4092_v15, %v4291_v4 }
 0x1bd   : > { %v3352_v19 = vpop.eup %3351  ;;  %v1931_v18 = vadd.f32 %v1923_v55, %v1882_v53  ;;  %v1972_v6 = vsub.f32 %v3348_v50, %v3350_v1  ;;  %3363 = vtanh.f32 %v1743_v9  ;;  %v2462_v55 = vadd.f32 -1.25, %v1794_v35 }
 0x1be   : > { %v3354_v12 = vpop.eup %3353  ;;  %3365 = vtanh.f32 %v2452_v20  ;;  %v4310_v1 = vmul.f32 1.25, %v1581_v44 }
 0x1bf   : > { %v3356_v14 = vpop.eup %3355  ;;  %v1980_v13 = vadd.f32 %v1972_v6, %v1931_v18  ;;  %v1628_v51 = vsub.f32 %v3352_v19, %v3354_v12  ;;  %3367 = vtanh.f32 %v1792_v37  ;;  %v2470_v6 = vadd.f32 -1.25, %v1843_v49 }
 0x1c0   : > { %v3358_v24 = vpop.eup %3357  ;;  %3369 = vtanh.f32 %v2460_v63  ;;  %v1941_v12 = vsub.f32 %v4097_v31, %v4291_v4  ;;  %v1649_v4 = vsub.f32 %v4066_v43, %v4310_v1 }
 0x1c1   : > { %v3360_v16 = vpop.eup %3359  ;;  %1997 = vadd.xlane.f32.xlu1 %v1980_v13  ;;  %v1677_v7 = vsub.f32 %v3356_v14, %v3358_v24  ;;  %3371 = vtanh.f32 %v1841_v11  ;;  %v1600_v24 = vsub.f32 %v4061_v26, %v4310_v1 }
 0x1c2   : > { %v3362_v61 = vpop.eup %3361  ;;  %3373 = vtanh.f32 %v2468_v25 }
 0x1c3   : > { %v3364_v2 = vpop.eup %3363  ;;  %v1685_v5 = vadd.f32 %v1677_v7, %v1628_v51  ;;  %v1726_v22 = vsub.f32 %v3360_v16, %v3362_v61  ;;  %3375 = vtanh.f32 %v1890_v3  ;;  %v2478_v51 = vadd.f32 -1.25, %v1892_v62 }
 0x1c4   : > { %v3366_v32 = vpop.eup %3365  ;;  %3377 = vtanh.f32 %v2476_v54  ;;  %v2486_v7 = vadd.f32 -1.25, %v1941_v12 }
 0x1c5   : > { %v3368_v38 = vpop.eup %3367  ;;  %v1734_v8 = vadd.f32 %v1726_v22, %v1685_v5  ;;  %v1775_v39 = vsub.f32 %v3364_v2, %v3366_v32  ;;  %3379 = vtanh.f32 %v1939_v17  ;;  %v2432_v5 = vadd.f32 -1.25, %v1600_v24 }
 0x1c6   : > { %v3370_v23 = vpop.eup %3369  ;;  %3381 = vtanh.f32 %v2484_v30  ;;  %v1698_v22 = vsub.f32 %v4071_v47, %v4310_v1 }
 0x1c7   : > { %v3372_v29 = vpop.eup %3371  ;;  %v1783_v9 = vadd.f32 %v1775_v39, %v1734_v8  ;;  %v1824_v41 = vsub.f32 %v3368_v38, %v3370_v23  ;;  %3383 = vtanh.f32 %v1598_v27  ;;  %v2440_v8 = vadd.f32 -1.25, %v1649_v4 }
 0x1c8   : > { %v3374_v42 = vpop.eup %3373  ;;  %3385 = vtanh.f32 %v2430_v34  ;;  %v1747_v39 = vsub.f32 %v4076_v52, %v4310_v1 }
 0x1c9   : > { %v3376_v37 = vpop.eup %3375  ;;  %v1832_v10 = vadd.f32 %v1824_v41, %v1783_v9  ;;  %v1873_v45 = vsub.f32 %v3372_v29, %v3374_v42  ;;  %3387 = vtanh.f32 %v1647_v57  ;;  %v2448_v9 = vadd.f32 -1.25, %v1698_v22 }
 0x1ca   : > { %v3378_v46 = vpop.eup %3377  ;;  %3389 = vtanh.f32 %v2438_v28  ;;  %v1796_v41 = vsub.f32 %v4081_v0, %v4310_v1  ;;  %v1580_v42 = vadd.f32 192.0, %v3807_v59  ;;  %v1894_v59 = vsub.f32 %v4092_v15, %v4310_v1 }
 0x1cb   : > { %v3380_v20 = vpop.eup %3379  ;;  %v1881_v11 = vadd.f32 %v1873_v45, %v1832_v10  ;;  %v1922_v50 = vsub.f32 %v3376_v37, %v3378_v46  ;;  %3391 = vtanh.f32 %v1696_v36  ;;  %v2456_v10 = vadd.f32 -1.25, %v1747_v39 }
 0x1cc   : > { %v3382_v53 = vpop.eup %3381  ;;  %3393 = vtanh.f32 %v2446_v33  ;;  %v1845_v45 = vsub.f32 %v4086_v21, %v4310_v1 }
 0x1cd   : > { %v3384_v63 = vpop.eup %3383  ;;  %v1930_v3 = vadd.f32 %v1922_v50, %v1881_v11  ;;  %v1971_v19 = vsub.f32 %v3380_v20, %v3382_v53  ;;  %3395 = vtanh.f32 %v1745_v40  ;;  %v2464_v11 = vadd.f32 -1.25, %v1796_v41 }
 0x1ce   : > { %v3386_v18 = vpop.eup %3385  ;;  %3397 = vtanh.f32 %v2454_v48  ;;  %v4329_v50 = vmul.f32 1.25, %v1580_v42 }
 0x1cf   : > { %v3388_v25 = vpop.eup %3387  ;;  %v1979_v17 = vadd.f32 %v1971_v19, %v1930_v3  ;;  %v1630_v14 = vsub.f32 %v3384_v63, %v3386_v18  ;;  %3399 = vtanh.f32 %v1794_v35  ;;  %v2472_v3 = vadd.f32 -1.25, %v1845_v45 }
 0x1d0   : > { %v3390_v13 = vpop.eup %3389  ;;  %3401 = vtanh.f32 %v2462_v55  ;;  %v1943_v19 = vsub.f32 %v4097_v31, %v4310_v1  ;;  %v1648_v1 = vsub.f32 %v4066_v43, %v4329_v50 }
 0x1d1   : > { %v3392_v54 = vpop.eup %3391  ;;  %1995 = vadd.xlane.f32.xlu0 %v1979_v17  ;;  %v1679_v27 = vsub.f32 %v3388_v25, %v3390_v13  ;;  %3403 = vtanh.f32 %v1843_v49  ;;  %v2480_v17 = vadd.f32 -1.25, %v1894_v59 }
 0x1d2   : > { %v3394_v16 = vpop.eup %3393  ;;  %3405 = vtanh.f32 %v2470_v6 }
 0x1d3   : > { %v3396_v61 = vpop.eup %3395  ;;  %v1687_v30 = vadd.f32 %v1679_v27, %v1630_v14  ;;  %v1728_v57 = vsub.f32 %v3392_v54, %v3394_v16  ;;  %3407 = vtanh.f32 %v1892_v62  ;;  %v1599_v14 = vsub.f32 %v4061_v26, %v4329_v50 }
 0x1d4   : > { %v3398_v2 = vpop.eup %3397  ;;  %3409 = vtanh.f32 %v2478_v51  ;;  %v2488_v54 = vadd.f32 -1.25, %v1943_v19 }
 0x1d5   : > { %v3400_v32 = vpop.eup %3399  ;;  %v1736_v34 = vadd.f32 %v1728_v57, %v1687_v30  ;;  %v1777_v36 = vsub.f32 %v3396_v61, %v3398_v2  ;;  %3411 = vtanh.f32 %v1941_v12  ;;  %v2431_v61 = vadd.f32 -1.25, %v1599_v14 }
 0x1d6   : > { %v3402_v38 = vpop.eup %3401  ;;  %3413 = vtanh.f32 %v2486_v7  ;;  %v1697_v30 = vsub.f32 %v4071_v47, %v4329_v50 }
 0x1d7   : > { %v3404_v23 = vpop.eup %3403  ;;  %v1785_v28 = vadd.f32 %v1777_v36, %v1736_v34  ;;  %v1826_v40 = vsub.f32 %v3400_v32, %v3402_v38  ;;  %3415 = vtanh.f32 %v1600_v24  ;;  %v2439_v32 = vadd.f32 -1.25, %v1648_v1 }
 0x1d8   : > { %v3406_v29 = vpop.eup %3405  ;;  %3417 = vtanh.f32 %v2432_v5  ;;  %v1746_v34 = vsub.f32 %v4076_v52, %v4329_v50 }
 0x1d9   : > { %v3408_v33 = vpop.eup %3407  ;;  %v1834_v35 = vadd.f32 %v1826_v40, %v1785_v28  ;;  %v1875_v44 = vsub.f32 %v3404_v23, %v3406_v29  ;;  %3419 = vtanh.f32 %v1649_v4  ;;  %v2447_v23 = vadd.f32 -1.25, %v1697_v30 }
 0x1da   : > { %v3410_v37 = vpop.eup %3409  ;;  %3421 = vtanh.f32 %v2440_v8  ;;  %v1795_v28 = vsub.f32 %v4081_v0, %v4329_v50  ;;  %v1582_v40 = vadd.f32 192.0, %v3851_v56  ;;  %v1893_v56 = vsub.f32 %v4092_v15, %v4329_v50 }
 0x1db   : > { %v3412_v46 = vpop.eup %3411  ;;  %v1883_v48 = vadd.f32 %v1875_v44, %v1834_v35  ;;  %v1924_v49 = vsub.f32 %v3408_v33, %v3410_v37  ;;  %3423 = vtanh.f32 %v1698_v22  ;;  %v2455_v33 = vadd.f32 -1.25, %v1746_v34 }
 0x1dc   : > { %v3414_v20 = vpop.eup %3413  ;;  %3425 = vtanh.f32 %v2448_v9  ;;  %v1844_v35 = vsub.f32 %v4086_v21, %v4329_v50 }
 0x1dd   : > { %v3416_v53 = vpop.eup %3415  ;;  %v1932_v55 = vadd.f32 %v1924_v49, %v1883_v48  ;;  %v1973_v62 = vsub.f32 %v3412_v46, %v3414_v20  ;;  %3427 = vtanh.f32 %v1747_v39  ;;  %v2463_v46 = vadd.f32 -1.25, %v1795_v28 }
 0x1de   : > { %v3418_v63 = vpop.eup %3417  ;;  %3429 = vtanh.f32 %v2456_v10  ;;  %v4348_v48 = vmul.f32 1.25, %v1582_v40 }
 0x1df   : > { %v3420_v18 = vpop.eup %3419  ;;  %v1981_v6 = vadd.f32 %v1973_v62, %v1932_v55  ;;  %v1632_v12 = vsub.f32 %v3416_v53, %v3418_v63  ;;  %3431 = vtanh.f32 %v1796_v41  ;;  %v2471_v53 = vadd.f32 -1.25, %v1844_v35 }
 0x1e0   : > { %v3422_v25 = vpop.eup %3421  ;;  %3433 = vtanh.f32 %v2464_v11  ;;  %v1942_v55 = vsub.f32 %v4097_v31, %v4329_v50  ;;  %v1650_v50 = vsub.f32 %v4066_v43, %v4348_v48 }
 0x1e1   : > { %v3424_v13 = vpop.eup %3423  ;;  %1999 = vadd.xlane.f32.xlu2 %v1981_v6  ;;  %v1681_v51 = vsub.f32 %v3420_v18, %v3422_v25  ;;  %3435 = vtanh.f32 %v1845_v45  ;;  %v2479_v18 = vadd.f32 -1.25, %v1893_v56  ;;  %v1601_v6 = vsub.f32 %v4061_v26, %v4348_v48 }
 0x1e2   : > { %v3426_v24 = vpop.eup %3425  ;;  %3437 = vtanh.f32 %v2472_v3 }
 0x1e3   : > { %v3428_v27 = vpop.eup %3427  ;;  %v1689_v16 = vadd.f32 %v1681_v51, %v1632_v12  ;;  %v1730_v7 = vsub.f32 %v3424_v13, %v3426_v24  ;;  %3439 = vtanh.f32 %v1894_v59 }
 0x1e4   : > { %v3430_v4 = vpop.eup %3429  ;;  %3441 = vtanh.f32 %v2480_v17 }
 0x1e5   : > { %v3432_v57 = vpop.eup %3431  ;;  %v1738_v2 = vadd.f32 %v1730_v7, %v1689_v16  ;;  %v1779_v5 = vsub.f32 %v3428_v27, %v3430_v4  ;;  %3443 = vtanh.f32 %v1943_v19  ;;  %v1699_v27 = vsub.f32 %v4071_v47, %v4348_v48 }
 0x1e6   : > { %v3434_v22 = vpop.eup %3433  ;;  %3445 = vtanh.f32 %v2488_v54 }
 0x1e7   : > { %v3436_v36 = vpop.eup %3435  ;;  %v1787_v38 = vadd.f32 %v1779_v5, %v1738_v2  ;;  %v1828_v8 = vsub.f32 %v3432_v57, %v3434_v22  ;;  %3447 = vtanh.f32 %v1599_v14  ;;  %v2487_v14 = vadd.f32 -1.25, %v1942_v55 }
 0x1e8   : > { %v3438_v39 = vpop.eup %3437  ;;  %3449 = vtanh.f32 %v2431_v61  ;;  %v1748_v57 = vsub.f32 %v4076_v52, %v4348_v48 }
 0x1e9   : > { %v3440_v29 = vpop.eup %3439  ;;  %v1836_v9 = vadd.f32 %v1828_v8, %v1787_v38  ;;  %v1877_v41 = vsub.f32 %v3436_v36, %v3438_v39  ;;  %3451 = vtanh.f32 %v1648_v1  ;;  %v2433_v1 = vadd.f32 -1.25, %v1601_v6 }
 0x1ea   : > { %v3442_v42 = vpop.eup %3441  ;;  %3453 = vtanh.f32 %v2439_v32  ;;  %v1797_v36 = vsub.f32 %v4081_v0, %v4348_v48  ;;  %v1584_v38 = vadd.f32 192.0, %v3873_v58  ;;  %v2457_v40 = vadd.f32 -1.25, %v1748_v57 }
 0x1eb   : > { %v3444_v44 = vpop.eup %3443  ;;  %v1885_v37 = vadd.f32 %v1877_v41, %v1836_v9  ;;  %v1926_v10 = vsub.f32 %v3440_v29, %v3442_v42  ;;  %3455 = vtanh.f32 %v1697_v30  ;;  %v2441_v30 = vadd.f32 -1.25, %v1650_v50 }
 0x1ec   : > { %v3446_v45 = vpop.eup %3445  ;;  %3457 = vtanh.f32 %v2447_v23  ;;  %v1846_v29 = vsub.f32 %v4086_v21, %v4348_v48  ;;  %v1895_v58 = vsub.f32 %v4092_v15, %v4348_v48 }
 0x1ed   : > { %v3448_v49 = vpop.eup %3447  ;;  %v1934_v20 = vadd.f32 %v1926_v10, %v1885_v37  ;;  %v1975_v11 = vsub.f32 %v3444_v44, %v3446_v45  ;;  %3459 = vtanh.f32 %v1746_v34  ;;  %v2449_v34 = vadd.f32 -1.25, %v1699_v27 }
 0x1ee   : > { %v3450_v59 = vpop.eup %3449  ;;  %3461 = vtanh.f32 %v2455_v33  ;;  %v4367_v44 = vmul.f32 1.25, %v1584_v38 }
 0x1ef   : > { %v3452_v62 = vpop.eup %3451  ;;  %v1983_v63 = vadd.f32 %v1975_v11, %v1934_v20  ;;  %v1631_v3 = vsub.f32 %v3448_v49, %v3450_v59  ;;  %3463 = vtanh.f32 %v1795_v28  ;;  %v1944_v49 = vsub.f32 %v4097_v31, %v4348_v48 }
 0x1f0   : > { %v3454_v19 = vpop.eup %3453  ;;  %3465 = vtanh.f32 %v2463_v46  ;;  %v1652_v48 = vsub.f32 %v4066_v43, %v4367_v44  ;;  %v1848_v38 = vsub.f32 %v4086_v21, %v4367_v44 }
 0x1f1   : > { %v3456_v12 = vpop.eup %3455  ;;  %2003 = vadd.xlane.f32.xlu1 %v1983_v63  ;;  %v1680_v25 = vsub.f32 %v3452_v62, %v3454_v19  ;;  %3467 = vtanh.f32 %v1844_v35  ;;  %v2465_v35 = vadd.f32 -1.25, %v1797_v36  ;;  %v1603_v62 = vsub.f32 %v4061_v26, %v4367_v44 }
 0x1f2   : > { %v3458_v17 = vpop.eup %3457  ;;  %3469 = vtanh.f32 %v2471_v53 }
 0x1f3   : > { %v3460_v13 = vpop.eup %3459  ;;  %v1688_v51 = vadd.f32 %v1680_v25, %v1631_v3  ;;  %v1729_v24 = vsub.f32 %v3456_v12, %v3458_v17  ;;  %3471 = vtanh.f32 %v1893_v56  ;;  %v2473_v56 = vadd.f32 -1.25, %v1846_v29 }
 0x1f4   : > { %v3462_v54 = vpop.eup %3461  ;;  %3473 = vtanh.f32 %v2479_v18  ;;  %v2489_v18 = vadd.f32 -1.25, %v1944_v49 }
 0x1f5   : > { %v3464_v16 = vpop.eup %3463  ;;  %v1737_v7 = vadd.f32 %v1729_v24, %v1688_v51  ;;  %v1778_v4 = vsub.f32 %v3460_v13, %v3462_v54  ;;  %3475 = vtanh.f32 %v1942_v55  ;;  %v2481_v55 = vadd.f32 -1.25, %v1895_v58 }
 0x1f6   : > { %v3466_v61 = vpop.eup %3465  ;;  %3477 = vtanh.f32 %v2487_v14  ;;  %v2435_v14 = vadd.f32 -1.25, %v1603_v62 }
 0x1f7   : > { %v3468_v2 = vpop.eup %3467  ;;  %v1786_v5 = vadd.f32 %v1778_v4, %v1737_v7  ;;  %v1827_v22 = vsub.f32 %v3464_v16, %v3466_v61  ;;  %3479 = vtanh.f32 %v1601_v6 }
 0x1f8   : > { %v3470_v32 = vpop.eup %3469  ;;  %3481 = vtanh.f32 %v2433_v1  ;;  %v2443_v1 = vadd.f32 -1.25, %v1652_v48 }
 0x1f9   : > { %v3472_v8 = vpop.eup %3471  ;;  %v1835_v39 = vadd.f32 %v1827_v22, %v1786_v5  ;;  %v1876_v23 = vsub.f32 %v3468_v2, %v3470_v32  ;;  %3483 = vtanh.f32 %v1650_v50  ;;  %v1701_v50 = vsub.f32 %v4071_v47, %v4367_v44 }
 0x1fa   : > { %v3474_v28 = vpop.eup %3473  ;;  %3485 = vtanh.f32 %v2441_v30  ;;  %v1583_v2 = vadd.f32 192.0, %v3895_v60  ;;  %v1897_v60 = vsub.f32 %v4092_v15, %v4367_v44 }
 0x1fb   : > { %v3476_v9 = vpop.eup %3475  ;;  %v1884_v41 = vadd.f32 %v1876_v23, %v1835_v39  ;;  %v1925_v42 = vsub.f32 %v3472_v8, %v3474_v28  ;;  %3487 = vtanh.f32 %v1699_v27  ;;  %v1750_v27 = vsub.f32 %v4076_v52, %v4367_v44 }
 0x1fc   : > { %v3478_v33 = vpop.eup %3477  ;;  %3489 = vtanh.f32 %v2449_v34  ;;  %v2451_v30 = vadd.f32 -1.25, %v1701_v50 }
 0x1fd   : > { %v3480_v37 = vpop.eup %3479  ;;  %v1933_v10 = vadd.f32 %v1925_v42, %v1884_v41  ;;  %v1974_v45 = vsub.f32 %v3476_v9, %v3478_v33  ;;  %3491 = vtanh.f32 %v1748_v57  ;;  %v1799_v57 = vsub.f32 %v4081_v0, %v4367_v44 }
 0x1fe   : > { %v3482_v46 = vpop.eup %3481  ;;  %3493 = vtanh.f32 %v2457_v40 }
 0x1ff   : > { %v3484_v20 = vpop.eup %3483  ;;  %v1982_v11 = vadd.f32 %v1974_v45, %v1933_v10  ;;  %v1633_v59 = vsub.f32 %v3480_v37, %v3482_v46  ;;  %3495 = vtanh.f32 %v1797_v36  ;;  %v2459_v36 = vadd.f32 -1.25, %v1750_v27 }
 0x200   : > { %v3486_v53 = vpop.eup %3485  ;;  %3497 = vtanh.f32 %v2465_v35  ;;  %v2467_v40 = vadd.f32 -1.25, %v1799_v57  ;;  %v2475_v35 = vadd.f32 -1.25, %v1848_v38 }
 0x201   : > { %v3488_v63 = vpop.eup %3487  ;;  %2001 = vadd.xlane.f32.xlu0 %v1982_v11  ;;  %v1682_v3 = vsub.f32 %v3484_v20, %v3486_v53  ;;  %3499 = vtanh.f32 %v1846_v29  ;;  %v4386_v29 = vmul.f32 1.25, %v1583_v2 }
 0x202   : > { %v3490_v19 = vpop.eup %3489  ;;  %3501 = vtanh.f32 %v2473_v56  ;;  %v2483_v56 = vadd.f32 -1.25, %v1897_v60 }
 0x203   : > { %v3492_v6 = vpop.eup %3491  ;;  %v1690_v12 = vadd.f32 %v1682_v3, %v1633_v59  ;;  %v1731_v25 = vsub.f32 %v3488_v63, %v3490_v19  ;;  %3503 = vtanh.f32 %v1895_v58  ;;  %v1946_v58 = vsub.f32 %v4097_v31, %v4367_v44 }
 0x204   : > { %v3494_v17 = vpop.eup %3493  ;;  %3505 = vtanh.f32 %v2481_v55  ;;  %v1651_v44 = vsub.f32 %v4066_v43, %v4386_v29  ;;  %v3657_v55 = vmov 0.0  }
 0x205   : > { %v3496_v13 = vpop.eup %3495  ;;  %v1739_v51 = vadd.f32 %v1731_v25, %v1690_v12  ;;  %v1780_v24 = vsub.f32 %v3492_v6, %v3494_v17  ;;  %3507 = vtanh.f32 %v1944_v49  ;;  %v1602_v49 = vsub.f32 %v4061_v26, %v4386_v29  ;;  %179 = vst.msk [vmem:[#allocation2 + $0x10] sm:$0xff] %vm176_vm0, %v3657_v55  ;;  %v649_v12 = vpop.xlane.xlu1 %648 }
 0x206   : > { %v3498_v54 = vpop.eup %3497  ;;  %3509 = vtanh.f32 %v2489_v18  ;;  %v2491_v53 = vadd.f32 -1.25, %v1946_v58  ;;  %177 = vst.msk [vmem:[#allocation2] sm:$0xff] %vm176_vm0, %v3657_v55  ;;  %v1700_v18 = vsub.f32 %v4071_v47, %v4386_v29  ;;  %v2442_v17 = vadd.f32 -1.25, %v1651_v44  ;;  %v4408_v47 = vpop.xlane.xlu0 %644 }
 0x207   : > { %v3500_v16 = vpop.eup %3499  ;;  %v1788_v7 = vadd.f32 %v1780_v24, %v1739_v51  ;;  %v1829_v4 = vsub.f32 %v3496_v13, %v3498_v54  ;;  %3511 = vtanh.f32 %v1603_v62  ;;  %v2434_v19 = vadd.f32 -1.25, %v1602_v49  ;;  %178 = vst.msk [vmem:[#allocation2 + $0x8] sm:$0xff] %vm176_vm0, %v3657_v55 }
 0x208   : > { %v3502_v61 = vpop.eup %3501  ;;  %3513 = vtanh.f32 %v2435_v14  ;;  %180 = vst.msk [vmem:[#allocation2 + $0x18] sm:$0xff] %vm176_vm0, %v3657_v55  ;;  %v1749_v14 = vsub.f32 %v4076_v52, %v4386_v29  ;;  %v2450_v54 = vadd.f32 -1.25, %v1700_v18 }
 0x209   : > { %v3504_v5 = vpop.eup %3503  ;;  %v1837_v22 = vadd.f32 %v1829_v4, %v1788_v7  ;;  %v1878_v32 = vsub.f32 %v3500_v16, %v3502_v61  ;;  %3515 = vtanh.f32 %v1652_v48  ;;  %181 = vst.msk [vmem:[#allocation2 + $0x20] sm:$0xff] %vm176_vm0, %v3657_v55 }
 0x20a   : > { %v3506_v34 = vpop.eup %3505  ;;  %3517 = vtanh.f32 %v2443_v1  ;;  %182 = vst.msk [vmem:[#allocation2 + $0x28] sm:$0xff] %vm176_vm0, %v3657_v55  ;;  %v1798_v1 = vsub.f32 %v4081_v0, %v4386_v29  ;;  %v2458_v61 = vadd.f32 -1.25, %v1749_v14  ;;  %v1847_v0 = vsub.f32 %v4086_v21, %v4386_v29 }
 0x20b   : > { %v3508_v8 = vpop.eup %3507  ;;  %v1886_v39 = vadd.f32 %v1878_v32, %v1837_v22  ;;  %v1927_v23 = vsub.f32 %v3504_v5, %v3506_v34  ;;  %3519 = vtanh.f32 %v1701_v50  ;;  %183 = vst.msk [vmem:[#allocation2 + $0x30] sm:$0xff] %vm176_vm0, %v3657_v55  ;;  %v1896_v34 = vsub.f32 %v4092_v15, %v4386_v29  ;;  %v4439_v15 = vpop.xlane.xlu2 %652 }
 0x20c   : > { %v3510_v28 = vpop.eup %3509  ;;  %3521 = vtanh.f32 %v2451_v30  ;;  %v638_v7 = vld [vmem:[#allocation2 + $0x10] sm:$0xff]  ;;  %184 = vst.msk [vmem:[#allocation2 + $0x38] sm:$0xff] %vm176_vm0, %v3657_v55  ;;  %v2466_v32 = vadd.f32 -1.25, %v1798_v1 }
 0x20d   : > { %v3512_v9 = vpop.eup %3511  ;;  %v1935_v41 = vadd.f32 %v1927_v23, %v1886_v39  ;;  %v1976_v42 = vsub.f32 %v3508_v8, %v3510_v28  ;;  %3523 = vtanh.f32 %v1750_v27  ;;  %v662_v30 = vadd.f32 %v649_v12, %v638_v7  ;;  %185 = vst.msk [vmem:[#allocation2 + $0x40] sm:$0xff] %vm176_vm0, %v3657_v55 }
 0x20e   : > { %v3514_v33 = vpop.eup %3513  ;;  %3525 = vtanh.f32 %v2459_v36  ;;  %186 = vst.msk [vmem:[#allocation2 + $0x48] sm:$0xff] %vm176_vm0, %v3657_v55  ;;  %v2474_v39 = vadd.f32 -1.25, %v1847_v0  ;;  %v1945_v23 = vsub.f32 %v4097_v31, %v4386_v29  ;;  %v4448_v31 = vpop.xlane.xlu0 %646 }
 0x20f   : > { %v3516_v37 = vpop.eup %3515  ;;  %v1984_v10 = vadd.f32 %v1976_v42, %v1935_v41  ;;  %v1635_v45 = vsub.f32 %v3512_v9, %v3514_v33  ;;  %3527 = vtanh.f32 %v1799_v57  ;;  %671 = vst.msk [vmem:[#allocation2 + $0x10] sm:$0xff] %vm176_vm0, %v662_v30  ;;  %v4443_v9 = vpop.xlane.xlu1 %650  ;;  %v2482_v42 = vadd.f32 -1.25, %v1896_v34 }
 0x210   : > { %v3518_v46 = vpop.eup %3517  ;;  %3529 = vtanh.f32 %v2467_v40  ;;  %187 = vst.msk [vmem:[#allocation2 + $0x50] sm:$0xff] %vm176_vm0, %v3657_v55 }
 0x211   : > { %v3520_v20 = vpop.eup %3519  ;;  %2005 = vadd.xlane.f32.xlu2 %v1984_v10  ;;  %v1684_v11 = vsub.f32 %v3516_v37, %v3518_v46  ;;  %3531 = vtanh.f32 %v1848_v38  ;;  %188 = vst.msk [vmem:[#allocation2 + $0x58] sm:$0xff] %vm176_vm0, %v3657_v55  ;;  %v641_v30 = vld [vmem:[#allocation2 + $0x28] sm:$0xff] }
 0x212   : > { %v3522_v59 = vpop.eup %3521  ;;  %3533 = vtanh.f32 %v2475_v35  ;;  %189 = vst.msk [vmem:[#allocation2 + $0x60] sm:$0xff] %vm176_vm0, %v3657_v55 }
 0x213   : > { %v3524_v62 = vpop.eup %3523  ;;  %v1692_v63 = vadd.f32 %v1684_v11, %v1635_v45  ;;  %v1733_v3 = vsub.f32 %v3520_v20, %v3522_v59  ;;  %3535 = vtanh.f32 %v1897_v60  ;;  %190 = vst.msk [vmem:[#allocation2 + $0x68] sm:$0xff] %vm176_vm0, %v3657_v55 }
 0x214   : > { %v3526_v26 = vpop.eup %3525  ;;  %3537 = vtanh.f32 %v2483_v56  ;;  %191 = vst.msk [vmem:[#allocation2 + $0x70] sm:$0xff] %vm176_vm0, %v3657_v55 }
 0x215   : > { %v3528_v43 = vpop.eup %3527  ;;  %v1741_v48 = vadd.f32 %v1733_v3, %v1692_v63  ;;  %v1782_v6 = vsub.f32 %v3524_v62, %v3526_v26  ;;  %3539 = vtanh.f32 %v1946_v58  ;;  %v2490_v58 = vadd.f32 -1.25, %v1945_v23  ;;  %192 = vst.msk [vmem:[#allocation2 + $0x78] sm:$0xff] %vm176_vm0, %v3657_v55 }
 0x216   : > { %v3530_v25 = vpop.eup %3529  ;;  %3541 = vtanh.f32 %v2491_v53  ;;  %v2032_v46 = vld [vmem:[#allocation2 + $0x10] sm:$0xff]  ;;  %193 = vst.msk [vmem:[#allocation2 + $0x80] sm:$0xff] %vm176_vm0, %v3657_v55 }
 0x217   : > { %v3532_v50 = vpop.eup %3531  ;;  %v1790_v13 = vadd.f32 %v1782_v6, %v1741_v48  ;;  %v1831_v51 = vsub.f32 %v3528_v43, %v3530_v25  ;;  %3543 = vtanh.f32 %v1602_v49  ;;  %v2064_v49 = vmul.f32 0.001953125, %v2032_v46  ;;  %194 = vst.msk [vmem:[#allocation2 + $0x88] sm:$0xff] %vm176_vm0, %v3657_v55  ;;  %v659_v26 = vpop.xlane.xlu1 %658 }
 0x218   : > { %v3534_v24 = vpop.eup %3533  ;;  %3545 = vtanh.f32 %v2434_v19  ;;  %195 = vst.msk [vmem:[#allocation2 + $0x90] sm:$0xff] %vm176_vm0, %v3657_v55 }
 0x219   : > { %v3536_v52 = vpop.eup %3535  ;;  %v1839_v27 = vadd.f32 %v1831_v51, %v1790_v13  ;;  %v1880_v16 = vsub.f32 %v3532_v50, %v3534_v24  ;;  %3547 = vtanh.f32 %v1651_v44  ;;  %2096 = vst.msk [vmem:[%s4457_s9 + $0x10] sm:$0xff] %vm176_vm0, %v2064_v49  ;;  %v655_v44 = vpop.xlane.xlu2 %654  ;;  %v636_v24 = vld [vmem:[#allocation2] sm:$0xff] }
 0x21a   : > { %v3538_v4 = vpop.eup %3537  ;;  %3549 = vtanh.f32 %v2442_v17  ;;  %196 = vst.msk [vmem:[#allocation2 + $0x98] sm:$0xff] %vm176_vm0, %v3657_v55  ;;  %v660_v7 = vadd.f32 %v4408_v47, %v636_v24 }
 0x21b   : > { %v3540_v57 = vpop.eup %3539  ;;  %v1888_v2 = vadd.f32 %v1880_v16, %v1839_v27  ;;  %v1929_v5 = vsub.f32 %v3536_v52, %v3538_v4  ;;  %3551 = vtanh.f32 %v1700_v18  ;;  %197 = vst.msk [vmem:[#allocation2 + $0xa0] sm:$0xff] %vm176_vm0, %v3657_v55  ;;  %v657_v18 = vpop.xlane.xlu0 %656  ;;  %v639_v27 = vld [vmem:[#allocation2 + $0x18] sm:$0xff]  ;;  %v637_v4 = vld [vmem:[#allocation2 + $0x8] sm:$0xff] }
 0x21c   : > { %v3542_v22 = vpop.eup %3541  ;;  %3553 = vtanh.f32 %v2450_v54  ;;  %198 = vst.msk [vmem:[#allocation2 + $0xa8] sm:$0xff] %vm176_vm0, %v3657_v55  ;;  %v640_v54 = vld [vmem:[#allocation2 + $0x20] sm:$0xff]  ;;  %v661_v47 = vadd.f32 %v4448_v31, %v637_v4 }
 0x21d   : > { %v3544_v21 = vpop.eup %3543  ;;  %v1937_v36 = vadd.f32 %v1929_v5, %v1888_v2  ;;  %v1978_v38 = vsub.f32 %v3540_v57, %v3542_v22  ;;  %3555 = vtanh.f32 %v1749_v14  ;;  %199 = vst.msk [vmem:[#allocation2 + $0xb0] sm:$0xff] %vm176_vm0, %v3657_v55  ;;  %v663_v57 = vadd.f32 %v4443_v9, %v639_v27  ;;  %v643_v2 = vld [vmem:[#allocation2 + $0x38] sm:$0xff]  ;;  %v642_v5 = vld [vmem:[#allocation2 + $0x30] sm:$0xff] }
 0x21e   : > { %v3546_v8 = vpop.eup %3545  ;;  %3557 = vtanh.f32 %v2458_v61  ;;  %200 = vst.msk [vmem:[#allocation2 + $0xb8] sm:$0xff] %vm176_vm0, %v3657_v55  ;;  %v665_v22 = vadd.f32 %v655_v44, %v641_v30 }
 0x21f   : > { %v3548_v28 = vpop.eup %3547  ;;  %v1986_v40 = vadd.f32 %v1978_v38, %v1937_v36  ;;  %v1634_v60 = vsub.f32 %v3544_v21, %v3546_v8  ;;  %3559 = vtanh.f32 %v1798_v1  ;;  %201 = vst.msk [vmem:[#allocation2 + $0xc0] sm:$0xff] %vm176_vm0, %v3657_v55  ;;  %v1100_v16 = vpop.xlane.xlu1 %1099  ;;  %v1089_v21 = vld [vmem:[#allocation2 + $0x50] sm:$0xff]  ;;  %v666_v36 = vadd.f32 %v657_v18, %v642_v5  ;;  %v1088_v38 = vld [vmem:[#allocation2 + $0x48] sm:$0xff] }
 0x220   : > { %v3550_v41 = vpop.eup %3549  ;;  %3561 = vtanh.f32 %v2466_v32  ;;  %202 = vst.msk [vmem:[#allocation2 + $0xc8] sm:$0xff] %vm176_vm0, %v3657_v55  ;;  %v1087_v32 = vld [vmem:[#allocation2 + $0x40] sm:$0xff]  ;;  %v1093_v18 = vld [vmem:[#allocation2 + $0x70] sm:$0xff] }
 0x221   : > { %v3552_v29 = vpop.eup %3551  ;;  %2009 = vadd.xlane.f32.xlu1 %v1986_v40  ;;  %v1683_v33 = vsub.f32 %v3548_v28, %v3550_v41  ;;  %3563 = vtanh.f32 %v1847_v0  ;;  %203 = vst.msk [vmem:[#allocation2 + $0xd0] sm:$0xff] %vm176_vm0, %v3657_v55  ;;  %v1096_v1 = vpop.xlane.xlu2 %1095  ;;  %v664_v0 = vadd.f32 %v4439_v15, %v640_v54  ;;  %v1540_v24 = vld [vmem:[#allocation2 + $0x98] sm:$0xff] }
 0x222   : > { %v3554_v35 = vpop.eup %3553  ;;  %3565 = vtanh.f32 %v2474_v39  ;;  %204 = vst.msk [vmem:[#allocation2 + $0xd8] sm:$0xff] %vm176_vm0, %v3657_v55  ;;  %v1111_v39 = vadd.f32 %v1096_v1, %v1087_v32  ;;  %v1541_v4 = vld [vmem:[#allocation2 + $0xa0] sm:$0xff] }
 0x223   : > { %v3556_v37 = vpop.eup %3555  ;;  %v1691_v10 = vadd.f32 %v1683_v33, %v1634_v60  ;;  %v1732_v45 = vsub.f32 %v3552_v29, %v3554_v35  ;;  %3567 = vtanh.f32 %v1896_v34  ;;  %205 = vst.msk [vmem:[#allocation2 + $0xe0] sm:$0xff] %vm176_vm0, %v3657_v55  ;;  %v1098_v61 = vpop.xlane.xlu0 %1097  ;;  %v667_v34 = vadd.f32 %v659_v26, %v643_v2 }
 0x224   : > { %v3558_v56 = vpop.eup %3557  ;;  %3569 = vtanh.f32 %v2482_v42  ;;  %206 = vst.msk [vmem:[#allocation2 + $0xe8] sm:$0xff] %vm176_vm0, %v3657_v55  ;;  %v1112_v28 = vadd.f32 %v1098_v61, %v1088_v38 }
 0x225   : > { %v3560_v20 = vpop.eup %3559  ;;  %v1740_v11 = vadd.f32 %v1732_v45, %v1691_v10  ;;  %v1781_v59 = vsub.f32 %v3556_v37, %v3558_v56  ;;  %3571 = vtanh.f32 %v1945_v23  ;;  %207 = vst.msk [vmem:[#allocation2 + $0xf0] sm:$0xff] %vm176_vm0, %v3657_v55  ;;  %v1113_v23 = vadd.f32 %v1100_v16, %v1089_v21 }
 0x226   : > { %v3562_v53 = vpop.eup %3561  ;;  %3573 = vtanh.f32 %v2490_v58  ;;  %208 = vst.msk [vmem:[#allocation2 + $0xf8] sm:$0xff] %vm176_vm0, %v3657_v55 }
 0x227   : > { %v3564_v62 = vpop.eup %3563  ;;  %v1789_v63 = vadd.f32 %v1781_v59, %v1740_v11  ;;  %v1830_v3 = vsub.f32 %v3560_v20, %v3562_v53  ;;  %669 = vst.msk [vmem:[#allocation2] sm:$0xff] %vm176_vm0, %v660_v7  ;;  %v1106_v55 = vpop.xlane.xlu1 %1105  ;;  %v1090_v20 = vld [vmem:[#allocation2 + $0x58] sm:$0xff]  ;;  %v1092_v53 = vld [vmem:[#allocation2 + $0x68] sm:$0xff] }
 0x228   : > { %v3566_v19 = vpop.eup %3565  ;;  %673 = vst.msk [vmem:[#allocation2 + $0x20] sm:$0xff] %vm176_vm0, %v664_v0 }
 0x229   : > { %v3568_v43 = vpop.eup %3567  ;;  %v1838_v48 = vadd.f32 %v1830_v3, %v1789_v63  ;;  %v1879_v6 = vsub.f32 %v3564_v62, %v3566_v19  ;;  %672 = vst.msk [vmem:[#allocation2 + $0x18] sm:$0xff] %vm176_vm0, %v663_v57  ;;  %v1102_v8 = vpop.xlane.xlu2 %1101  ;;  %v1091_v63 = vld [vmem:[#allocation2 + $0x60] sm:$0xff] }
 0x22a   : > { %v3570_v12 = vpop.eup %3569  ;;  %670 = vst.msk [vmem:[#allocation2 + $0x8] sm:$0xff] %vm176_vm0, %v661_v47  ;;  %v1114_v19 = vadd.f32 %v1102_v8, %v1090_v20 }
 0x22b   : > { %v3572_v25 = vpop.eup %3571  ;;  %v1887_v17 = vadd.f32 %v1879_v6, %v1838_v48  ;;  %v1928_v14 = vsub.f32 %v3568_v43, %v3570_v12  ;;  %674 = vst.msk [vmem:[#allocation2 + $0x28] sm:$0xff] %vm176_vm0, %v665_v22  ;;  %v1104_v15 = vpop.xlane.xlu0 %1103  ;;  %v1116_v48 = vadd.f32 %v1106_v55, %v1092_v53  ;;  %v1537_v6 = vld [vmem:[#allocation2 + $0x80] sm:$0xff] }
 0x22c   : > { %v3574_v50 = vpop.eup %3573  ;;  %676 = vst.msk [vmem:[#allocation2 + $0x38] sm:$0xff] %vm176_vm0, %v667_v34  ;;  %v1115_v12 = vadd.f32 %v1104_v15, %v1091_v63  ;;  %v1543_v15 = vld [vmem:[#allocation2 + $0xb0] sm:$0xff] }
 0x22d   : > { %v1936_v13 = vadd.f32 %v1928_v14, %v1887_v17  ;;  %v1977_v51 = vsub.f32 %v3572_v25, %v3574_v50  ;;  %675 = vst.msk [vmem:[#allocation2 + $0x30] sm:$0xff] %vm176_vm0, %v666_v36  ;;  %v1094_v25 = vld [vmem:[#allocation2 + $0x78] sm:$0xff]  ;;  %v1538_v50 = vld [vmem:[#allocation2 + $0x88] sm:$0xff] }
 0x22e   : > { %v2030_v40 = vld [vmem:[#allocation2] sm:$0xff]  ;;  %1119 = vst.msk [vmem:[#allocation2 + $0x40] sm:$0xff] %vm176_vm0, %v1111_v39 }
 0x22f   : > { %v1985_v52 = vadd.f32 %v1977_v51, %v1936_v13  ;;  %v2062_v60 = vmul.f32 0.001953125, %v2030_v40  ;;  %v2034_v9 = vld [vmem:[#allocation2 + $0x20] sm:$0xff]  ;;  %1121 = vst.msk [vmem:[#allocation2 + $0x50] sm:$0xff] %vm176_vm0, %v1113_v23  ;;  %v1546_v37 = vpop.xlane.xlu1 %1545 }
 0x230   : > { %v2066_v41 = vmul.f32 0.001953125, %v2034_v9  ;;  %v2033_v42 = vld [vmem:[#allocation2 + $0x18] sm:$0xff]  ;;  %1120 = vst.msk [vmem:[#allocation2 + $0x48] sm:$0xff] %vm176_vm0, %v1112_v28  ;;  %v1561_v51 = vadd.f32 %v1546_v37, %v1537_v6  ;;  %v1988_v37 = vld [vmem:[#allocation2 + $0xc8] sm:$0xff] }
 0x231   : > { %2007 = vadd.xlane.f32.xlu0 %v1985_v52  ;;  %2094 = vst.msk [vmem:[%s4457_s9] sm:$0xff] %vm176_vm0, %v2062_v60  ;;  %v2065_v31 = vmul.f32 0.001953125, %v2033_v42  ;;  %v2031_v29 = vld [vmem:[#allocation2 + $0x8] sm:$0xff]  ;;  %v1108_v33 = vpop.xlane.xlu2 %1107  ;;  %v1539_v52 = vld [vmem:[#allocation2 + $0x90] sm:$0xff] }
 0x232   : > { %2098 = vst.msk [vmem:[%s4457_s9 + $0x20] sm:$0xff] %vm176_vm0, %v2066_v41  ;;  %v2063_v35 = vmul.f32 0.001953125, %v2031_v29  ;;  %v2035_v58 = vld [vmem:[#allocation2 + $0x28] sm:$0xff]  ;;  %v1117_v14 = vadd.f32 %v1108_v33, %v1093_v18 }
 0x233   : > { %2097 = vst.msk [vmem:[%s4457_s9 + $0x18] sm:$0xff] %vm176_vm0, %v2065_v31  ;;  %v2067_v10 = vmul.f32 0.001953125, %v2035_v58  ;;  %v2037_v45 = vld [vmem:[#allocation2 + $0x38] sm:$0xff]  ;;  %v1110_v46 = vpop.xlane.xlu0 %1109  ;;  %v1542_v60 = vld [vmem:[#allocation2 + $0xa8] sm:$0xff] }
 0x234   : > { %2095 = vst.msk [vmem:[%s4457_s9 + $0x8] sm:$0xff] %vm176_vm0, %v2063_v35  ;;  %v2069_v56 = vmul.f32 0.001953125, %v2037_v45  ;;  %v2036_v49 = vld [vmem:[#allocation2 + $0x30] sm:$0xff]  ;;  %v1118_v1 = vadd.f32 %v1110_v46, %v1094_v25  ;;  %v1544_v31 = vld [vmem:[#allocation2 + $0xb8] sm:$0xff] }
 0x235   : > { %2099 = vst.msk [vmem:[%s4457_s9 + $0x28] sm:$0xff] %vm176_vm0, %v2067_v10  ;;  %v2068_v11 = vmul.f32 0.001953125, %v2036_v49  ;;  %v2038_v59 = vld [vmem:[#allocation2 + $0x40] sm:$0xff] }
 0x236   : > { %2101 = vst.msk [vmem:[%s4457_s9 + $0x38] sm:$0xff] %vm176_vm0, %v2069_v56  ;;  %v2070_v44 = vmul.f32 0.001953125, %v2038_v59  ;;  %v2040_v62 = vld [vmem:[#allocation2 + $0x50] sm:$0xff]  ;;  %v1987_v56 = vld [vmem:[#allocation2 + $0xc0] sm:$0xff] }
 0x237   : > { %2100 = vst.msk [vmem:[%s4457_s9 + $0x30] sm:$0xff] %vm176_vm0, %v2068_v11  ;;  %v2072_v3 = vmul.f32 0.001953125, %v2040_v62  ;;  %v2039_v26 = vld [vmem:[#allocation2 + $0x48] sm:$0xff]  ;;  %v1552_v13 = vpop.xlane.xlu1 %1551  ;;  %v1989_v59 = vld [vmem:[#allocation2 + $0xd0] sm:$0xff] }
 0x238   : > { %2102 = vst.msk [vmem:[%s4457_s9 + $0x40] sm:$0xff] %vm176_vm0, %v2070_v44  ;;  %v2071_v43 = vmul.f32 0.001953125, %v2039_v26  ;;  %v1564_v16 = vadd.f32 %v1552_v13, %v1540_v24 }
 0x239   : > { %2104 = vst.msk [vmem:[%s4457_s9 + $0x50] sm:$0xff] %vm176_vm0, %v2072_v3  ;;  %v1548_v17 = vpop.xlane.xlu2 %1547 }
 0x23a   : > { %2103 = vst.msk [vmem:[%s4457_s9 + $0x48] sm:$0xff] %vm176_vm0, %v2071_v43  ;;  %v1562_v27 = vadd.f32 %v1548_v17, %v1538_v50  ;;  %v1991_v43 = vld [vmem:[#allocation2 + $0xe0] sm:$0xff] }
 0x23b   : > { %1122 = vst.msk [vmem:[#allocation2 + $0x58] sm:$0xff] %vm176_vm0, %v1114_v19  ;;  %v1550_v54 = vpop.xlane.xlu0 %1549 }
 0x23c   : > { %1124 = vst.msk [vmem:[#allocation2 + $0x68] sm:$0xff] %vm176_vm0, %v1116_v48  ;;  %v1563_v7 = vadd.f32 %v1550_v54, %v1539_v52 }
 0x23d   : > { %1123 = vst.msk [vmem:[#allocation2 + $0x60] sm:$0xff] %vm176_vm0, %v1115_v12 }
 0x23e   : > { %1125 = vst.msk [vmem:[#allocation2 + $0x70] sm:$0xff] %vm176_vm0, %v1117_v14 }
 0x23f   : > { %1569 = vst.msk [vmem:[#allocation2 + $0x80] sm:$0xff] %vm176_vm0, %v1561_v51  ;;  %v1558_v57 = vpop.xlane.xlu1 %1557  ;;  %v1990_v51 = vld [vmem:[#allocation2 + $0xd8] sm:$0xff] }
 0x240   : > { %1126 = vst.msk [vmem:[#allocation2 + $0x78] sm:$0xff] %vm176_vm0, %v1118_v1  ;;  %v1567_v35 = vadd.f32 %v1558_v57, %v1543_v15  ;;  %v1994_v57 = vld [vmem:[#allocation2 + $0xf8] sm:$0xff] }
 0x241   : > { %1570 = vst.msk [vmem:[#allocation2 + $0x88] sm:$0xff] %vm176_vm0, %v1562_v27  ;;  %v1554_v61 = vpop.xlane.xlu2 %1553 }
 0x242   : > { %v2041_v0 = vld [vmem:[#allocation2 + $0x58] sm:$0xff]  ;;  %1572 = vst.msk [vmem:[#allocation2 + $0x98] sm:$0xff] %vm176_vm0, %v1564_v16  ;;  %v1565_v30 = vadd.f32 %v1554_v61, %v1541_v4 }
 0x243   : > { %v2073_v2 = vmul.f32 0.001953125, %v2041_v0  ;;  %v2043_v47 = vld [vmem:[#allocation2 + $0x68] sm:$0xff]  ;;  %1571 = vst.msk [vmem:[#allocation2 + $0x90] sm:$0xff] %vm176_vm0, %v1563_v7  ;;  %v1556_v5 = vpop.xlane.xlu0 %1555 }
 0x244   : > { %v2075_v22 = vmul.f32 0.001953125, %v2043_v47  ;;  %v2042_v32 = vld [vmem:[#allocation2 + $0x60] sm:$0xff]  ;;  %1573 = vst.msk [vmem:[#allocation2 + $0xa0] sm:$0xff] %vm176_vm0, %v1565_v30  ;;  %v1566_v45 = vadd.f32 %v1556_v5, %v1542_v60  ;;  %v1992_v7 = vld [vmem:[#allocation2 + $0xe8] sm:$0xff] }
 0x245   : > { %2105 = vst.msk [vmem:[%s4457_s9 + $0x58] sm:$0xff] %vm176_vm0, %v2073_v2  ;;  %v2074_v34 = vmul.f32 0.001953125, %v2042_v32  ;;  %v2044_v21 = vld [vmem:[#allocation2 + $0x70] sm:$0xff] }
 0x246   : > { %2107 = vst.msk [vmem:[%s4457_s9 + $0x68] sm:$0xff] %vm176_vm0, %v2075_v22  ;;  %v2076_v36 = vmul.f32 0.001953125, %v2044_v21  ;;  %v2046_v38 = vld [vmem:[#allocation2 + $0x80] sm:$0xff]  ;;  %v1993_v32 = vld [vmem:[#allocation2 + $0xf0] sm:$0xff] }
 0x247   : > { %2106 = vst.msk [vmem:[%s4457_s9 + $0x60] sm:$0xff] %vm176_vm0, %v2074_v34  ;;  %v2078_v8 = vmul.f32 0.001953125, %v2046_v38  ;;  %v2045_v39 = vld [vmem:[#allocation2 + $0x78] sm:$0xff]  ;;  %v1998_v58 = vpop.xlane.xlu1 %1997 }
 0x248   : > { %2108 = vst.msk [vmem:[%s4457_s9 + $0x70] sm:$0xff] %vm176_vm0, %v2076_v36  ;;  %v2077_v55 = vmul.f32 0.001953125, %v2045_v39  ;;  %v2047_v23 = vld [vmem:[#allocation2 + $0x88] sm:$0xff]  ;;  %v2012_v20 = vadd.f32 %v1998_v58, %v1988_v37 }
 0x249   : > { %2110 = vst.msk [vmem:[%s4457_s9 + $0x80] sm:$0xff] %vm176_vm0, %v2078_v8  ;;  %v2079_v28 = vmul.f32 0.001953125, %v2047_v23  ;;  %v2049_v40 = vld [vmem:[#allocation2 + $0x98] sm:$0xff]  ;;  %v1560_v9 = vpop.xlane.xlu2 %1559 }
 0x24a   : > { %2109 = vst.msk [vmem:[%s4457_s9 + $0x78] sm:$0xff] %vm176_vm0, %v2077_v55  ;;  %v2081_v41 = vmul.f32 0.001953125, %v2049_v40  ;;  %v2048_v42 = vld [vmem:[#allocation2 + $0x90] sm:$0xff]  ;;  %v1568_v49 = vadd.f32 %v1560_v9, %v1544_v31 }
 0x24b   : > { %2111 = vst.msk [vmem:[%s4457_s9 + $0x88] sm:$0xff] %vm176_vm0, %v2079_v28  ;;  %v2080_v29 = vmul.f32 0.001953125, %v2048_v42  ;;  %v2050_v33 = vld [vmem:[#allocation2 + $0xa0] sm:$0xff]  ;;  %v1996_v46 = vpop.xlane.xlu0 %1995 }
 0x24c   : > { %2113 = vst.msk [vmem:[%s4457_s9 + $0x98] sm:$0xff] %vm176_vm0, %v2081_v41  ;;  %v2082_v10 = vmul.f32 0.001953125, %v2050_v33  ;;  %v2011_v11 = vadd.f32 %v1996_v46, %v1987_v56 }
 0x24d   : > { %2112 = vst.msk [vmem:[%s4457_s9 + $0x90] sm:$0xff] %vm176_vm0, %v2080_v29 }
 0x24e   : > { %2114 = vst.msk [vmem:[%s4457_s9 + $0xa0] sm:$0xff] %vm176_vm0, %v2082_v10 }
 0x24f   : > { %1575 = vst.msk [vmem:[#allocation2 + $0xb0] sm:$0xff] %vm176_vm0, %v1567_v35 }
 0x250   : > { %1574 = vst.msk [vmem:[#allocation2 + $0xa8] sm:$0xff] %vm176_vm0, %v1566_v45 }
 0x251   : > { %1576 = vst.msk [vmem:[#allocation2 + $0xb8] sm:$0xff] %vm176_vm0, %v1568_v49 }
 0x252   : > { %2020 = vst.msk [vmem:[#allocation2 + $0xc8] sm:$0xff] %vm176_vm0, %v2012_v20 }
 0x253   : > { %2019 = vst.msk [vmem:[#allocation2 + $0xc0] sm:$0xff] %vm176_vm0, %v2011_v11 }
 0x254   : > { %v2000_v53 = vpop.xlane.xlu2 %1999 }
 0x255   : > { %v2013_v44 = vadd.f32 %v2000_v53, %v1989_v59 }
 0x256   : > { %v2052_v62 = vld [vmem:[#allocation2 + $0xb0] sm:$0xff] }
 0x257   : > { %2021 = vst.msk [vmem:[#allocation2 + $0xd0] sm:$0xff] %vm176_vm0, %v2013_v44  ;;  %v2084_v63 = vmul.f32 0.001953125, %v2052_v62  ;;  %v2051_v3 = vld [vmem:[#allocation2 + $0xa8] sm:$0xff] }
 0x258   : > { %v2083_v26 = vmul.f32 0.001953125, %v2051_v3  ;;  %v2053_v19 = vld [vmem:[#allocation2 + $0xb8] sm:$0xff] }
 0x259   : > { %2116 = vst.msk [vmem:[%s4457_s9 + $0xb0] sm:$0xff] %vm176_vm0, %v2084_v63  ;;  %v2085_v48 = vmul.f32 0.001953125, %v2053_v19  ;;  %v2055_v6 = vld [vmem:[#allocation2 + $0xc8] sm:$0xff] }
 0x25a   : > { %2115 = vst.msk [vmem:[%s4457_s9 + $0xa8] sm:$0xff] %vm176_vm0, %v2083_v26  ;;  %v2087_v12 = vmul.f32 0.001953125, %v2055_v6  ;;  %v2054_v25 = vld [vmem:[#allocation2 + $0xc0] sm:$0xff] }
 0x25b   : > { %2117 = vst.msk [vmem:[%s4457_s9 + $0xb8] sm:$0xff] %vm176_vm0, %v2085_v48  ;;  %v2086_v17 = vmul.f32 0.001953125, %v2054_v25 }
 0x25c   : > { %2119 = vst.msk [vmem:[%s4457_s9 + $0xc8] sm:$0xff] %vm176_vm0, %v2087_v12 }
 0x25d   : > { %2118 = vst.msk [vmem:[%s4457_s9 + $0xc0] sm:$0xff] %vm176_vm0, %v2086_v17 }
 0x25e   : > { %v2056_v14 = vld [vmem:[#allocation2 + $0xd0] sm:$0xff] }
 0x25f   : > { %v2088_v13 = vmul.f32 0.001953125, %v2056_v14 }
 0x261   : > { %2120 = vst.msk [vmem:[%s4457_s9 + $0xd0] sm:$0xff] %vm176_vm0, %v2088_v13 }
 0x264   : > { %v2004_v18 = vpop.xlane.xlu1 %2003 }
 0x265   : > { %v2015_v50 = vadd.f32 %v2004_v18, %v1991_v43 }
 0x267   : > { %2023 = vst.msk [vmem:[#allocation2 + $0xe0] sm:$0xff] %vm176_vm0, %v2015_v50 }
 0x26e   : > { %v2058_v24 = vld [vmem:[#allocation2 + $0xe0] sm:$0xff] }
 0x26f   : > { %v2090_v54 = vmul.f32 0.001953125, %v2058_v24 }
 0x271   : > { %2122 = vst.msk [vmem:[%s4457_s9 + $0xe0] sm:$0xff] %vm176_vm0, %v2090_v54 }
 0x274   : > { %v2002_v1 = vpop.xlane.xlu0 %2001 }
 0x275   : > { %v2014_v52 = vadd.f32 %v2002_v1, %v1990_v51 }
 0x277   : > { %2022 = vst.msk [vmem:[#allocation2 + $0xd8] sm:$0xff] %vm176_vm0, %v2014_v52 }
 0x27e   : > { %v2057_v27 = vld [vmem:[#allocation2 + $0xd8] sm:$0xff] }
 0x27f   : > { %v2089_v16 = vmul.f32 0.001953125, %v2057_v27 }
 0x281   : > { %2121 = vst.msk [vmem:[%s4457_s9 + $0xd8] sm:$0xff] %vm176_vm0, %v2089_v16 }
 0x284   : > { %v2006_v4 = vpop.xlane.xlu2 %2005 }
 0x285   : > { %v2016_v61 = vadd.f32 %v2006_v4, %v1992_v7 }
 0x287   : > { %2024 = vst.msk [vmem:[#allocation2 + $0xe8] sm:$0xff] %vm176_vm0, %v2016_v61 }
 0x28e   : > { %v2059_v0 = vld [vmem:[#allocation2 + $0xe8] sm:$0xff] }
 0x28f   : > { %v2091_v30 = vmul.f32 0.001953125, %v2059_v0 }
 0x291   : > { %2123 = vst.msk [vmem:[%s4457_s9 + $0xe8] sm:$0xff] %vm176_vm0, %v2091_v30 }
 0x294   : > { %v2010_v2 = vpop.xlane.xlu1 %2009 }
 0x295   : > { %v2018_v47 = vadd.f32 %v2010_v2, %v1994_v57 }
 0x297   : > { %2026 = vst.msk [vmem:[#allocation2 + $0xf8] sm:$0xff] %vm176_vm0, %v2018_v47 }
 0x29e   : > { %v2061_v5 = vld [vmem:[#allocation2 + $0xf8] sm:$0xff] }
 0x29f   : > { %v2093_v22 = vmul.f32 0.001953125, %v2061_v5 }
 0x2a1   : > { %2125 = vst.msk [vmem:[%s4457_s9 + $0xf8] sm:$0xff] %vm176_vm0, %v2093_v22 }
 0x2a4   : > { %v2008_v34 = vpop.xlane.xlu0 %2007 }
 0x2a5   : > { %v2017_v21 = vadd.f32 %v2008_v34, %v1993_v32 }
 0x2a7   : > { %2025 = vst.msk [vmem:[#allocation2 + $0xf0] sm:$0xff] %vm176_vm0, %v2017_v21 }
 0x2ae   : > { %v2060_v36 = vld [vmem:[#allocation2 + $0xf0] sm:$0xff] }
 0x2af   : > { %v2092_v38 = vmul.f32 0.001953125, %v2060_v36 }
 0x2b1   : > { %2124 = vst.msk [vmem:[%s4457_s9 + $0xf0] sm:$0xff] %vm176_vm0, %v2092_v38 }
 0x2b2 PF: > { %s14_s11 = sadd.s32 1, %s3655_s11   ;;  %s4612_s6 = smov %s3639_s7 }
 0x2b3   : > { %p11_p0 = scmp.ge.s32.totalorder %s14_s11, 4   ;;  %s4613_s7 = smov %s3643_s8 }
 0x2b4   : > { %s4614_s8 = smov %s3717_s18  ;;  %s4615_s9 = smov %s3651_s10 }
 0x2b5   : > { %s4616_s10 = smov %s4618_s13  ;;  %13 = sbr.rel (!%p11_p0) target bundleno = 4 (0x4), region = 72 }
 0x2ba   :  { %2155 = vsyncpa [#allocation4], 1 }
 0x2bb   :  { %2157 = vsyncpa [#allocation4 + $0x1], 1 }

</bundles_post_ra>
